<compile_context>
chip_gen: v7x
topology: tpu7x:2x2x1
jax: 0.10.0
libtpu: 0.0.40
codegen_flags: <defaults>
</compile_context>

<pallas_src>
import functools

import numpy as np
import jax
import jax.numpy as jnp
from jax.experimental import pallas as pl
from jax.experimental.pallas import tpu as pltpu


# ----------------------------------------------------------------------------
# In-kernel math helpers
# ----------------------------------------------------------------------------
_SQRT_HALF = 0.7071067811865476


def _erf_approx(x):
    # TODO(synk): Mosaic has no guaranteed lax.erf lowering; Abramowitz &
    # Stegun 7.1.26 rational approximation (|abs err| < 1.5e-7 ~ f32 eps).
    a1, a2, a3, a4, a5 = 0.254829592, -0.284496736, 1.421413741, -1.453152027, 1.061405429
    p = 0.3275911
    s = jnp.where(x < 0.0, -1.0, 1.0)
    ax = jnp.abs(x)
    t = 1.0 / (1.0 + p * ax)
    poly = ((((a5 * t + a4) * t + a3) * t + a2) * t + a1) * t
    return s * (1.0 - poly * jnp.exp(-ax * ax))


def _gelu_exact(x):
    # nn.GELU default (approximate='none'): 0.5*x*(1+erf(x/sqrt(2)))
    return 0.5 * x * (1.0 + _erf_approx(x * _SQRT_HALF))


def _layernorm(x, gamma_row, beta_row, eps):
    mean = jnp.mean(x, axis=-1, keepdims=True)
    var = jnp.mean((x - mean) * (x - mean), axis=-1, keepdims=True)
    return (x - mean) * jax.lax.rsqrt(var + eps) * gamma_row + beta_row


# ----------------------------------------------------------------------------
# Row tiling helpers (padded tiles instead of a single full-M block)
# ----------------------------------------------------------------------------
def _round_up(x, m):
    return ((x + m - 1) // m) * m


def _tile_rows(M, cap=256):
    for tm in (cap, 128):
        if M >= tm and M % tm == 0:
            return tm, M
    if M >= 128:
        return 128, _round_up(M, 128)
    tm = _round_up(M, 8)
    return tm, tm


def _pad_rows(x2d, m_pad):
    M = x2d.shape[0]
    if m_pad == M:
        return x2d
    return jnp.pad(x2d, ((0, m_pad - M), (0, 0)))


# ----------------------------------------------------------------------------
# Pallas kernels
# ----------------------------------------------------------------------------
def _layernorm_kernel(x_ref, g_ref, b_ref, o_ref, *, eps):
    x = x_ref[...].astype(jnp.float32)
    o_ref[...] = _layernorm(x, g_ref[...], b_ref[...], eps).astype(o_ref.dtype)


def _linear_ln_kernel(x_ref, w_ref, b_ref, g_ref, bt_ref, o_ref, *, eps):
    # y = LN(x @ W + b)   (patch embedding)
    y = jnp.dot(x_ref[...], w_ref[...], preferred_element_type=jnp.float32) + b_ref[...]
    o_ref[...] = _layernorm(y, g_ref[...], bt_ref[...], eps).astype(o_ref.dtype)


def _ln_linear_kernel(x_ref, g_ref, bt_ref, w_ref, b_ref, o_ref, *, eps):
    # y = LN(x) @ W + b   (patch merging reduction)
    x = x_ref[...].astype(jnp.float32)
    xn = _layernorm(x, g_ref[...], bt_ref[...], eps)
    y = jnp.dot(xn, w_ref[...], preferred_element_type=jnp.float32) + b_ref[...]
    o_ref[...] = y.astype(o_ref.dtype)


def _ln_mlp_kernel(x_ref, g_ref, bt_ref, w1_ref, b1_ref, w2_ref, b2_ref, o_ref, *, eps):
    # y = x + fc2(GELU(fc1(LN(x))))   (fused MLP block with residual)
    x = x_ref[...].astype(jnp.float32)
    xn = _layernorm(x, g_ref[...], bt_ref[...], eps)
    h = jnp.dot(xn, w1_ref[...], preferred_element_type=jnp.float32) + b1_ref[...]
    h = _gelu_exact(h)
    y = jnp.dot(h, w2_ref[...], preferred_element_type=jnp.float32) + b2_ref[...]
    o_ref[...] = (x + y).astype(o_ref.dtype)


def _ln_pool_head_kernel(x_ref, g_ref, bt_ref, w_ref, b_ref, o_ref, *, eps):
    # final norm -> mean over tokens -> classifier head, per batch element
    x = x_ref[0].astype(jnp.float32)                     # (L, C)
    xn = _layernorm(x, g_ref[...], bt_ref[...], eps)
    pooled = jnp.mean(xn, axis=0, keepdims=True)         # (1, C)
    logits = jnp.dot(pooled, w_ref[...], preferred_element_type=jnp.float32) + b_ref[...]
    o_ref[...] = logits[None].astype(o_ref.dtype)        # (1, 1, ncls)


def _window_attn_kernel(x_ref, g_ref, bt_ref, wqkv_ref, bqkv_ref, rel_ref, mask_ref,
                        wproj_ref, bproj_ref, o_ref, *, num_heads, scale, eps, apply_ln):
    """Fused (LN) + QKV + multi-head window attention + proj for GW windows."""
    _, GW, N, C = x_ref.shape
    D = C // num_heads

    x = x_ref[0].astype(jnp.float32).reshape(GW * N, C)
    if apply_ln:
        x = _layernorm(x, g_ref[...], bt_ref[...], eps)

    qkv = jnp.dot(x, wqkv_ref[...], preferred_element_type=jnp.float32) + bqkv_ref[...]
    qkv = qkv.reshape(GW, N, 3 * C)
    mask = mask_ref[...]                                  # (GW, N, N)

    head_outs = []
    for h in range(num_heads):
        q = qkv[:, :, h * D:(h + 1) * D] * scale
        k = qkv[:, :, C + h * D:C + (h + 1) * D]
        v = qkv[:, :, 2 * C + h * D:2 * C + (h + 1) * D]
        s = jnp.einsum("gnd,gmd->gnm", q, k, preferred_element_type=jnp.float32)
        s = s + rel_ref[h][None, :, :] + mask
        s = s - jnp.max(s, axis=-1, keepdims=True)
        p = jnp.exp(s)
        denom = jnp.sum(p, axis=-1, keepdims=True)
        o_h = jnp.einsum("gnm,gmd->gnd", p, v, preferred_element_type=jnp.float32)
        head_outs.append(o_h * pl.reciprocal(denom, approx=True))

    attn = jnp.concatenate(head_outs, axis=-1).reshape(GW * N, C)   # lane-dense (.., C)
    y = jnp.dot(attn, wproj_ref[...], preferred_element_type=jnp.float32) + bproj_ref[...]
    o_ref[...] = y.reshape(1, GW, N, C).astype(o_ref.dtype)


# ----------------------------------------------------------------------------
# Kernel wrappers
# ----------------------------------------------------------------------------
def pallas_layernorm(x2d, gamma, beta, eps=1e-5):
    M, C = x2d.shape
    tm, mp = _tile_rows(M)
    xp = _pad_rows(x2d, mp)
    out = pl.pallas_call(
        functools.partial(_layernorm_kernel, eps=eps),
        out_shape=jax.ShapeDtypeStruct((mp, C), jnp.float32),
        grid=(mp // tm,),
        in_specs=[
            pl.BlockSpec((tm, C), lambda i: (i, 0)),
            pl.BlockSpec((1, C), lambda i: (0, 0)),
            pl.BlockSpec((1, C), lambda i: (0, 0)),
        ],
        out_specs=pl.BlockSpec((tm, C), lambda i: (i, 0)),
        compiler_params=pltpu.CompilerParams(dimension_semantics=("parallel",)),
    )(xp, gamma.reshape(1, C), beta.reshape(1, C))
    return out[:M] if mp != M else out


def pallas_linear_ln(x2d, w_t, b, gamma, beta, eps=1e-5):
    M, K = x2d.shape
    N = w_t.shape[1]
    tm, mp = _tile_rows(M)
    xp = _pad_rows(x2d, mp)
    out = pl.pallas_call(
        functools.partial(_linear_ln_kernel, eps=eps),
        out_shape=jax.ShapeDtypeStruct((mp, N), jnp.float32),
        grid=(mp // tm,),
        in_specs=[
            pl.BlockSpec((tm, K), lambda i: (i, 0)),
            pl.BlockSpec((K, N), lambda i: (0, 0)),
            pl.BlockSpec((1, N), lambda i: (0, 0)),
            pl.BlockSpec((1, N), lambda i: (0, 0)),
            pl.BlockSpec((1, N), lambda i: (0, 0)),
        ],
        out_specs=pl.BlockSpec((tm, N), lambda i: (i, 0)),
        compiler_params=pltpu.CompilerParams(dimension_semantics=("parallel",)),
    )(xp, w_t, b.reshape(1, N), gamma.reshape(1, N), beta.reshape(1, N))
    return out[:M] if mp != M else out


def pallas_ln_linear(x2d, gamma, beta, w_t, b=None, eps=1e-5):
    M, K = x2d.shape
    N = w_t.shape[1]
    if b is None:
        b = jnp.zeros((N,), jnp.float32)
    tm, mp = _tile_rows(M)
    xp = _pad_rows(x2d, mp)
    out = pl.pallas_call(
        functools.partial(_ln_linear_kernel, eps=eps),
        out_shape=jax.ShapeDtypeStruct((mp, N), jnp.float32),
        grid=(mp // tm,),
        in_specs=[
            pl.BlockSpec((tm, K), lambda i: (i, 0)),
            pl.BlockSpec((1, K), lambda i: (0, 0)),
            pl.BlockSpec((1, K), lambda i: (0, 0)),
            pl.BlockSpec((K, N), lambda i: (0, 0)),
            pl.BlockSpec((1, N), lambda i: (0, 0)),
        ],
        out_specs=pl.BlockSpec((tm, N), lambda i: (i, 0)),
        compiler_params=pltpu.CompilerParams(dimension_semantics=("parallel",)),
    )(xp, gamma.reshape(1, K), beta.reshape(1, K), w_t, b.reshape(1, N))
    return out[:M] if mp != M else out


def pallas_ln_mlp(x2d, gamma, beta, w1_t, b1, w2_t, b2, eps=1e-5):
    M, C = x2d.shape
    hidden = w1_t.shape[1]
    tm, mp = _tile_rows(M)
    xp = _pad_rows(x2d, mp)
    out = pl.pallas_call(
        functools.partial(_ln_mlp_kernel, eps=eps),
        out_shape=jax.ShapeDtypeStruct((mp, C), jnp.float32),
        grid=(mp // tm,),
        in_specs=[
            pl.BlockSpec((tm, C), lambda i: (i, 0)),
            pl.BlockSpec((1, C), lambda i: (0, 0)),
            pl.BlockSpec((1, C), lambda i: (0, 0)),
            pl.BlockSpec((C, hidden), lambda i: (0, 0)),
            pl.BlockSpec((1, hidden), lambda i: (0, 0)),
            pl.BlockSpec((hidden, C), lambda i: (0, 0)),
            pl.BlockSpec((1, C), lambda i: (0, 0)),
        ],
        out_specs=pl.BlockSpec((tm, C), lambda i: (i, 0)),
        compiler_params=pltpu.CompilerParams(dimension_semantics=("parallel",)),
    )(xp, gamma.reshape(1, C), beta.reshape(1, C),
      w1_t, b1.reshape(1, hidden), w2_t, b2.reshape(1, C))
    return out[:M] if mp != M else out


def pallas_fused_window_attention(xw, attn_p, num_heads, mask_arr, gamma1, beta1,
                                  apply_ln, eps=1e-5):
    """xw: (B, nW, N, C) windowed tokens; mask_arr: (nW, N, N)."""
    B, nW, N, C = xw.shape
    D = C // num_heads
    scale = D ** (-0.5)

    # Group several whole windows per grid step to amortize per-step overhead.
    GW = 1
    for cand in range(nW, 0, -1):
        if nW % cand == 0 and cand * N <= 512:
            GW = cand
            break

    kernel = functools.partial(_window_attn_kernel, num_heads=num_heads, scale=scale,
                               eps=eps, apply_ln=apply_ln)
    return pl.pallas_call(
        kernel,
        out_shape=jax.ShapeDtypeStruct((B, nW, N, C), jnp.float32),
        grid=(B, nW // GW),
        in_specs=[
            pl.BlockSpec((1, GW, N, C), lambda b, g: (b, g, 0, 0)),
            pl.BlockSpec((1, C), lambda b, g: (0, 0)),
            pl.BlockSpec((1, C), lambda b, g: (0, 0)),
            pl.BlockSpec((C, 3 * C), lambda b, g: (0, 0)),
            pl.BlockSpec((1, 3 * C), lambda b, g: (0, 0)),
            pl.BlockSpec((num_heads, N, N), lambda b, g: (0, 0, 0)),
            pl.BlockSpec((GW, N, N), lambda b, g: (g, 0, 0)),
            pl.BlockSpec((C, C), lambda b, g: (0, 0)),
            pl.BlockSpec((1, C), lambda b, g: (0, 0)),
        ],
        out_specs=pl.BlockSpec((1, GW, N, C), lambda b, g: (b, g, 0, 0)),
        compiler_params=pltpu.CompilerParams(
            dimension_semantics=("parallel", "parallel")),
    )(xw, gamma1.reshape(1, C), beta1.reshape(1, C),
      attn_p["qkv_wt"], attn_p["qkv_b"].reshape(1, 3 * C),
      attn_p["rel_bias"], mask_arr,
      attn_p["proj_wt"], attn_p["proj_b"].reshape(1, C))


def pallas_ln_pool_head(x3d, gamma, beta, w_head_t, b_head, eps=1e-5):
    B, L, C = x3d.shape
    ncls = w_head_t.shape[1]
    out = pl.pallas_call(
        functools.partial(_ln_pool_head_kernel, eps=eps),
        out_shape=jax.ShapeDtypeStruct((B, 1, ncls), jnp.float32),
        grid=(B,),
        in_specs=[
            pl.BlockSpec((1, L, C), lambda b: (b, 0, 0)),
            pl.BlockSpec((1, C), lambda b: (0, 0)),
            pl.BlockSpec((1, C), lambda b: (0, 0)),
            pl.BlockSpec((C, ncls), lambda b: (0, 0)),
            pl.BlockSpec((1, ncls), lambda b: (0, 0)),
        ],
        out_specs=pl.BlockSpec((1, 1, ncls), lambda b: (b, 0, 0)),
        compiler_params=pltpu.CompilerParams(dimension_semantics=("parallel",)),
    )(x3d, gamma.reshape(1, C), beta.reshape(1, C), w_head_t, b_head.reshape(1, ncls))
    return out.reshape(B, ncls)


# ----------------------------------------------------------------------------
# Glue: window partition / reverse, relative position index, shift mask
# ----------------------------------------------------------------------------
def window_partition_b(x, ws):
    """(B, H, W, C) -> (B, nW, ws*ws, C), windows in row-major order per batch."""
    B, H, W, C = x.shape
    x = x.reshape(B, H // ws, ws, W // ws, ws, C)
    x = jnp.transpose(x, (0, 1, 3, 2, 4, 5))
    return x.reshape(B, (H // ws) * (W // ws), ws * ws, C)


def window_reverse_b(xw, ws, H, W):
    """(B, nW, ws*ws, C) -> (B, H, W, C)."""
    B = xw.shape[0]
    C = xw.shape[-1]
    x = xw.reshape(B, H // ws, W // ws, ws, ws, C)
    x = jnp.transpose(x, (0, 1, 3, 2, 4, 5))
    return x.reshape(B, H, W, C)


def get_relative_position_index(ws):
    coords_h = np.arange(ws)
    coords_w = np.arange(ws)
    coords = np.stack(np.meshgrid(coords_h, coords_w, indexing="ij"))      # (2, ws, ws)
    coords_flat = coords.reshape(2, -1)                                     # (2, N)
    rel = coords_flat[:, :, None] - coords_flat[:, None, :]                 # (2, N, N)
    rel = rel.transpose(1, 2, 0).astype(np.int64)                           # (N, N, 2)
    rel[..., 0] += ws - 1
    rel[..., 1] += ws - 1
    rel[..., 0] *= 2 * ws - 1
    return rel.sum(-1)                                                      # (N, N)


def create_attn_mask(H, W, ws, shift):
    Hp = int(np.ceil(H / ws)) * ws
    Wp = int(np.ceil(W / ws)) * ws
    img_mask = np.zeros((1, Hp, Wp, 1), dtype=np.float32)
    h_slices = (slice(0, -ws), slice(-ws, -shift), slice(-shift, None))
    w_slices = (slice(0, -ws), slice(-ws, -shift), slice(-shift, None))
    cnt = 0
    for h in h_slices:
        for w in w_slices:
            img_mask[:, h, w, :] = cnt
            cnt += 1
    mw = img_mask.reshape(1, Hp // ws, ws, Wp // ws, ws, 1)
    mw = mw.transpose(0, 1, 3, 2, 4, 5).reshape(-1, ws * ws)
    attn_mask = mw[:, None, :] - mw[:, :, None]
    attn_mask = np.where(attn_mask != 0, -100.0, 0.0).astype(np.float32)
    return jnp.asarray(attn_mask)                                           # (nW, N, N)


# ----------------------------------------------------------------------------
# Module forwards (orchestrating Pallas kernels)
# ----------------------------------------------------------------------------
def patch_embed_forward(x, p, patch_size, embed_dim):
    B, Cin, H, W = x.shape
    pad_h = (patch_size - H % patch_size) % patch_size
    pad_w = (patch_size - W % patch_size) % patch_size
    if pad_h or pad_w:
        x = jnp.pad(x, ((0, 0), (0, 0), (0, pad_h), (0, pad_w)))
    H, W = H + pad_h, W + pad_w
    Hc, Wc = H // patch_size, W // patch_size
    # Conv2d(kernel=stride=patch_size) == patch extraction + matmul
    xp = x.reshape(B, Cin, Hc, patch_size, Wc, patch_size)
    xp = jnp.transpose(xp, (0, 2, 4, 1, 3, 5)).reshape(B * Hc * Wc, Cin * patch_size * patch_size)
    y = pallas_linear_ln(xp, p["proj_wt"], p["proj_b"], p["norm_w"], p["norm_b"])
    return y.reshape(B, Hc * Wc, embed_dim), Hc, Wc


def swin_block_forward(x, H, W, p, num_heads, window_size, shift_size, mask_arr):
    B, L, C = x.shape
    shortcut = x

    pad_r = (window_size - W % window_size) % window_size
    pad_b = (window_size - H % window_size) % window_size
    fuse_ln = (pad_r == 0 and pad_b == 0)

    if fuse_ln:
        # norm1 is fused into the attention kernel (per-token LN commutes with
        # the pure token permutations roll / window_partition).
        xs = x.reshape(B, H, W, C)
    else:
        # With zero-padding, padded tokens must be zeros *after* LN to match
        # the reference; apply norm1 standalone first.
        xs = pallas_layernorm(x.reshape(-1, C), p["norm1_w"], p["norm1_b"]).reshape(B, H, W, C)
        xs = jnp.pad(xs, ((0, 0), (0, pad_b), (0, pad_r), (0, 0)))
    Hp, Wp = H + pad_b, W + pad_r

    if shift_size > 0:
        xs = jnp.roll(xs, shift=(-shift_size, -shift_size), axis=(1, 2))

    xw = window_partition_b(xs, window_size)                 # (B, nW, N, C)
    attn_out = pallas_fused_window_attention(
        xw, p["attn"], num_heads, mask_arr, p["norm1_w"], p["norm1_b"], apply_ln=fuse_ln)
    xs = window_reverse_b(attn_out, window_size, Hp, Wp)     # (B, Hp, Wp, C)

    if shift_size > 0:
        xs = jnp.roll(xs, shift=(shift_size, shift_size), axis=(1, 2))
    if pad_r or pad_b:
        xs = xs[:, :H, :W, :]

    x = shortcut + xs.reshape(B, H * W, C)                   # DropPath = identity (eval)

    # Fused: x + fc2(GELU(fc1(LN2(x))))
    y = pallas_ln_mlp(x.reshape(-1, C), p["norm2_w"], p["norm2_b"],
                      p["fc1_wt"], p["fc1_b"], p["fc2_wt"], p["fc2_b"])
    return y.reshape(B, L, C)


def patch_merging_forward(x, H, W, p):
    B, L, C = x.shape
    x = x.reshape(B, H, W, C)
    if (H % 2 == 1) or (W % 2 == 1):
        x = jnp.pad(x, ((0, 0), (0, H % 2), (0, W % 2), (0, 0)))
    x0 = x[:, 0::2, 0::2, :]
    x1 = x[:, 1::2, 0::2, :]
    x2 = x[:, 0::2, 1::2, :]
    x3 = x[:, 1::2, 1::2, :]
    x = jnp.concatenate([x0, x1, x2, x3], axis=-1)            # (B, H/2, W/2, 4C)
    Bm, Hm, Wm, C4 = x.shape
    y = pallas_ln_linear(x.reshape(-1, C4), p["norm_w"], p["norm_b"], p["reduction_wt"])
    return y.reshape(Bm, Hm * Wm, 2 * C)


def swin_forward(params, x, cfg):
    x, H, W = patch_embed_forward(x, params["patch_embed"], cfg["patch_size"], cfg["embed_dim"])
    # pos_drop = identity (eval)
    ws = cfg["window_size"]
    shift = ws // 2
    N = ws * ws
    for i, layer_p in enumerate(params["layers"]):
        nH = cfg["num_heads"][i]
        Hp = int(np.ceil(H / ws)) * ws
        Wp = int(np.ceil(W / ws)) * ws
        nW = (Hp // ws) * (Wp // ws)
        shifted_mask = create_attn_mask(H, W, ws, shift)      # (nW, N, N)
        zero_mask = jnp.zeros((nW, N, N), jnp.float32)
        for j, blk_p in enumerate(layer_p["blocks"]):
            shift_size = 0 if (j % 2 == 0) else shift
            mask_arr = shifted_mask if shift_size > 0 else zero_mask
            x = swin_block_forward(x, H, W, blk_p, nH, ws, shift_size, mask_arr)
        if layer_p["downsample"] is not None:
            x = patch_merging_forward(x, H, W, layer_p["downsample"])
            H, W = (H + 1) // 2, (W + 1) // 2
    # final LayerNorm + AdaptiveAvgPool1d(1) over tokens + head, fused
    logits = pallas_ln_pool_head(x, params["norm_w"], params["norm_b"],
                                 params["head_wt"], params["head_b"])
    return logits


# ----------------------------------------------------------------------------
# Parameters: PyTorch-layout init + one-time "prepare" (transpose / gather)
# ----------------------------------------------------------------------------
def init_swin_params(key, cfg):
    keys = iter(jax.random.split(key, 512))

    def tn(shape, std=0.02):
        return (std * jax.random.truncated_normal(next(keys), -2.0, 2.0, shape)).astype(jnp.float32)

    def zeros(shape):
        return jnp.zeros(shape, jnp.float32)

    def ones(shape):
        return jnp.ones(shape, jnp.float32)

    ps, ic, ed = cfg["patch_size"], cfg["in_chans"], cfg["embed_dim"]
    ws = cfg["window_size"]
    params = {}
    params["patch_embed"] = dict(
        proj_w=tn((ed, ic, ps, ps)),
        proj_b=zeros((ed,)),
        norm_w=ones((ed,)),
        norm_b=zeros((ed,)),
    )

    layers = []
    num_layers = len(cfg["depths"])
    for i, depth in enumerate(cfg["depths"]):
        dim = ed * (2 ** i)
        nH = cfg["num_heads"][i]
        hidden = int(dim * cfg["mlp_ratio"])
        blocks = []
        for _ in range(depth):
            blocks.append(dict(
                norm1_w=ones((dim,)), norm1_b=zeros((dim,)),
                attn=dict(
                    rpb_table=tn(((2 * ws - 1) * (2 * ws - 1), nH)),
                    qkv_w=tn((3 * dim, dim)), qkv_b=zeros((3 * dim,)),
                    proj_w=tn((dim, dim)), proj_b=zeros((dim,)),
                ),
                norm2_w=ones((dim,)), norm2_b=zeros((dim,)),
                fc1_w=tn((hidden, dim)), fc1_b=zeros((hidden,)),
                fc2_w=tn((dim, hidden)), fc2_b=zeros((dim,)),
            ))
        layer = dict(blocks=blocks)
        if i < num_layers - 1:
            layer["downsample"] = dict(
                norm_w=ones((4 * dim,)), norm_b=zeros((4 * dim,)),
                reduction_w=tn((2 * dim, 4 * dim)),
            )
        else:
            layer["downsample"] = None
        layers.append(layer)
    params["layers"] = layers

    num_features = ed * (2 ** (num_layers - 1))
    params["norm_w"] = ones((num_features,))
    params["norm_b"] = zeros((num_features,))
    params["head_w"] = tn((cfg["num_classes"], num_features))
    params["head_b"] = zeros((cfg["num_classes"],))
    return params


def prepare_params(params, cfg):
    """One-time: transpose weights to (K, N) and gather the relative-position
    bias table into (nH, N, N) so nothing is transposed/gathered per forward."""
    ws = cfg["window_size"]
    N = ws * ws
    ed = cfg["embed_dim"]
    rel_index = jnp.asarray(get_relative_position_index(ws), dtype=jnp.int32)

    pe = params["patch_embed"]
    prep = dict(patch_embed=dict(
        proj_wt=pe["proj_w"].reshape(ed, -1).T,
        proj_b=pe["proj_b"], norm_w=pe["norm_w"], norm_b=pe["norm_b"]))

    layers = []
    for i, layer_p in enumerate(params["layers"]):
        nH = cfg["num_heads"][i]
        blocks = []
        for blk in layer_p["blocks"]:
            a = blk["attn"]
            rel_bias = a["rpb_table"][rel_index.reshape(-1)].reshape(N, N, nH)
            rel_bias = jnp.transpose(rel_bias, (2, 0, 1))          # (nH, N, N)
            blocks.append(dict(
                norm1_w=blk["norm1_w"], norm1_b=blk["norm1_b"],
                attn=dict(qkv_wt=a["qkv_w"].T, qkv_b=a["qkv_b"],
                          proj_wt=a["proj_w"].T, proj_b=a["proj_b"],
                          rel_bias=rel_bias),
                norm2_w=blk["norm2_w"], norm2_b=blk["norm2_b"],
                fc1_wt=blk["fc1_w"].T, fc1_b=blk["fc1_b"],
                fc2_wt=blk["fc2_w"].T, fc2_b=blk["fc2_b"]))
        layer = dict(blocks=blocks)
        if layer_p["downsample"] is not None:
            d = layer_p["downsample"]
            layer["downsample"] = dict(norm_w=d["norm_w"], norm_b=d["norm_b"],
                                       reduction_wt=d["reduction_w"].T)
        else:
            layer["downsample"] = None
        layers.append(layer)
    prep["layers"] = layers
    prep["norm_w"] = params["norm_w"]
    prep["norm_b"] = params["norm_b"]
    prep["head_wt"] = params["head_w"].T
    prep["head_b"] = params["head_b"]
    return prep


# ----------------------------------------------------------------------------
if __name__ == "__main__":
    cfg = dict(
        patch_size=4,
        in_chans=3,
        num_classes=10,
        embed_dim=16,
        depths=(2, 2),
        num_heads=(2, 4),
        window_size=4,
        mlp_ratio=4.0,
    )
    key = jax.random.PRNGKey(0)
    pkey, xkey = jax.random.split(key)
    params = init_swin_params(pkey, cfg)
    prep = prepare_params(params, cfg)

    # layout: NCHW input, like PyTorch
    x = jax.random.normal(xkey, (2, 3, 32, 32), jnp.float32)

    fwd = jax.jit(functools.partial(swin_forward, cfg=cfg))
    logits = fwd(prep, x)
    logits = jax.block_until_ready(logits)
    assert logits.shape == (2, cfg["num_classes"])
    assert bool(jnp.all(jnp.isfinite(logits)))
    print("KERNEL_OK")
</pallas_src>

<mosaic_0001>
module attributes {stable_mosaic.version = 11 : i64} {
  func.func @_linear_ln_kernel(%arg0: i32, %arg1: memref<128x48xf32, #tpu.memory_space<vmem>>, %arg2: memref<48x16xf32, #tpu.memory_space<vmem>>, %arg3: memref<1x16xf32, #tpu.memory_space<vmem>>, %arg4: memref<1x16xf32, #tpu.memory_space<vmem>>, %arg5: memref<1x16xf32, #tpu.memory_space<vmem>>, %arg6: memref<128x16xf32, #tpu.memory_space<vmem>>) attributes {dimension_semantics = [#tpu.dimension_semantics<parallel>], iteration_bounds = array<i64: 1>, scalar_prefetch = 0 : i64, scratch_operands = 0 : i64, tpu.core_type = #tpu.core_type<tc>, window_params = [{transform_indices = @transform_0, window_bounds = array<i64: 128, 48>}, {pipeline_mode = #tpu.pipeline_mode<synchronous>, transform_indices = @transform_1, window_bounds = array<i64: 48, 16>}, {pipeline_mode = #tpu.pipeline_mode<synchronous>, transform_indices = @transform_2, window_bounds = array<i64: 1, 16>}, {pipeline_mode = #tpu.pipeline_mode<synchronous>, transform_indices = @transform_3, window_bounds = array<i64: 1, 16>}, {pipeline_mode = #tpu.pipeline_mode<synchronous>, transform_indices = @transform_4, window_bounds = array<i64: 1, 16>}, {transform_indices = @transform_5, window_bounds = array<i64: 128, 16>}]} {
    %c0 = arith.constant 0 : index
    %c0_0 = arith.constant 0 : index
    %0 = vector.load %arg1[%c0, %c0_0] : memref<128x48xf32, #tpu.memory_space<vmem>>, vector<128x48xf32>
    %c0_1 = arith.constant 0 : index
    %c0_2 = arith.constant 0 : index
    %1 = vector.load %arg2[%c0_1, %c0_2] : memref<48x16xf32, #tpu.memory_space<vmem>>, vector<48x16xf32>
    %cst = arith.constant dense<0.000000e+00> : vector<128x16xf32>
    %2 = tpu.matmul %0, %1, %cst {dimension_numbers = #tpu.dot_dimension_numbers<[1], [0], [0], [1], [0, 0, 1, 1], [], []>} : vector<128x48xf32>, vector<48x16xf32>, vector<128x16xf32> -> vector<128x16xf32>
    %c0_3 = arith.constant 0 : index
    %c0_4 = arith.constant 0 : index
    %3 = vector.load %arg3[%c0_3, %c0_4] : memref<1x16xf32, #tpu.memory_space<vmem>>, vector<1x16xf32>
    %4 = vector.broadcast %3 : vector<1x16xf32> to vector<128x16xf32>
    %5 = arith.addf %2, %4 : vector<128x16xf32>
    %c0_5 = arith.constant 0 : index
    %c0_6 = arith.constant 0 : index
    %6 = vector.load %arg4[%c0_5, %c0_6] : memref<1x16xf32, #tpu.memory_space<vmem>>, vector<1x16xf32>
    %c0_7 = arith.constant 0 : index
    %c0_8 = arith.constant 0 : index
    %7 = vector.load %arg5[%c0_7, %c0_8] : memref<1x16xf32, #tpu.memory_space<vmem>>, vector<1x16xf32>
    %cst_9 = arith.constant dense<0.000000e+00> : vector<128xf32>
    %8 = vector.multi_reduction <add>, %5, %cst_9 [1] : vector<128x16xf32> to vector<128xf32>
    %9 = vector.shape_cast %8 : vector<128xf32> to vector<128x1xf32>
    %cst_10 = arith.constant 1.600000e+01 : f32
    %10 = vector.broadcast %cst_10 : f32 to vector<128x1xf32>
    %11 = arith.divf %9, %10 : vector<128x1xf32>
    %12 = vector.broadcast %11 : vector<128x1xf32> to vector<128x16xf32>
    %13 = arith.subf %5, %12 : vector<128x16xf32>
    %14 = vector.broadcast %11 : vector<128x1xf32> to vector<128x16xf32>
    %15 = arith.subf %5, %14 : vector<128x16xf32>
    %16 = arith.mulf %13, %15 : vector<128x16xf32>
    %cst_11 = arith.constant dense<0.000000e+00> : vector<128xf32>
    %17 = vector.multi_reduction <add>, %16, %cst_11 [1] : vector<128x16xf32> to vector<128xf32>
    %18 = vector.shape_cast %17 : vector<128xf32> to vector<128x1xf32>
    %cst_12 = arith.constant 1.600000e+01 : f32
    %19 = vector.broadcast %cst_12 : f32 to vector<128x1xf32>
    %20 = arith.divf %18, %19 : vector<128x1xf32>
    %21 = vector.broadcast %11 : vector<128x1xf32> to vector<128x16xf32>
    %22 = arith.subf %5, %21 : vector<128x16xf32>
    %cst_13 = arith.constant 9.99999974E-6 : f32
    %23 = vector.broadcast %cst_13 : f32 to vector<128x1xf32>
    %24 = arith.addf %20, %23 : vector<128x1xf32>
    %25 = math.rsqrt %24 : vector<128x1xf32>
    %26 = vector.broadcast %25 : vector<128x1xf32> to vector<128x16xf32>
    %27 = arith.mulf %22, %26 : vector<128x16xf32>
    %28 = vector.broadcast %6 : vector<1x16xf32> to vector<128x16xf32>
    %29 = arith.mulf %27, %28 : vector<128x16xf32>
    %30 = vector.broadcast %7 : vector<1x16xf32> to vector<128x16xf32>
    %31 = arith.addf %29, %30 : vector<128x16xf32>
    %c0_14 = arith.constant 0 : index
    %c0_15 = arith.constant 0 : index
    %32 = vector.load %arg6[%c0_14, %c0_15] : memref<128x16xf32, #tpu.memory_space<vmem>>, vector<128x16xf32>
    tpu.vector_store %arg6[%c0_14, %c0_15], %31 {strides = array<i32>} : memref<128x16xf32, #tpu.memory_space<vmem>>, vector<128x16xf32>,
    return
  }
  func.func @transform_0(%arg0: i32) -> (i32, i32) {
    %c0_i32 = arith.constant 0 : i32
    %c0_i32_0 = arith.constant 0 : i32
    return %arg0, %c0_i32 : i32, i32
  }
  func.func @transform_1(%arg0: i32) -> (i32, i32) {
    %c0_i32 = arith.constant 0 : i32
    %c0_i32_0 = arith.constant 0 : i32
    %c0_i32_1 = arith.constant 0 : i32
    return %c0_i32, %c0_i32_0 : i32, i32
  }
  func.func @transform_2(%arg0: i32) -> (i32, i32) {
    %c0_i32 = arith.constant 0 : i32
    %c0_i32_0 = arith.constant 0 : i32
    %c0_i32_1 = arith.constant 0 : i32
    return %c0_i32, %c0_i32_0 : i32, i32
  }
  func.func @transform_3(%arg0: i32) -> (i32, i32) {
    %c0_i32 = arith.constant 0 : i32
    %c0_i32_0 = arith.constant 0 : i32
    %c0_i32_1 = arith.constant 0 : i32
    return %c0_i32, %c0_i32_0 : i32, i32
  }
  func.func @transform_4(%arg0: i32) -> (i32, i32) {
    %c0_i32 = arith.constant 0 : i32
    %c0_i32_0 = arith.constant 0 : i32
    %c0_i32_1 = arith.constant 0 : i32
    return %c0_i32, %c0_i32_0 : i32, i32
  }
  func.func @transform_5(%arg0: i32) -> (i32, i32) {
    %c0_i32 = arith.constant 0 : i32
    %c0_i32_0 = arith.constant 0 : i32
    return %arg0, %c0_i32 : i32, i32
  }
}

module attributes {stable_mosaic.version = 11 : i64} {
  func.func @_window_attn_kernel(%arg0: i32, %arg1: i32, %arg2: memref<1x4x16x16xf32, #tpu.memory_space<vmem>>, %arg3: memref<1x16xf32, #tpu.memory_space<vmem>>, %arg4: memref<1x16xf32, #tpu.memory_space<vmem>>, %arg5: memref<16x48xf32, #tpu.memory_space<vmem>>, %arg6: memref<1x48xf32, #tpu.memory_space<vmem>>, %arg7: memref<2x16x16xf32, #tpu.memory_space<vmem>>, %arg8: memref<4x16x16xf32, #tpu.memory_space<vmem>>, %arg9: memref<16x16xf32, #tpu.memory_space<vmem>>, %arg10: memref<1x16xf32, #tpu.memory_space<vmem>>, %arg11: memref<1x4x16x16xf32, #tpu.memory_space<vmem>>) attributes {dimension_semantics = [#tpu.dimension_semantics<parallel>, #tpu.dimension_semantics<parallel>], iteration_bounds = array<i64: 2, 1>, scalar_prefetch = 0 : i64, scratch_operands = 0 : i64, tpu.core_type = #tpu.core_type<tc>, window_params = [{transform_indices = @transform_0, window_bounds = array<i64: 1, 4, 16, 16>}, {pipeline_mode = #tpu.pipeline_mode<synchronous>, transform_indices = @transform_1, window_bounds = array<i64: 1, 16>}, {pipeline_mode = #tpu.pipeline_mode<synchronous>, transform_indices = @transform_2, window_bounds = array<i64: 1, 16>}, {pipeline_mode = #tpu.pipeline_mode<synchronous>, transform_indices = @transform_3, window_bounds = array<i64: 16, 48>}, {pipeline_mode = #tpu.pipeline_mode<synchronous>, transform_indices = @transform_4, window_bounds = array<i64: 1, 48>}, {pipeline_mode = #tpu.pipeline_mode<synchronous>, transform_indices = @transform_5, window_bounds = array<i64: 2, 16, 16>}, {transform_indices = @transform_6, window_bounds = array<i64: 4, 16, 16>}, {pipeline_mode = #tpu.pipeline_mode<synchronous>, transform_indices = @transform_7, window_bounds = array<i64: 16, 16>}, {pipeline_mode = #tpu.pipeline_mode<synchronous>, transform_indices = @transform_8, window_bounds = array<i64: 1, 16>}, {transform_indices = @transform_9, window_bounds = array<i64: 1, 4, 16, 16>}]} {
    %c0 = arith.constant 0 : index
    %c0_0 = arith.constant 0 : index
    %c0_1 = arith.constant 0 : index
    %c0_2 = arith.constant 0 : index
    %0 = vector.load %arg2[%c0, %c0_0, %c0_1, %c0_2] : memref<1x4x16x16xf32, #tpu.memory_space<vmem>>, vector<1x4x16x16xf32>
    %1 = vector.shape_cast %0 : vector<1x4x16x16xf32> to vector<4x16x16xf32>
    %2 = vector.shape_cast %1 : vector<4x16x16xf32> to vector<64x16xf32>
    %c0_3 = arith.constant 0 : index
    %c0_4 = arith.constant 0 : index
    %3 = vector.load %arg3[%c0_3, %c0_4] : memref<1x16xf32, #tpu.memory_space<vmem>>, vector<1x16xf32>
    %c0_5 = arith.constant 0 : index
    %c0_6 = arith.constant 0 : index
    %4 = vector.load %arg4[%c0_5, %c0_6] : memref<1x16xf32, #tpu.memory_space<vmem>>, vector<1x16xf32>
    %cst = arith.constant dense<0.000000e+00> : vector<64xf32>
    %5 = vector.multi_reduction <add>, %2, %cst [1] : vector<64x16xf32> to vector<64xf32>
    %6 = vector.shape_cast %5 : vector<64xf32> to vector<64x1xf32>
    %cst_7 = arith.constant 1.600000e+01 : f32
    %7 = vector.broadcast %cst_7 : f32 to vector<64x1xf32>
    %8 = arith.divf %6, %7 : vector<64x1xf32>
    %9 = vector.broadcast %8 : vector<64x1xf32> to vector<64x16xf32>
    %10 = arith.subf %2, %9 : vector<64x16xf32>
    %11 = vector.broadcast %8 : vector<64x1xf32> to vector<64x16xf32>
    %12 = arith.subf %2, %11 : vector<64x16xf32>
    %13 = arith.mulf %10, %12 : vector<64x16xf32>
    %cst_8 = arith.constant dense<0.000000e+00> : vector<64xf32>
    %14 = vector.multi_reduction <add>, %13, %cst_8 [1] : vector<64x16xf32> to vector<64xf32>
    %15 = vector.shape_cast %14 : vector<64xf32> to vector<64x1xf32>
    %cst_9 = arith.constant 1.600000e+01 : f32
    %16 = vector.broadcast %cst_9 : f32 to vector<64x1xf32>
    %17 = arith.divf %15, %16 : vector<64x1xf32>
    %18 = vector.broadcast %8 : vector<64x1xf32> to vector<64x16xf32>
    %19 = arith.subf %2, %18 : vector<64x16xf32>
    %cst_10 = arith.constant 9.99999974E-6 : f32
    %20 = vector.broadcast %cst_10 : f32 to vector<64x1xf32>
    %21 = arith.addf %17, %20 : vector<64x1xf32>
    %22 = math.rsqrt %21 : vector<64x1xf32>
    %23 = vector.broadcast %22 : vector<64x1xf32> to vector<64x16xf32>
    %24 = arith.mulf %19, %23 : vector<64x16xf32>
    %25 = vector.broadcast %3 : vector<1x16xf32> to vector<64x16xf32>
    %26 = arith.mulf %24, %25 : vector<64x16xf32>
    %27 = vector.broadcast %4 : vector<1x16xf32> to vector<64x16xf32>
    %28 = arith.addf %26, %27 : vector<64x16xf32>
    %c0_11 = arith.constant 0 : index
    %c0_12 = arith.constant 0 : index
    %29 = vector.load %arg5[%c0_11, %c0_12] : memref<16x48xf32, #tpu.memory_space<vmem>>, vector<16x48xf32>
    %cst_13 = arith.constant dense<0.000000e+00> : vector<64x48xf32>
    %30 = tpu.matmul %28, %29, %cst_13 {dimension_numbers = #tpu.dot_dimension_numbers<[1], [0], [0], [1], [0, 0, 1, 1], [], []>} : vector<64x16xf32>, vector<16x48xf32>, vector<64x48xf32> -> vector<64x48xf32>
    %c0_14 = arith.constant 0 : index
    %c0_15 = arith.constant 0 : index
    %31 = vector.load %arg6[%c0_14, %c0_15] : memref<1x48xf32, #tpu.memory_space<vmem>>, vector<1x48xf32>
    %32 = vector.broadcast %31 : vector<1x48xf32> to vector<64x48xf32>
    %33 = arith.addf %30, %32 : vector<64x48xf32>
    %34 = vector.shape_cast %33 : vector<64x48xf32> to vector<4x16x48xf32>
    %c0_16 = arith.constant 0 : index
    %c0_17 = arith.constant 0 : index
    %c0_18 = arith.constant 0 : index
    %35 = vector.load %arg8[%c0_16, %c0_17, %c0_18] : memref<4x16x16xf32, #tpu.memory_space<vmem>>, vector<4x16x16xf32>
    %36 = vector.extract_strided_slice %34 {offsets = [0, 0, 0], sizes = [4, 16, 8], strides = [1, 1, 1]} : vector<4x16x48xf32> to vector<4x16x8xf32>
    %cst_19 = arith.constant 0.353553385 : f32
    %37 = vector.broadcast %cst_19 : f32 to vector<4x16x8xf32>
    %38 = arith.mulf %36, %37 : vector<4x16x8xf32>
    %39 = vector.extract_strided_slice %34 {offsets = [0, 0, 16], sizes = [4, 16, 8], strides = [1, 1, 1]} : vector<4x16x48xf32> to vector<4x16x8xf32>
    %40 = vector.extract_strided_slice %34 {offsets = [0, 0, 32], sizes = [4, 16, 8], strides = [1, 1, 1]} : vector<4x16x48xf32> to vector<4x16x8xf32>
    "tpu.trace_start"() <{level = 10 : i32, message = "gnd,gmd->gnm"}> : () -> ()
    %cst_20 = arith.constant dense<0.000000e+00> : vector<4x16x16xf32>
    %41 = tpu.matmul %38, %39, %cst_20 {dimension_numbers = #tpu.dot_dimension_numbers<[2], [2], [1], [1], [0, 0, 0, 1, 1, 1], [0], [0]>} : vector<4x16x8xf32>, vector<4x16x8xf32>, vector<4x16x16xf32> -> vector<4x16x16xf32>
    "tpu.trace_stop"() : () -> ()
    %c0_21 = arith.constant 0 : index
    %c0_22 = arith.constant 0 : index
    %c0_23 = arith.constant 0 : index
    %42 = vector.load %arg7[%c0_21, %c0_22, %c0_23] : memref<2x16x16xf32, #tpu.memory_space<vmem>>, vector<1x16x16xf32>
    %43 = vector.shape_cast %42 : vector<1x16x16xf32> to vector<16x16xf32>
    %44 = vector.shape_cast %43 : vector<16x16xf32> to vector<1x16x16xf32>
    %45 = vector.broadcast %44 : vector<1x16x16xf32> to vector<4x16x16xf32>
    %46 = arith.addf %41, %45 : vector<4x16x16xf32>
    %47 = arith.addf %46, %35 : vector<4x16x16xf32>
    %cst_24 = arith.constant dense<0xFF800000> : vector<4x16xf32>
    %48 = vector.multi_reduction <maximumf>, %47, %cst_24 [2] : vector<4x16x16xf32> to vector<4x16xf32>
    %49 = vector.shape_cast %48 : vector<4x16xf32> to vector<4x16x1xf32>
    %50 = vector.broadcast %49 : vector<4x16x1xf32> to vector<4x16x16xf32>
    %51 = arith.subf %47, %50 : vector<4x16x16xf32>
    %52 = math.exp %51 : vector<4x16x16xf32>
    %cst_25 = arith.constant dense<0.000000e+00> : vector<4x16xf32>
    %53 = vector.multi_reduction <add>, %52, %cst_25 [2] : vector<4x16x16xf32> to vector<4x16xf32>
    %54 = vector.shape_cast %53 : vector<4x16xf32> to vector<4x16x1xf32>
    "tpu.trace_start"() <{level = 10 : i32, message = "gnm,gmd->gnd"}> : () -> ()
    %cst_26 = arith.constant dense<0.000000e+00> : vector<4x16x8xf32>
    %55 = tpu.matmul %52, %40, %cst_26 {dimension_numbers = #tpu.dot_dimension_numbers<[2], [1], [1], [2], [0, 0, 0, 1, 1, 2], [0], [0]>} : vector<4x16x16xf32>, vector<4x16x8xf32>, vector<4x16x8xf32> -> vector<4x16x8xf32>
    "tpu.trace_stop"() : () -> ()
    %56 = tpu.reciprocal %54 {approx = true} : vector<4x16x1xf32> -> vector<4x16x1xf32>
    %57 = vector.broadcast %56 : vector<4x16x1xf32> to vector<4x16x8xf32>
    %58 = arith.mulf %55, %57 : vector<4x16x8xf32>
    %59 = vector.extract_strided_slice %34 {offsets = [0, 0, 8], sizes = [4, 16, 8], strides = [1, 1, 1]} : vector<4x16x48xf32> to vector<4x16x8xf32>
    %cst_27 = arith.constant 0.353553385 : f32
    %60 = vector.broadcast %cst_27 : f32 to vector<4x16x8xf32>
    %61 = arith.mulf %59, %60 : vector<4x16x8xf32>
    %62 = vector.extract_strided_slice %34 {offsets = [0, 0, 24], sizes = [4, 16, 8], strides = [1, 1, 1]} : vector<4x16x48xf32> to vector<4x16x8xf32>
    %63 = vector.extract_strided_slice %34 {offsets = [0, 0, 40], sizes = [4, 16, 8], strides = [1, 1, 1]} : vector<4x16x48xf32> to vector<4x16x8xf32>
    "tpu.trace_start"() <{level = 10 : i32, message = "gnd,gmd->gnm"}> : () -> ()
    %cst_28 = arith.constant dense<0.000000e+00> : vector<4x16x16xf32>
    %64 = tpu.matmul %61, %62, %cst_28 {dimension_numbers = #tpu.dot_dimension_numbers<[2], [2], [1], [1], [0, 0, 0, 1, 1, 1], [0], [0]>} : vector<4x16x8xf32>, vector<4x16x8xf32>, vector<4x16x16xf32> -> vector<4x16x16xf32>
    "tpu.trace_stop"() : () -> ()
    %c1 = arith.constant 1 : index
    %c0_29 = arith.constant 0 : index
    %c0_30 = arith.constant 0 : index
    %65 = vector.load %arg7[%c1, %c0_29, %c0_30] : memref<2x16x16xf32, #tpu.memory_space<vmem>>, vector<1x16x16xf32>
    %66 = vector.shape_cast %65 : vector<1x16x16xf32> to vector<16x16xf32>
    %67 = vector.shape_cast %66 : vector<16x16xf32> to vector<1x16x16xf32>
    %68 = vector.broadcast %67 : vector<1x16x16xf32> to vector<4x16x16xf32>
    %69 = arith.addf %64, %68 : vector<4x16x16xf32>
    %70 = arith.addf %69, %35 : vector<4x16x16xf32>
    %cst_31 = arith.constant dense<0xFF800000> : vector<4x16xf32>
    %71 = vector.multi_reduction <maximumf>, %70, %cst_31 [2] : vector<4x16x16xf32> to vector<4x16xf32>
    %72 = vector.shape_cast %71 : vector<4x16xf32> to vector<4x16x1xf32>
    %73 = vector.broadcast %72 : vector<4x16x1xf32> to vector<4x16x16xf32>
    %74 = arith.subf %70, %73 : vector<4x16x16xf32>
    %75 = math.exp %74 : vector<4x16x16xf32>
    %cst_32 = arith.constant dense<0.000000e+00> : vector<4x16xf32>
    %76 = vector.multi_reduction <add>, %75, %cst_32 [2] : vector<4x16x16xf32> to vector<4x16xf32>
    %77 = vector.shape_cast %76 : vector<4x16xf32> to vector<4x16x1xf32>
    "tpu.trace_start"() <{level = 10 : i32, message = "gnm,gmd->gnd"}> : () -> ()
    %cst_33 = arith.constant dense<0.000000e+00> : vector<4x16x8xf32>
    %78 = tpu.matmul %75, %63, %cst_33 {dimension_numbers = #tpu.dot_dimension_numbers<[2], [1], [1], [2], [0, 0, 0, 1, 1, 2], [0], [0]>} : vector<4x16x16xf32>, vector<4x16x8xf32>, vector<4x16x8xf32> -> vector<4x16x8xf32>
    "tpu.trace_stop"() : () -> ()
    %79 = tpu.reciprocal %77 {approx = true} : vector<4x16x1xf32> -> vector<4x16x1xf32>
    %80 = vector.broadcast %79 : vector<4x16x1xf32> to vector<4x16x8xf32>
    %81 = arith.mulf %78, %80 : vector<4x16x8xf32>
    %82 = tpu.concatenate %58, %81 in 2 : vector<4x16x8xf32>, vector<4x16x8xf32> -> vector<4x16x16xf32>
    %83 = vector.shape_cast %82 : vector<4x16x16xf32> to vector<64x16xf32>
    %c0_34 = arith.constant 0 : index
    %c0_35 = arith.constant 0 : index
    %84 = vector.load %arg9[%c0_34, %c0_35] : memref<16x16xf32, #tpu.memory_space<vmem>>, vector<16x16xf32>
    %cst_36 = arith.constant dense<0.000000e+00> : vector<64x16xf32>
    %85 = tpu.matmul %83, %84, %cst_36 {dimension_numbers = #tpu.dot_dimension_numbers<[1], [0], [0], [1], [0, 0, 1, 1], [], []>} : vector<64x16xf32>, vector<16x16xf32>, vector<64x16xf32> -> vector<64x16xf32>
    %c0_37 = arith.constant 0 : index
    %c0_38 = arith.constant 0 : index
    %86 = vector.load %arg10[%c0_37, %c0_38] : memref<1x16xf32, #tpu.memory_space<vmem>>, vector<1x16xf32>
    %87 = vector.broadcast %86 : vector<1x16xf32> to vector<64x16xf32>
    %88 = arith.addf %85, %87 : vector<64x16xf32>
    %89 = vector.shape_cast %88 : vector<64x16xf32> to vector<1x4x16x16xf32>
    %c0_39 = arith.constant 0 : index
    %c0_40 = arith.constant 0 : index
    %c0_41 = arith.constant 0 : index
    %c0_42 = arith.constant 0 : index
    %90 = vector.load %arg11[%c0_39, %c0_40, %c0_41, %c0_42] : memref<1x4x16x16xf32, #tpu.memory_space<vmem>>, vector<1x4x16x16xf32>
    tpu.vector_store %arg11[%c0_39, %c0_40, %c0_41, %c0_42], %89 {strides = array<i32>} : memref<1x4x16x16xf32, #tpu.memory_space<vmem>>, vector<1x4x16x16xf32>,
    return
  }
  func.func @transform_0(%arg0: i32, %arg1: i32) -> (i32, i32, i32, i32) {
    %c0_i32 = arith.constant 0 : i32
    %c0_i32_0 = arith.constant 0 : i32
    %c0_i32_1 = arith.constant 0 : i32
    return %arg0, %arg1, %c0_i32, %c0_i32_0 : i32, i32, i32, i32
  }
  func.func @transform_1(%arg0: i32, %arg1: i32) -> (i32, i32) {
    %c0_i32 = arith.constant 0 : i32
    %c0_i32_0 = arith.constant 0 : i32
    %c0_i32_1 = arith.constant 0 : i32
    return %c0_i32, %c0_i32_0 : i32, i32
  }
  func.func @transform_2(%arg0: i32, %arg1: i32) -> (i32, i32) {
    %c0_i32 = arith.constant 0 : i32
    %c0_i32_0 = arith.constant 0 : i32
    %c0_i32_1 = arith.constant 0 : i32
    return %c0_i32, %c0_i32_0 : i32, i32
  }
  func.func @transform_3(%arg0: i32, %arg1: i32) -> (i32, i32) {
    %c0_i32 = arith.constant 0 : i32
    %c0_i32_0 = arith.constant 0 : i32
    %c0_i32_1 = arith.constant 0 : i32
    return %c0_i32, %c0_i32_0 : i32, i32
  }
  func.func @transform_4(%arg0: i32, %arg1: i32) -> (i32, i32) {
    %c0_i32 = arith.constant 0 : i32
    %c0_i32_0 = arith.constant 0 : i32
    %c0_i32_1 = arith.constant 0 : i32
    return %c0_i32, %c0_i32_0 : i32, i32
  }
  func.func @transform_5(%arg0: i32, %arg1: i32) -> (i32, i32, i32) {
    %c0_i32 = arith.constant 0 : i32
    %c0_i32_0 = arith.constant 0 : i32
    %c0_i32_1 = arith.constant 0 : i32
    %c0_i32_2 = arith.constant 0 : i32
    return %c0_i32, %c0_i32_0, %c0_i32_1 : i32, i32, i32
  }
  func.func @transform_6(%arg0: i32, %arg1: i32) -> (i32, i32, i32) {
    %c0_i32 = arith.constant 0 : i32
    %c0_i32_0 = arith.constant 0 : i32
    %c0_i32_1 = arith.constant 0 : i32
    return %arg1, %c0_i32, %c0_i32_0 : i32, i32, i32
  }
  func.func @transform_7(%arg0: i32, %arg1: i32) -> (i32, i32) {
    %c0_i32 = arith.constant 0 : i32
    %c0_i32_0 = arith.constant 0 : i32
    %c0_i32_1 = arith.constant 0 : i32
    return %c0_i32, %c0_i32_0 : i32, i32
  }
  func.func @transform_8(%arg0: i32, %arg1: i32) -> (i32, i32) {
    %c0_i32 = arith.constant 0 : i32
    %c0_i32_0 = arith.constant 0 : i32
    %c0_i32_1 = arith.constant 0 : i32
    return %c0_i32, %c0_i32_0 : i32, i32
  }
  func.func @transform_9(%arg0: i32, %arg1: i32) -> (i32, i32, i32, i32) {
    %c0_i32 = arith.constant 0 : i32
    %c0_i32_0 = arith.constant 0 : i32
    %c0_i32_1 = arith.constant 0 : i32
    return %arg0, %arg1, %c0_i32, %c0_i32_0 : i32, i32, i32, i32
  }
}

module attributes {stable_mosaic.version = 11 : i64} {
  func.func @_ln_mlp_kernel(%arg0: i32, %arg1: memref<128x16xf32, #tpu.memory_space<vmem>>, %arg2: memref<1x16xf32, #tpu.memory_space<vmem>>, %arg3: memref<1x16xf32, #tpu.memory_space<vmem>>, %arg4: memref<16x64xf32, #tpu.memory_space<vmem>>, %arg5: memref<1x64xf32, #tpu.memory_space<vmem>>, %arg6: memref<64x16xf32, #tpu.memory_space<vmem>>, %arg7: memref<1x16xf32, #tpu.memory_space<vmem>>, %arg8: memref<128x16xf32, #tpu.memory_space<vmem>>) attributes {dimension_semantics = [#tpu.dimension_semantics<parallel>], iteration_bounds = array<i64: 1>, scalar_prefetch = 0 : i64, scratch_operands = 0 : i64, tpu.core_type = #tpu.core_type<tc>, window_params = [{transform_indices = @transform_0, window_bounds = array<i64: 128, 16>}, {pipeline_mode = #tpu.pipeline_mode<synchronous>, transform_indices = @transform_1, window_bounds = array<i64: 1, 16>}, {pipeline_mode = #tpu.pipeline_mode<synchronous>, transform_indices = @transform_2, window_bounds = array<i64: 1, 16>}, {pipeline_mode = #tpu.pipeline_mode<synchronous>, transform_indices = @transform_3, window_bounds = array<i64: 16, 64>}, {pipeline_mode = #tpu.pipeline_mode<synchronous>, transform_indices = @transform_4, window_bounds = array<i64: 1, 64>}, {pipeline_mode = #tpu.pipeline_mode<synchronous>, transform_indices = @transform_5, window_bounds = array<i64: 64, 16>}, {pipeline_mode = #tpu.pipeline_mode<synchronous>, transform_indices = @transform_6, window_bounds = array<i64: 1, 16>}, {transform_indices = @transform_7, window_bounds = array<i64: 128, 16>}]} {
    %c0 = arith.constant 0 : index
    %c0_0 = arith.constant 0 : index
    %0 = vector.load %arg1[%c0, %c0_0] : memref<128x16xf32, #tpu.memory_space<vmem>>, vector<128x16xf32>
    %c0_1 = arith.constant 0 : index
    %c0_2 = arith.constant 0 : index
    %1 = vector.load %arg2[%c0_1, %c0_2] : memref<1x16xf32, #tpu.memory_space<vmem>>, vector<1x16xf32>
    %c0_3 = arith.constant 0 : index
    %c0_4 = arith.constant 0 : index
    %2 = vector.load %arg3[%c0_3, %c0_4] : memref<1x16xf32, #tpu.memory_space<vmem>>, vector<1x16xf32>
    %cst = arith.constant dense<0.000000e+00> : vector<128xf32>
    %3 = vector.multi_reduction <add>, %0, %cst [1] : vector<128x16xf32> to vector<128xf32>
    %4 = vector.shape_cast %3 : vector<128xf32> to vector<128x1xf32>
    %cst_5 = arith.constant 1.600000e+01 : f32
    %5 = vector.broadcast %cst_5 : f32 to vector<128x1xf32>
    %6 = arith.divf %4, %5 : vector<128x1xf32>
    %7 = vector.broadcast %6 : vector<128x1xf32> to vector<128x16xf32>
    %8 = arith.subf %0, %7 : vector<128x16xf32>
    %9 = vector.broadcast %6 : vector<128x1xf32> to vector<128x16xf32>
    %10 = arith.subf %0, %9 : vector<128x16xf32>
    %11 = arith.mulf %8, %10 : vector<128x16xf32>
    %cst_6 = arith.constant dense<0.000000e+00> : vector<128xf32>
    %12 = vector.multi_reduction <add>, %11, %cst_6 [1] : vector<128x16xf32> to vector<128xf32>
    %13 = vector.shape_cast %12 : vector<128xf32> to vector<128x1xf32>
    %cst_7 = arith.constant 1.600000e+01 : f32
    %14 = vector.broadcast %cst_7 : f32 to vector<128x1xf32>
    %15 = arith.divf %13, %14 : vector<128x1xf32>
    %16 = vector.broadcast %6 : vector<128x1xf32> to vector<128x16xf32>
    %17 = arith.subf %0, %16 : vector<128x16xf32>
    %cst_8 = arith.constant 9.99999974E-6 : f32
    %18 = vector.broadcast %cst_8 : f32 to vector<128x1xf32>
    %19 = arith.addf %15, %18 : vector<128x1xf32>
    %20 = math.rsqrt %19 : vector<128x1xf32>
    %21 = vector.broadcast %20 : vector<128x1xf32> to vector<128x16xf32>
    %22 = arith.mulf %17, %21 : vector<128x16xf32>
    %23 = vector.broadcast %1 : vector<1x16xf32> to vector<128x16xf32>
    %24 = arith.mulf %22, %23 : vector<128x16xf32>
    %25 = vector.broadcast %2 : vector<1x16xf32> to vector<128x16xf32>
    %26 = arith.addf %24, %25 : vector<128x16xf32>
    %c0_9 = arith.constant 0 : index
    %c0_10 = arith.constant 0 : index
    %27 = vector.load %arg4[%c0_9, %c0_10] : memref<16x64xf32, #tpu.memory_space<vmem>>, vector<16x64xf32>
    %cst_11 = arith.constant dense<0.000000e+00> : vector<128x64xf32>
    %28 = tpu.matmul %26, %27, %cst_11 {dimension_numbers = #tpu.dot_dimension_numbers<[1], [0], [0], [1], [0, 0, 1, 1], [], []>} : vector<128x16xf32>, vector<16x64xf32>, vector<128x64xf32> -> vector<128x64xf32>
    %c0_12 = arith.constant 0 : index
    %c0_13 = arith.constant 0 : index
    %29 = vector.load %arg5[%c0_12, %c0_13] : memref<1x64xf32, #tpu.memory_space<vmem>>, vector<1x64xf32>
    %30 = vector.broadcast %29 : vector<1x64xf32> to vector<128x64xf32>
    %31 = arith.addf %28, %30 : vector<128x64xf32>
    %cst_14 = arith.constant 5.000000e-01 : f32
    %32 = vector.broadcast %cst_14 : f32 to vector<128x64xf32>
    %33 = arith.mulf %32, %31 : vector<128x64xf32>
    %cst_15 = arith.constant 0.707106769 : f32
    %34 = vector.broadcast %cst_15 : f32 to vector<128x64xf32>
    %35 = arith.mulf %31, %34 : vector<128x64xf32>
    %cst_16 = arith.constant 0.000000e+00 : f32
    %36 = vector.broadcast %cst_16 : f32 to vector<128x64xf32>
    %37 = arith.cmpf olt, %35, %36 : vector<128x64xf32>
    %cst_17 = arith.constant -1.000000e+00 : f32
    %cst_18 = arith.constant 1.000000e+00 : f32
    %38 = vector.broadcast %cst_17 : f32 to vector<128x64xf32>
    %39 = vector.broadcast %cst_18 : f32 to vector<128x64xf32>
    %40 = arith.select %37, %38, %39 : vector<128x64xi1>, vector<128x64xf32>
    %41 = math.absf %35 : vector<128x64xf32>
    %cst_19 = arith.constant 0.327591091 : f32
    %42 = vector.broadcast %cst_19 : f32 to vector<128x64xf32>
    %43 = arith.mulf %42, %41 : vector<128x64xf32>
    %cst_20 = arith.constant 1.000000e+00 : f32
    %44 = vector.broadcast %cst_20 : f32 to vector<128x64xf32>
    %45 = arith.addf %44, %43 : vector<128x64xf32>
    %cst_21 = arith.constant 1.000000e+00 : f32
    %46 = vector.broadcast %cst_21 : f32 to vector<128x64xf32>
    %47 = arith.divf %46, %45 : vector<128x64xf32>
    %cst_22 = arith.constant 1.06140542 : f32
    %48 = vector.broadcast %cst_22 : f32 to vector<128x64xf32>
    %49 = arith.mulf %48, %47 : vector<128x64xf32>
    %cst_23 = arith.constant -1.45315206 : f32
    %50 = vector.broadcast %cst_23 : f32 to vector<128x64xf32>
    %51 = arith.addf %49, %50 : vector<128x64xf32>
    %52 = arith.mulf %51, %47 : vector<128x64xf32>
    %cst_24 = arith.constant 1.42141378 : f32
    %53 = vector.broadcast %cst_24 : f32 to vector<128x64xf32>
    %54 = arith.addf %52, %53 : vector<128x64xf32>
    %55 = arith.mulf %54, %47 : vector<128x64xf32>
    %cst_25 = arith.constant -0.284496725 : f32
    %56 = vector.broadcast %cst_25 : f32 to vector<128x64xf32>
    %57 = arith.addf %55, %56 : vector<128x64xf32>
    %58 = arith.mulf %57, %47 : vector<128x64xf32>
    %cst_26 = arith.constant 0.254829586 : f32
    %59 = vector.broadcast %cst_26 : f32 to vector<128x64xf32>
    %60 = arith.addf %58, %59 : vector<128x64xf32>
    %61 = arith.mulf %60, %47 : vector<128x64xf32>
    %cst_27 = arith.constant 0.000000e+00 : f32
    %62 = vector.broadcast %cst_27 : f32 to vector<128x64xf32>
    %63 = arith.subf %62, %41 : vector<128x64xf32>
    %64 = arith.mulf %63, %41 : vector<128x64xf32>
    %65 = math.exp %64 : vector<128x64xf32>
    %66 = arith.mulf %61, %65 : vector<128x64xf32>
    %cst_28 = arith.constant 1.000000e+00 : f32
    %67 = vector.broadcast %cst_28 : f32 to vector<128x64xf32>
    %68 = arith.subf %67, %66 : vector<128x64xf32>
    %69 = arith.mulf %40, %68 : vector<128x64xf32>
    %cst_29 = arith.constant 1.000000e+00 : f32
    %70 = vector.broadcast %cst_29 : f32 to vector<128x64xf32>
    %71 = arith.addf %70, %69 : vector<128x64xf32>
    %72 = arith.mulf %33, %71 : vector<128x64xf32>
    %c0_30 = arith.constant 0 : index
    %c0_31 = arith.constant 0 : index
    %73 = vector.load %arg6[%c0_30, %c0_31] : memref<64x16xf32, #tpu.memory_space<vmem>>, vector<64x16xf32>
    %cst_32 = arith.constant dense<0.000000e+00> : vector<128x16xf32>
    %74 = tpu.matmul %72, %73, %cst_32 {dimension_numbers = #tpu.dot_dimension_numbers<[1], [0], [0], [1], [0, 0, 1, 1], [], []>} : vector<128x64xf32>, vector<64x16xf32>, vector<128x16xf32> -> vector<128x16xf32>
    %c0_33 = arith.constant 0 : index
    %c0_34 = arith.constant 0 : index
    %75 = vector.load %arg7[%c0_33, %c0_34] : memref<1x16xf32, #tpu.memory_space<vmem>>, vector<1x16xf32>
    %76 = vector.broadcast %75 : vector<1x16xf32> to vector<128x16xf32>
    %77 = arith.addf %74, %76 : vector<128x16xf32>
    %78 = arith.addf %0, %77 : vector<128x16xf32>
    %c0_35 = arith.constant 0 : index
    %c0_36 = arith.constant 0 : index
    %79 = vector.load %arg8[%c0_35, %c0_36] : memref<128x16xf32, #tpu.memory_space<vmem>>, vector<128x16xf32>
    tpu.vector_store %arg8[%c0_35, %c0_36], %78 {strides = array<i32>} : memref<128x16xf32, #tpu.memory_space<vmem>>, vector<128x16xf32>,
    return
  }
  func.func @transform_0(%arg0: i32) -> (i32, i32) {
    %c0_i32 = arith.constant 0 : i32
    %c0_i32_0 = arith.constant 0 : i32
    return %arg0, %c0_i32 : i32, i32
  }
  func.func @transform_1(%arg0: i32) -> (i32, i32) {
    %c0_i32 = arith.constant 0 : i32
    %c0_i32_0 = arith.constant 0 : i32
    %c0_i32_1 = arith.constant 0 : i32
    return %c0_i32, %c0_i32_0 : i32, i32
  }
  func.func @transform_2(%arg0: i32) -> (i32, i32) {
    %c0_i32 = arith.constant 0 : i32
    %c0_i32_0 = arith.constant 0 : i32
    %c0_i32_1 = arith.constant 0 : i32
    return %c0_i32, %c0_i32_0 : i32, i32
  }
  func.func @transform_3(%arg0: i32) -> (i32, i32) {
    %c0_i32 = arith.constant 0 : i32
    %c0_i32_0 = arith.constant 0 : i32
    %c0_i32_1 = arith.constant 0 : i32
    return %c0_i32, %c0_i32_0 : i32, i32
  }
  func.func @transform_4(%arg0: i32) -> (i32, i32) {
    %c0_i32 = arith.constant 0 : i32
    %c0_i32_0 = arith.constant 0 : i32
    %c0_i32_1 = arith.constant 0 : i32
    return %c0_i32, %c0_i32_0 : i32, i32
  }
  func.func @transform_5(%arg0: i32) -> (i32, i32) {
    %c0_i32 = arith.constant 0 : i32
    %c0_i32_0 = arith.constant 0 : i32
    %c0_i32_1 = arith.constant 0 : i32
    return %c0_i32, %c0_i32_0 : i32, i32
  }
  func.func @transform_6(%arg0: i32) -> (i32, i32) {
    %c0_i32 = arith.constant 0 : i32
    %c0_i32_0 = arith.constant 0 : i32
    %c0_i32_1 = arith.constant 0 : i32
    return %c0_i32, %c0_i32_0 : i32, i32
  }
  func.func @transform_7(%arg0: i32) -> (i32, i32) {
    %c0_i32 = arith.constant 0 : i32
    %c0_i32_0 = arith.constant 0 : i32
    return %arg0, %c0_i32 : i32, i32
  }
}

module attributes {stable_mosaic.version = 11 : i64} {
  func.func @_ln_linear_kernel(%arg0: i32, %arg1: memref<32x64xf32, #tpu.memory_space<vmem>>, %arg2: memref<1x64xf32, #tpu.memory_space<vmem>>, %arg3: memref<1x64xf32, #tpu.memory_space<vmem>>, %arg4: memref<64x32xf32, #tpu.memory_space<vmem>>, %arg5: memref<1x32xf32, #tpu.memory_space<vmem>>, %arg6: memref<32x32xf32, #tpu.memory_space<vmem>>) attributes {dimension_semantics = [#tpu.dimension_semantics<parallel>], iteration_bounds = array<i64: 1>, scalar_prefetch = 0 : i64, scratch_operands = 0 : i64, tpu.core_type = #tpu.core_type<tc>, window_params = [{transform_indices = @transform_0, window_bounds = array<i64: 32, 64>}, {pipeline_mode = #tpu.pipeline_mode<synchronous>, transform_indices = @transform_1, window_bounds = array<i64: 1, 64>}, {pipeline_mode = #tpu.pipeline_mode<synchronous>, transform_indices = @transform_2, window_bounds = array<i64: 1, 64>}, {pipeline_mode = #tpu.pipeline_mode<synchronous>, transform_indices = @transform_3, window_bounds = array<i64: 64, 32>}, {pipeline_mode = #tpu.pipeline_mode<synchronous>, transform_indices = @transform_4, window_bounds = array<i64: 1, 32>}, {transform_indices = @transform_5, window_bounds = array<i64: 32, 32>}]} {
    %c0 = arith.constant 0 : index
    %c0_0 = arith.constant 0 : index
    %0 = vector.load %arg1[%c0, %c0_0] : memref<32x64xf32, #tpu.memory_space<vmem>>, vector<32x64xf32>
    %c0_1 = arith.constant 0 : index
    %c0_2 = arith.constant 0 : index
    %1 = vector.load %arg2[%c0_1, %c0_2] : memref<1x64xf32, #tpu.memory_space<vmem>>, vector<1x64xf32>
    %c0_3 = arith.constant 0 : index
    %c0_4 = arith.constant 0 : index
    %2 = vector.load %arg3[%c0_3, %c0_4] : memref<1x64xf32, #tpu.memory_space<vmem>>, vector<1x64xf32>
    %cst = arith.constant dense<0.000000e+00> : vector<32xf32>
    %3 = vector.multi_reduction <add>, %0, %cst [1] : vector<32x64xf32> to vector<32xf32>
    %4 = vector.shape_cast %3 : vector<32xf32> to vector<32x1xf32>
    %cst_5 = arith.constant 6.400000e+01 : f32
    %5 = vector.broadcast %cst_5 : f32 to vector<32x1xf32>
    %6 = arith.divf %4, %5 : vector<32x1xf32>
    %7 = vector.broadcast %6 : vector<32x1xf32> to vector<32x64xf32>
    %8 = arith.subf %0, %7 : vector<32x64xf32>
    %9 = vector.broadcast %6 : vector<32x1xf32> to vector<32x64xf32>
    %10 = arith.subf %0, %9 : vector<32x64xf32>
    %11 = arith.mulf %8, %10 : vector<32x64xf32>
    %cst_6 = arith.constant dense<0.000000e+00> : vector<32xf32>
    %12 = vector.multi_reduction <add>, %11, %cst_6 [1] : vector<32x64xf32> to vector<32xf32>
    %13 = vector.shape_cast %12 : vector<32xf32> to vector<32x1xf32>
    %cst_7 = arith.constant 6.400000e+01 : f32
    %14 = vector.broadcast %cst_7 : f32 to vector<32x1xf32>
    %15 = arith.divf %13, %14 : vector<32x1xf32>
    %16 = vector.broadcast %6 : vector<32x1xf32> to vector<32x64xf32>
    %17 = arith.subf %0, %16 : vector<32x64xf32>
    %cst_8 = arith.constant 9.99999974E-6 : f32
    %18 = vector.broadcast %cst_8 : f32 to vector<32x1xf32>
    %19 = arith.addf %15, %18 : vector<32x1xf32>
    %20 = math.rsqrt %19 : vector<32x1xf32>
    %21 = vector.broadcast %20 : vector<32x1xf32> to vector<32x64xf32>
    %22 = arith.mulf %17, %21 : vector<32x64xf32>
    %23 = vector.broadcast %1 : vector<1x64xf32> to vector<32x64xf32>
    %24 = arith.mulf %22, %23 : vector<32x64xf32>
    %25 = vector.broadcast %2 : vector<1x64xf32> to vector<32x64xf32>
    %26 = arith.addf %24, %25 : vector<32x64xf32>
    %c0_9 = arith.constant 0 : index
    %c0_10 = arith.constant 0 : index
    %27 = vector.load %arg4[%c0_9, %c0_10] : memref<64x32xf32, #tpu.memory_space<vmem>>, vector<64x32xf32>
    %cst_11 = arith.constant dense<0.000000e+00> : vector<32x32xf32>
    %28 = tpu.matmul %26, %27, %cst_11 {dimension_numbers = #tpu.dot_dimension_numbers<[1], [0], [0], [1], [0, 0, 1, 1], [], []>} : vector<32x64xf32>, vector<64x32xf32>, vector<32x32xf32> -> vector<32x32xf32>
    %c0_12 = arith.constant 0 : index
    %c0_13 = arith.constant 0 : index
    %29 = vector.load %arg5[%c0_12, %c0_13] : memref<1x32xf32, #tpu.memory_space<vmem>>, vector<1x32xf32>
    %30 = vector.broadcast %29 : vector<1x32xf32> to vector<32x32xf32>
    %31 = arith.addf %28, %30 : vector<32x32xf32>
    %c0_14 = arith.constant 0 : index
    %c0_15 = arith.constant 0 : index
    %32 = vector.load %arg6[%c0_14, %c0_15] : memref<32x32xf32, #tpu.memory_space<vmem>>, vector<32x32xf32>
    tpu.vector_store %arg6[%c0_14, %c0_15], %31 {strides = array<i32>} : memref<32x32xf32, #tpu.memory_space<vmem>>, vector<32x32xf32>,
    return
  }
  func.func @transform_0(%arg0: i32) -> (i32, i32) {
    %c0_i32 = arith.constant 0 : i32
    %c0_i32_0 = arith.constant 0 : i32
    return %arg0, %c0_i32 : i32, i32
  }
  func.func @transform_1(%arg0: i32) -> (i32, i32) {
    %c0_i32 = arith.constant 0 : i32
    %c0_i32_0 = arith.constant 0 : i32
    %c0_i32_1 = arith.constant 0 : i32
    return %c0_i32, %c0_i32_0 : i32, i32
  }
  func.func @transform_2(%arg0: i32) -> (i32, i32) {
    %c0_i32 = arith.constant 0 : i32
    %c0_i32_0 = arith.constant 0 : i32
    %c0_i32_1 = arith.constant 0 : i32
    return %c0_i32, %c0_i32_0 : i32, i32
  }
  func.func @transform_3(%arg0: i32) -> (i32, i32) {
    %c0_i32 = arith.constant 0 : i32
    %c0_i32_0 = arith.constant 0 : i32
    %c0_i32_1 = arith.constant 0 : i32
    return %c0_i32, %c0_i32_0 : i32, i32
  }
  func.func @transform_4(%arg0: i32) -> (i32, i32) {
    %c0_i32 = arith.constant 0 : i32
    %c0_i32_0 = arith.constant 0 : i32
    %c0_i32_1 = arith.constant 0 : i32
    return %c0_i32, %c0_i32_0 : i32, i32
  }
  func.func @transform_5(%arg0: i32) -> (i32, i32) {
    %c0_i32 = arith.constant 0 : i32
    %c0_i32_0 = arith.constant 0 : i32
    return %arg0, %c0_i32 : i32, i32
  }
}

module attributes {stable_mosaic.version = 11 : i64} {
  func.func @_window_attn_kernel(%arg0: i32, %arg1: i32, %arg2: memref<1x1x16x32xf32, #tpu.memory_space<vmem>>, %arg3: memref<1x32xf32, #tpu.memory_space<vmem>>, %arg4: memref<1x32xf32, #tpu.memory_space<vmem>>, %arg5: memref<32x96xf32, #tpu.memory_space<vmem>>, %arg6: memref<1x96xf32, #tpu.memory_space<vmem>>, %arg7: memref<4x16x16xf32, #tpu.memory_space<vmem>>, %arg8: memref<1x16x16xf32, #tpu.memory_space<vmem>>, %arg9: memref<32x32xf32, #tpu.memory_space<vmem>>, %arg10: memref<1x32xf32, #tpu.memory_space<vmem>>, %arg11: memref<1x1x16x32xf32, #tpu.memory_space<vmem>>) attributes {dimension_semantics = [#tpu.dimension_semantics<parallel>, #tpu.dimension_semantics<parallel>], iteration_bounds = array<i64: 2, 1>, scalar_prefetch = 0 : i64, scratch_operands = 0 : i64, tpu.core_type = #tpu.core_type<tc>, window_params = [{transform_indices = @transform_0, window_bounds = array<i64: 1, 1, 16, 32>}, {pipeline_mode = #tpu.pipeline_mode<synchronous>, transform_indices = @transform_1, window_bounds = array<i64: 1, 32>}, {pipeline_mode = #tpu.pipeline_mode<synchronous>, transform_indices = @transform_2, window_bounds = array<i64: 1, 32>}, {pipeline_mode = #tpu.pipeline_mode<synchronous>, transform_indices = @transform_3, window_bounds = array<i64: 32, 96>}, {pipeline_mode = #tpu.pipeline_mode<synchronous>, transform_indices = @transform_4, window_bounds = array<i64: 1, 96>}, {pipeline_mode = #tpu.pipeline_mode<synchronous>, transform_indices = @transform_5, window_bounds = array<i64: 4, 16, 16>}, {transform_indices = @transform_6, window_bounds = array<i64: 1, 16, 16>}, {pipeline_mode = #tpu.pipeline_mode<synchronous>, transform_indices = @transform_7, window_bounds = array<i64: 32, 32>}, {pipeline_mode = #tpu.pipeline_mode<synchronous>, transform_indices = @transform_8, window_bounds = array<i64: 1, 32>}, {transform_indices = @transform_9, window_bounds = array<i64: 1, 1, 16, 32>}]} {
    %c0 = arith.constant 0 : index
    %c0_0 = arith.constant 0 : index
    %c0_1 = arith.constant 0 : index
    %c0_2 = arith.constant 0 : index
    %0 = vector.load %arg2[%c0, %c0_0, %c0_1, %c0_2] : memref<1x1x16x32xf32, #tpu.memory_space<vmem>>, vector<1x1x16x32xf32>
    %1 = vector.shape_cast %0 : vector<1x1x16x32xf32> to vector<1x16x32xf32>
    %2 = vector.shape_cast %1 : vector<1x16x32xf32> to vector<16x32xf32>
    %c0_3 = arith.constant 0 : index
    %c0_4 = arith.constant 0 : index
    %3 = vector.load %arg3[%c0_3, %c0_4] : memref<1x32xf32, #tpu.memory_space<vmem>>, vector<1x32xf32>
    %c0_5 = arith.constant 0 : index
    %c0_6 = arith.constant 0 : index
    %4 = vector.load %arg4[%c0_5, %c0_6] : memref<1x32xf32, #tpu.memory_space<vmem>>, vector<1x32xf32>
    %cst = arith.constant dense<0.000000e+00> : vector<16xf32>
    %5 = vector.multi_reduction <add>, %2, %cst [1] : vector<16x32xf32> to vector<16xf32>
    %6 = vector.shape_cast %5 : vector<16xf32> to vector<16x1xf32>
    %cst_7 = arith.constant 3.200000e+01 : f32
    %7 = vector.broadcast %cst_7 : f32 to vector<16x1xf32>
    %8 = arith.divf %6, %7 : vector<16x1xf32>
    %9 = vector.broadcast %8 : vector<16x1xf32> to vector<16x32xf32>
    %10 = arith.subf %2, %9 : vector<16x32xf32>
    %11 = vector.broadcast %8 : vector<16x1xf32> to vector<16x32xf32>
    %12 = arith.subf %2, %11 : vector<16x32xf32>
    %13 = arith.mulf %10, %12 : vector<16x32xf32>
    %cst_8 = arith.constant dense<0.000000e+00> : vector<16xf32>
    %14 = vector.multi_reduction <add>, %13, %cst_8 [1] : vector<16x32xf32> to vector<16xf32>
    %15 = vector.shape_cast %14 : vector<16xf32> to vector<16x1xf32>
    %cst_9 = arith.constant 3.200000e+01 : f32
    %16 = vector.broadcast %cst_9 : f32 to vector<16x1xf32>
    %17 = arith.divf %15, %16 : vector<16x1xf32>
    %18 = vector.broadcast %8 : vector<16x1xf32> to vector<16x32xf32>
    %19 = arith.subf %2, %18 : vector<16x32xf32>
    %cst_10 = arith.constant 9.99999974E-6 : f32
    %20 = vector.broadcast %cst_10 : f32 to vector<16x1xf32>
    %21 = arith.addf %17, %20 : vector<16x1xf32>
    %22 = math.rsqrt %21 : vector<16x1xf32>
    %23 = vector.broadcast %22 : vector<16x1xf32> to vector<16x32xf32>
    %24 = arith.mulf %19, %23 : vector<16x32xf32>
    %25 = vector.broadcast %3 : vector<1x32xf32> to vector<16x32xf32>
    %26 = arith.mulf %24, %25 : vector<16x32xf32>
    %27 = vector.broadcast %4 : vector<1x32xf32> to vector<16x32xf32>
    %28 = arith.addf %26, %27 : vector<16x32xf32>
    %c0_11 = arith.constant 0 : index
    %c0_12 = arith.constant 0 : index
    %29 = vector.load %arg5[%c0_11, %c0_12] : memref<32x96xf32, #tpu.memory_space<vmem>>, vector<32x96xf32>
    %cst_13 = arith.constant dense<0.000000e+00> : vector<16x96xf32>
    %30 = tpu.matmul %28, %29, %cst_13 {dimension_numbers = #tpu.dot_dimension_numbers<[1], [0], [0], [1], [0, 0, 1, 1], [], []>} : vector<16x32xf32>, vector<32x96xf32>, vector<16x96xf32> -> vector<16x96xf32>
    %c0_14 = arith.constant 0 : index
    %c0_15 = arith.constant 0 : index
    %31 = vector.load %arg6[%c0_14, %c0_15] : memref<1x96xf32, #tpu.memory_space<vmem>>, vector<1x96xf32>
    %32 = vector.broadcast %31 : vector<1x96xf32> to vector<16x96xf32>
    %33 = arith.addf %30, %32 : vector<16x96xf32>
    %34 = vector.shape_cast %33 : vector<16x96xf32> to vector<1x16x96xf32>
    %c0_16 = arith.constant 0 : index
    %c0_17 = arith.constant 0 : index
    %c0_18 = arith.constant 0 : index
    %35 = vector.load %arg8[%c0_16, %c0_17, %c0_18] : memref<1x16x16xf32, #tpu.memory_space<vmem>>, vector<1x16x16xf32>
    %36 = vector.extract_strided_slice %34 {offsets = [0, 0, 0], sizes = [1, 16, 8], strides = [1, 1, 1]} : vector<1x16x96xf32> to vector<1x16x8xf32>
    %cst_19 = arith.constant 0.353553385 : f32
    %37 = vector.broadcast %cst_19 : f32 to vector<1x16x8xf32>
    %38 = arith.mulf %36, %37 : vector<1x16x8xf32>
    %39 = vector.extract_strided_slice %34 {offsets = [0, 0, 32], sizes = [1, 16, 8], strides = [1, 1, 1]} : vector<1x16x96xf32> to vector<1x16x8xf32>
    %40 = vector.extract_strided_slice %34 {offsets = [0, 0, 64], sizes = [1, 16, 8], strides = [1, 1, 1]} : vector<1x16x96xf32> to vector<1x16x8xf32>
    "tpu.trace_start"() <{level = 10 : i32, message = "gnd,gmd->gnm"}> : () -> ()
    %cst_20 = arith.constant dense<0.000000e+00> : vector<1x16x16xf32>
    %41 = tpu.matmul %38, %39, %cst_20 {dimension_numbers = #tpu.dot_dimension_numbers<[2], [2], [1], [1], [0, 0, 0, 1, 1, 1], [0], [0]>} : vector<1x16x8xf32>, vector<1x16x8xf32>, vector<1x16x16xf32> -> vector<1x16x16xf32>
    "tpu.trace_stop"() : () -> ()
    %c0_21 = arith.constant 0 : index
    %c0_22 = arith.constant 0 : index
    %c0_23 = arith.constant 0 : index
    %42 = vector.load %arg7[%c0_21, %c0_22, %c0_23] : memref<4x16x16xf32, #tpu.memory_space<vmem>>, vector<1x16x16xf32>
    %43 = vector.shape_cast %42 : vector<1x16x16xf32> to vector<16x16xf32>
    %44 = vector.shape_cast %43 : vector<16x16xf32> to vector<1x16x16xf32>
    %45 = arith.addf %41, %44 : vector<1x16x16xf32>
    %46 = arith.addf %45, %35 : vector<1x16x16xf32>
    %cst_24 = arith.constant dense<0xFF800000> : vector<1x16xf32>
    %47 = vector.multi_reduction <maximumf>, %46, %cst_24 [2] : vector<1x16x16xf32> to vector<1x16xf32>
    %48 = vector.shape_cast %47 : vector<1x16xf32> to vector<1x16x1xf32>
    %49 = vector.broadcast %48 : vector<1x16x1xf32> to vector<1x16x16xf32>
    %50 = arith.subf %46, %49 : vector<1x16x16xf32>
    %51 = math.exp %50 : vector<1x16x16xf32>
    %cst_25 = arith.constant dense<0.000000e+00> : vector<1x16xf32>
    %52 = vector.multi_reduction <add>, %51, %cst_25 [2] : vector<1x16x16xf32> to vector<1x16xf32>
    %53 = vector.shape_cast %52 : vector<1x16xf32> to vector<1x16x1xf32>
    "tpu.trace_start"() <{level = 10 : i32, message = "gnm,gmd->gnd"}> : () -> ()
    %cst_26 = arith.constant dense<0.000000e+00> : vector<1x16x8xf32>
    %54 = tpu.matmul %51, %40, %cst_26 {dimension_numbers = #tpu.dot_dimension_numbers<[2], [1], [1], [2], [0, 0, 0, 1, 1, 2], [0], [0]>} : vector<1x16x16xf32>, vector<1x16x8xf32>, vector<1x16x8xf32> -> vector<1x16x8xf32>
    "tpu.trace_stop"() : () -> ()
    %55 = tpu.reciprocal %53 {approx = true} : vector<1x16x1xf32> -> vector<1x16x1xf32>
    %56 = vector.broadcast %55 : vector<1x16x1xf32> to vector<1x16x8xf32>
    %57 = arith.mulf %54, %56 : vector<1x16x8xf32>
    %58 = vector.extract_strided_slice %34 {offsets = [0, 0, 8], sizes = [1, 16, 8], strides = [1, 1, 1]} : vector<1x16x96xf32> to vector<1x16x8xf32>
    %cst_27 = arith.constant 0.353553385 : f32
    %59 = vector.broadcast %cst_27 : f32 to vector<1x16x8xf32>
    %60 = arith.mulf %58, %59 : vector<1x16x8xf32>
    %61 = vector.extract_strided_slice %34 {offsets = [0, 0, 40], sizes = [1, 16, 8], strides = [1, 1, 1]} : vector<1x16x96xf32> to vector<1x16x8xf32>
    %62 = vector.extract_strided_slice %34 {offsets = [0, 0, 72], sizes = [1, 16, 8], strides = [1, 1, 1]} : vector<1x16x96xf32> to vector<1x16x8xf32>
    "tpu.trace_start"() <{level = 10 : i32, message = "gnd,gmd->gnm"}> : () -> ()
    %cst_28 = arith.constant dense<0.000000e+00> : vector<1x16x16xf32>
    %63 = tpu.matmul %60, %61, %cst_28 {dimension_numbers = #tpu.dot_dimension_numbers<[2], [2], [1], [1], [0, 0, 0, 1, 1, 1], [0], [0]>} : vector<1x16x8xf32>, vector<1x16x8xf32>, vector<1x16x16xf32> -> vector<1x16x16xf32>
    "tpu.trace_stop"() : () -> ()
    %c1 = arith.constant 1 : index
    %c0_29 = arith.constant 0 : index
    %c0_30 = arith.constant 0 : index
    %64 = vector.load %arg7[%c1, %c0_29, %c0_30] : memref<4x16x16xf32, #tpu.memory_space<vmem>>, vector<1x16x16xf32>
    %65 = vector.shape_cast %64 : vector<1x16x16xf32> to vector<16x16xf32>
    %66 = vector.shape_cast %65 : vector<16x16xf32> to vector<1x16x16xf32>
    %67 = arith.addf %63, %66 : vector<1x16x16xf32>
    %68 = arith.addf %67, %35 : vector<1x16x16xf32>
    %cst_31 = arith.constant dense<0xFF800000> : vector<1x16xf32>
    %69 = vector.multi_reduction <maximumf>, %68, %cst_31 [2] : vector<1x16x16xf32> to vector<1x16xf32>
    %70 = vector.shape_cast %69 : vector<1x16xf32> to vector<1x16x1xf32>
    %71 = vector.broadcast %70 : vector<1x16x1xf32> to vector<1x16x16xf32>
    %72 = arith.subf %68, %71 : vector<1x16x16xf32>
    %73 = math.exp %72 : vector<1x16x16xf32>
    %cst_32 = arith.constant dense<0.000000e+00> : vector<1x16xf32>
    %74 = vector.multi_reduction <add>, %73, %cst_32 [2] : vector<1x16x16xf32> to vector<1x16xf32>
    %75 = vector.shape_cast %74 : vector<1x16xf32> to vector<1x16x1xf32>
    "tpu.trace_start"() <{level = 10 : i32, message = "gnm,gmd->gnd"}> : () -> ()
    %cst_33 = arith.constant dense<0.000000e+00> : vector<1x16x8xf32>
    %76 = tpu.matmul %73, %62, %cst_33 {dimension_numbers = #tpu.dot_dimension_numbers<[2], [1], [1], [2], [0, 0, 0, 1, 1, 2], [0], [0]>} : vector<1x16x16xf32>, vector<1x16x8xf32>, vector<1x16x8xf32> -> vector<1x16x8xf32>
    "tpu.trace_stop"() : () -> ()
    %77 = tpu.reciprocal %75 {approx = true} : vector<1x16x1xf32> -> vector<1x16x1xf32>
    %78 = vector.broadcast %77 : vector<1x16x1xf32> to vector<1x16x8xf32>
    %79 = arith.mulf %76, %78 : vector<1x16x8xf32>
    %80 = vector.extract_strided_slice %34 {offsets = [0, 0, 16], sizes = [1, 16, 8], strides = [1, 1, 1]} : vector<1x16x96xf32> to vector<1x16x8xf32>
    %cst_34 = arith.constant 0.353553385 : f32
    %81 = vector.broadcast %cst_34 : f32 to vector<1x16x8xf32>
    %82 = arith.mulf %80, %81 : vector<1x16x8xf32>
    %83 = vector.extract_strided_slice %34 {offsets = [0, 0, 48], sizes = [1, 16, 8], strides = [1, 1, 1]} : vector<1x16x96xf32> to vector<1x16x8xf32>
    %84 = vector.extract_strided_slice %34 {offsets = [0, 0, 80], sizes = [1, 16, 8], strides = [1, 1, 1]} : vector<1x16x96xf32> to vector<1x16x8xf32>
    "tpu.trace_start"() <{level = 10 : i32, message = "gnd,gmd->gnm"}> : () -> ()
    %cst_35 = arith.constant dense<0.000000e+00> : vector<1x16x16xf32>
    %85 = tpu.matmul %82, %83, %cst_35 {dimension_numbers = #tpu.dot_dimension_numbers<[2], [2], [1], [1], [0, 0, 0, 1, 1, 1], [0], [0]>} : vector<1x16x8xf32>, vector<1x16x8xf32>, vector<1x16x16xf32> -> vector<1x16x16xf32>
    "tpu.trace_stop"() : () -> ()
    %c2 = arith.constant 2 : index
    %c0_36 = arith.constant 0 : index
    %c0_37 = arith.constant 0 : index
    %86 = vector.load %arg7[%c2, %c0_36, %c0_37] : memref<4x16x16xf32, #tpu.memory_space<vmem>>, vector<1x16x16xf32>
    %87 = vector.shape_cast %86 : vector<1x16x16xf32> to vector<16x16xf32>
    %88 = vector.shape_cast %87 : vector<16x16xf32> to vector<1x16x16xf32>
    %89 = arith.addf %85, %88 : vector<1x16x16xf32>
    %90 = arith.addf %89, %35 : vector<1x16x16xf32>
    %cst_38 = arith.constant dense<0xFF800000> : vector<1x16xf32>
    %91 = vector.multi_reduction <maximumf>, %90, %cst_38 [2] : vector<1x16x16xf32> to vector<1x16xf32>
    %92 = vector.shape_cast %91 : vector<1x16xf32> to vector<1x16x1xf32>
    %93 = vector.broadcast %92 : vector<1x16x1xf32> to vector<1x16x16xf32>
    %94 = arith.subf %90, %93 : vector<1x16x16xf32>
    %95 = math.exp %94 : vector<1x16x16xf32>
    %cst_39 = arith.constant dense<0.000000e+00> : vector<1x16xf32>
    %96 = vector.multi_reduction <add>, %95, %cst_39 [2] : vector<1x16x16xf32> to vector<1x16xf32>
    %97 = vector.shape_cast %96 : vector<1x16xf32> to vector<1x16x1xf32>
    "tpu.trace_start"() <{level = 10 : i32, message = "gnm,gmd->gnd"}> : () -> ()
    %cst_40 = arith.constant dense<0.000000e+00> : vector<1x16x8xf32>
    %98 = tpu.matmul %95, %84, %cst_40 {dimension_numbers = #tpu.dot_dimension_numbers<[2], [1], [1], [2], [0, 0, 0, 1, 1, 2], [0], [0]>} : vector<1x16x16xf32>, vector<1x16x8xf32>, vector<1x16x8xf32> -> vector<1x16x8xf32>
    "tpu.trace_stop"() : () -> ()
    %99 = tpu.reciprocal %97 {approx = true} : vector<1x16x1xf32> -> vector<1x16x1xf32>
    %100 = vector.broadcast %99 : vector<1x16x1xf32> to vector<1x16x8xf32>
    %101 = arith.mulf %98, %100 : vector<1x16x8xf32>
    %102 = vector.extract_strided_slice %34 {offsets = [0, 0, 24], sizes = [1, 16, 8], strides = [1, 1, 1]} : vector<1x16x96xf32> to vector<1x16x8xf32>
    %cst_41 = arith.constant 0.353553385 : f32
    %103 = vector.broadcast %cst_41 : f32 to vector<1x16x8xf32>
    %104 = arith.mulf %102, %103 : vector<1x16x8xf32>
    %105 = vector.extract_strided_slice %34 {offsets = [0, 0, 56], sizes = [1, 16, 8], strides = [1, 1, 1]} : vector<1x16x96xf32> to vector<1x16x8xf32>
    %106 = vector.extract_strided_slice %34 {offsets = [0, 0, 88], sizes = [1, 16, 8], strides = [1, 1, 1]} : vector<1x16x96xf32> to vector<1x16x8xf32>
    "tpu.trace_start"() <{level = 10 : i32, message = "gnd,gmd->gnm"}> : () -> ()
    %cst_42 = arith.constant dense<0.000000e+00> : vector<1x16x16xf32>
    %107 = tpu.matmul %104, %105, %cst_42 {dimension_numbers = #tpu.dot_dimension_numbers<[2], [2], [1], [1], [0, 0, 0, 1, 1, 1], [0], [0]>} : vector<1x16x8xf32>, vector<1x16x8xf32>, vector<1x16x16xf32> -> vector<1x16x16xf32>
    "tpu.trace_stop"() : () -> ()
    %c3 = arith.constant 3 : index
    %c0_43 = arith.constant 0 : index
    %c0_44 = arith.constant 0 : index
    %108 = vector.load %arg7[%c3, %c0_43, %c0_44] : memref<4x16x16xf32, #tpu.memory_space<vmem>>, vector<1x16x16xf32>
    %109 = vector.shape_cast %108 : vector<1x16x16xf32> to vector<16x16xf32>
    %110 = vector.shape_cast %109 : vector<16x16xf32> to vector<1x16x16xf32>
    %111 = arith.addf %107, %110 : vector<1x16x16xf32>
    %112 = arith.addf %111, %35 : vector<1x16x16xf32>
    %cst_45 = arith.constant dense<0xFF800000> : vector<1x16xf32>
    %113 = vector.multi_reduction <maximumf>, %112, %cst_45 [2] : vector<1x16x16xf32> to vector<1x16xf32>
    %114 = vector.shape_cast %113 : vector<1x16xf32> to vector<1x16x1xf32>
    %115 = vector.broadcast %114 : vector<1x16x1xf32> to vector<1x16x16xf32>
    %116 = arith.subf %112, %115 : vector<1x16x16xf32>
    %117 = math.exp %116 : vector<1x16x16xf32>
    %cst_46 = arith.constant dense<0.000000e+00> : vector<1x16xf32>
    %118 = vector.multi_reduction <add>, %117, %cst_46 [2] : vector<1x16x16xf32> to vector<1x16xf32>
    %119 = vector.shape_cast %118 : vector<1x16xf32> to vector<1x16x1xf32>
    "tpu.trace_start"() <{level = 10 : i32, message = "gnm,gmd->gnd"}> : () -> ()
    %cst_47 = arith.constant dense<0.000000e+00> : vector<1x16x8xf32>
    %120 = tpu.matmul %117, %106, %cst_47 {dimension_numbers = #tpu.dot_dimension_numbers<[2], [1], [1], [2], [0, 0, 0, 1, 1, 2], [0], [0]>} : vector<1x16x16xf32>, vector<1x16x8xf32>, vector<1x16x8xf32> -> vector<1x16x8xf32>
    "tpu.trace_stop"() : () -> ()
    %121 = tpu.reciprocal %119 {approx = true} : vector<1x16x1xf32> -> vector<1x16x1xf32>
    %122 = vector.broadcast %121 : vector<1x16x1xf32> to vector<1x16x8xf32>
    %123 = arith.mulf %120, %122 : vector<1x16x8xf32>
    %124 = tpu.concatenate %57, %79, %101, %123 in 2 : vector<1x16x8xf32>, vector<1x16x8xf32>, vector<1x16x8xf32>, vector<1x16x8xf32> -> vector<1x16x32xf32>
    %125 = vector.shape_cast %124 : vector<1x16x32xf32> to vector<16x32xf32>
    %c0_48 = arith.constant 0 : index
    %c0_49 = arith.constant 0 : index
    %126 = vector.load %arg9[%c0_48, %c0_49] : memref<32x32xf32, #tpu.memory_space<vmem>>, vector<32x32xf32>
    %cst_50 = arith.constant dense<0.000000e+00> : vector<16x32xf32>
    %127 = tpu.matmul %125, %126, %cst_50 {dimension_numbers = #tpu.dot_dimension_numbers<[1], [0], [0], [1], [0, 0, 1, 1], [], []>} : vector<16x32xf32>, vector<32x32xf32>, vector<16x32xf32> -> vector<16x32xf32>
    %c0_51 = arith.constant 0 : index
    %c0_52 = arith.constant 0 : index
    %128 = vector.load %arg10[%c0_51, %c0_52] : memref<1x32xf32, #tpu.memory_space<vmem>>, vector<1x32xf32>
    %129 = vector.broadcast %128 : vector<1x32xf32> to vector<16x32xf32>
    %130 = arith.addf %127, %129 : vector<16x32xf32>
    %131 = vector.shape_cast %130 : vector<16x32xf32> to vector<1x1x16x32xf32>
    %c0_53 = arith.constant 0 : index
    %c0_54 = arith.constant 0 : index
    %c0_55 = arith.constant 0 : index
    %c0_56 = arith.constant 0 : index
    %132 = vector.load %arg11[%c0_53, %c0_54, %c0_55, %c0_56] : memref<1x1x16x32xf32, #tpu.memory_space<vmem>>, vector<1x1x16x32xf32>
    tpu.vector_store %arg11[%c0_53, %c0_54, %c0_55, %c0_56], %131 {strides = array<i32>} : memref<1x1x16x32xf32, #tpu.memory_space<vmem>>, vector<1x1x16x32xf32>,
    return
  }
  func.func @transform_0(%arg0: i32, %arg1: i32) -> (i32, i32, i32, i32) {
    %c0_i32 = arith.constant 0 : i32
    %c0_i32_0 = arith.constant 0 : i32
    %c0_i32_1 = arith.constant 0 : i32
    return %arg0, %arg1, %c0_i32, %c0_i32_0 : i32, i32, i32, i32
  }
  func.func @transform_1(%arg0: i32, %arg1: i32) -> (i32, i32) {
    %c0_i32 = arith.constant 0 : i32
    %c0_i32_0 = arith.constant 0 : i32
    %c0_i32_1 = arith.constant 0 : i32
    return %c0_i32, %c0_i32_0 : i32, i32
  }
  func.func @transform_2(%arg0: i32, %arg1: i32) -> (i32, i32) {
    %c0_i32 = arith.constant 0 : i32
    %c0_i32_0 = arith.constant 0 : i32
    %c0_i32_1 = arith.constant 0 : i32
    return %c0_i32, %c0_i32_0 : i32, i32
  }
  func.func @transform_3(%arg0: i32, %arg1: i32) -> (i32, i32) {
    %c0_i32 = arith.constant 0 : i32
    %c0_i32_0 = arith.constant 0 : i32
    %c0_i32_1 = arith.constant 0 : i32
    return %c0_i32, %c0_i32_0 : i32, i32
  }
  func.func @transform_4(%arg0: i32, %arg1: i32) -> (i32, i32) {
    %c0_i32 = arith.constant 0 : i32
    %c0_i32_0 = arith.constant 0 : i32
    %c0_i32_1 = arith.constant 0 : i32
    return %c0_i32, %c0_i32_0 : i32, i32
  }
  func.func @transform_5(%arg0: i32, %arg1: i32) -> (i32, i32, i32) {
    %c0_i32 = arith.constant 0 : i32
    %c0_i32_0 = arith.constant 0 : i32
    %c0_i32_1 = arith.constant 0 : i32
    %c0_i32_2 = arith.constant 0 : i32
    return %c0_i32, %c0_i32_0, %c0_i32_1 : i32, i32, i32
  }
  func.func @transform_6(%arg0: i32, %arg1: i32) -> (i32, i32, i32) {
    %c0_i32 = arith.constant 0 : i32
    %c0_i32_0 = arith.constant 0 : i32
    %c0_i32_1 = arith.constant 0 : i32
    return %arg1, %c0_i32, %c0_i32_0 : i32, i32, i32
  }
  func.func @transform_7(%arg0: i32, %arg1: i32) -> (i32, i32) {
    %c0_i32 = arith.constant 0 : i32
    %c0_i32_0 = arith.constant 0 : i32
    %c0_i32_1 = arith.constant 0 : i32
    return %c0_i32, %c0_i32_0 : i32, i32
  }
  func.func @transform_8(%arg0: i32, %arg1: i32) -> (i32, i32) {
    %c0_i32 = arith.constant 0 : i32
    %c0_i32_0 = arith.constant 0 : i32
    %c0_i32_1 = arith.constant 0 : i32
    return %c0_i32, %c0_i32_0 : i32, i32
  }
  func.func @transform_9(%arg0: i32, %arg1: i32) -> (i32, i32, i32, i32) {
    %c0_i32 = arith.constant 0 : i32
    %c0_i32_0 = arith.constant 0 : i32
    %c0_i32_1 = arith.constant 0 : i32
    return %arg0, %arg1, %c0_i32, %c0_i32_0 : i32, i32, i32, i32
  }
}

module attributes {stable_mosaic.version = 11 : i64} {
  func.func @_ln_mlp_kernel(%arg0: i32, %arg1: memref<32x32xf32, #tpu.memory_space<vmem>>, %arg2: memref<1x32xf32, #tpu.memory_space<vmem>>, %arg3: memref<1x32xf32, #tpu.memory_space<vmem>>, %arg4: memref<32x128xf32, #tpu.memory_space<vmem>>, %arg5: memref<1x128xf32, #tpu.memory_space<vmem>>, %arg6: memref<128x32xf32, #tpu.memory_space<vmem>>, %arg7: memref<1x32xf32, #tpu.memory_space<vmem>>, %arg8: memref<32x32xf32, #tpu.memory_space<vmem>>) attributes {dimension_semantics = [#tpu.dimension_semantics<parallel>], iteration_bounds = array<i64: 1>, scalar_prefetch = 0 : i64, scratch_operands = 0 : i64, tpu.core_type = #tpu.core_type<tc>, window_params = [{transform_indices = @transform_0, window_bounds = array<i64: 32, 32>}, {pipeline_mode = #tpu.pipeline_mode<synchronous>, transform_indices = @transform_1, window_bounds = array<i64: 1, 32>}, {pipeline_mode = #tpu.pipeline_mode<synchronous>, transform_indices = @transform_2, window_bounds = array<i64: 1, 32>}, {pipeline_mode = #tpu.pipeline_mode<synchronous>, transform_indices = @transform_3, window_bounds = array<i64: 32, 128>}, {pipeline_mode = #tpu.pipeline_mode<synchronous>, transform_indices = @transform_4, window_bounds = array<i64: 1, 128>}, {pipeline_mode = #tpu.pipeline_mode<synchronous>, transform_indices = @transform_5, window_bounds = array<i64: 128, 32>}, {pipeline_mode = #tpu.pipeline_mode<synchronous>, transform_indices = @transform_6, window_bounds = array<i64: 1, 32>}, {transform_indices = @transform_7, window_bounds = array<i64: 32, 32>}]} {
    %c0 = arith.constant 0 : index
    %c0_0 = arith.constant 0 : index
    %0 = vector.load %arg1[%c0, %c0_0] : memref<32x32xf32, #tpu.memory_space<vmem>>, vector<32x32xf32>
    %c0_1 = arith.constant 0 : index
    %c0_2 = arith.constant 0 : index
    %1 = vector.load %arg2[%c0_1, %c0_2] : memref<1x32xf32, #tpu.memory_space<vmem>>, vector<1x32xf32>
    %c0_3 = arith.constant 0 : index
    %c0_4 = arith.constant 0 : index
    %2 = vector.load %arg3[%c0_3, %c0_4] : memref<1x32xf32, #tpu.memory_space<vmem>>, vector<1x32xf32>
    %cst = arith.constant dense<0.000000e+00> : vector<32xf32>
    %3 = vector.multi_reduction <add>, %0, %cst [1] : vector<32x32xf32> to vector<32xf32>
    %4 = vector.shape_cast %3 : vector<32xf32> to vector<32x1xf32>
    %cst_5 = arith.constant 3.200000e+01 : f32
    %5 = vector.broadcast %cst_5 : f32 to vector<32x1xf32>
    %6 = arith.divf %4, %5 : vector<32x1xf32>
    %7 = vector.broadcast %6 : vector<32x1xf32> to vector<32x32xf32>
    %8 = arith.subf %0, %7 : vector<32x32xf32>
    %9 = vector.broadcast %6 : vector<32x1xf32> to vector<32x32xf32>
    %10 = arith.subf %0, %9 : vector<32x32xf32>
    %11 = arith.mulf %8, %10 : vector<32x32xf32>
    %cst_6 = arith.constant dense<0.000000e+00> : vector<32xf32>
    %12 = vector.multi_reduction <add>, %11, %cst_6 [1] : vector<32x32xf32> to vector<32xf32>
    %13 = vector.shape_cast %12 : vector<32xf32> to vector<32x1xf32>
    %cst_7 = arith.constant 3.200000e+01 : f32
    %14 = vector.broadcast %cst_7 : f32 to vector<32x1xf32>
    %15 = arith.divf %13, %14 : vector<32x1xf32>
    %16 = vector.broadcast %6 : vector<32x1xf32> to vector<32x32xf32>
    %17 = arith.subf %0, %16 : vector<32x32xf32>
    %cst_8 = arith.constant 9.99999974E-6 : f32
    %18 = vector.broadcast %cst_8 : f32 to vector<32x1xf32>
    %19 = arith.addf %15, %18 : vector<32x1xf32>
    %20 = math.rsqrt %19 : vector<32x1xf32>
    %21 = vector.broadcast %20 : vector<32x1xf32> to vector<32x32xf32>
    %22 = arith.mulf %17, %21 : vector<32x32xf32>
    %23 = vector.broadcast %1 : vector<1x32xf32> to vector<32x32xf32>
    %24 = arith.mulf %22, %23 : vector<32x32xf32>
    %25 = vector.broadcast %2 : vector<1x32xf32> to vector<32x32xf32>
    %26 = arith.addf %24, %25 : vector<32x32xf32>
    %c0_9 = arith.constant 0 : index
    %c0_10 = arith.constant 0 : index
    %27 = vector.load %arg4[%c0_9, %c0_10] : memref<32x128xf32, #tpu.memory_space<vmem>>, vector<32x128xf32>
    %cst_11 = arith.constant dense<0.000000e+00> : vector<32x128xf32>
    %28 = tpu.matmul %26, %27, %cst_11 {dimension_numbers = #tpu.dot_dimension_numbers<[1], [0], [0], [1], [0, 0, 1, 1], [], []>} : vector<32x32xf32>, vector<32x128xf32>, vector<32x128xf32> -> vector<32x128xf32>
    %c0_12 = arith.constant 0 : index
    %c0_13 = arith.constant 0 : index
    %29 = vector.load %arg5[%c0_12, %c0_13] : memref<1x128xf32, #tpu.memory_space<vmem>>, vector<1x128xf32>
    %30 = vector.broadcast %29 : vector<1x128xf32> to vector<32x128xf32>
    %31 = arith.addf %28, %30 : vector<32x128xf32>
    %cst_14 = arith.constant 5.000000e-01 : f32
    %32 = vector.broadcast %cst_14 : f32 to vector<32x128xf32>
    %33 = arith.mulf %32, %31 : vector<32x128xf32>
    %cst_15 = arith.constant 0.707106769 : f32
    %34 = vector.broadcast %cst_15 : f32 to vector<32x128xf32>
    %35 = arith.mulf %31, %34 : vector<32x128xf32>
    %cst_16 = arith.constant 0.000000e+00 : f32
    %36 = vector.broadcast %cst_16 : f32 to vector<32x128xf32>
    %37 = arith.cmpf olt, %35, %36 : vector<32x128xf32>
    %cst_17 = arith.constant -1.000000e+00 : f32
    %cst_18 = arith.constant 1.000000e+00 : f32
    %38 = vector.broadcast %cst_17 : f32 to vector<32x128xf32>
    %39 = vector.broadcast %cst_18 : f32 to vector<32x128xf32>
    %40 = arith.select %37, %38, %39 : vector<32x128xi1>, vector<32x128xf32>
    %41 = math.absf %35 : vector<32x128xf32>
    %cst_19 = arith.constant 0.327591091 : f32
    %42 = vector.broadcast %cst_19 : f32 to vector<32x128xf32>
    %43 = arith.mulf %42, %41 : vector<32x128xf32>
    %cst_20 = arith.constant 1.000000e+00 : f32
    %44 = vector.broadcast %cst_20 : f32 to vector<32x128xf32>
    %45 = arith.addf %44, %43 : vector<32x128xf32>
    %cst_21 = arith.constant 1.000000e+00 : f32
    %46 = vector.broadcast %cst_21 : f32 to vector<32x128xf32>
    %47 = arith.divf %46, %45 : vector<32x128xf32>
    %cst_22 = arith.constant 1.06140542 : f32
    %48 = vector.broadcast %cst_22 : f32 to vector<32x128xf32>
    %49 = arith.mulf %48, %47 : vector<32x128xf32>
    %cst_23 = arith.constant -1.45315206 : f32
    %50 = vector.broadcast %cst_23 : f32 to vector<32x128xf32>
    %51 = arith.addf %49, %50 : vector<32x128xf32>
    %52 = arith.mulf %51, %47 : vector<32x128xf32>
    %cst_24 = arith.constant 1.42141378 : f32
    %53 = vector.broadcast %cst_24 : f32 to vector<32x128xf32>
    %54 = arith.addf %52, %53 : vector<32x128xf32>
    %55 = arith.mulf %54, %47 : vector<32x128xf32>
    %cst_25 = arith.constant -0.284496725 : f32
    %56 = vector.broadcast %cst_25 : f32 to vector<32x128xf32>
    %57 = arith.addf %55, %56 : vector<32x128xf32>
    %58 = arith.mulf %57, %47 : vector<32x128xf32>
    %cst_26 = arith.constant 0.254829586 : f32
    %59 = vector.broadcast %cst_26 : f32 to vector<32x128xf32>
    %60 = arith.addf %58, %59 : vector<32x128xf32>
    %61 = arith.mulf %60, %47 : vector<32x128xf32>
    %cst_27 = arith.constant 0.000000e+00 : f32
    %62 = vector.broadcast %cst_27 : f32 to vector<32x128xf32>
    %63 = arith.subf %62, %41 : vector<32x128xf32>
    %64 = arith.mulf %63, %41 : vector<32x128xf32>
    %65 = math.exp %64 : vector<32x128xf32>
    %66 = arith.mulf %61, %65 : vector<32x128xf32>
    %cst_28 = arith.constant 1.000000e+00 : f32
    %67 = vector.broadcast %cst_28 : f32 to vector<32x128xf32>
    %68 = arith.subf %67, %66 : vector<32x128xf32>
    %69 = arith.mulf %40, %68 : vector<32x128xf32>
    %cst_29 = arith.constant 1.000000e+00 : f32
    %70 = vector.broadcast %cst_29 : f32 to vector<32x128xf32>
    %71 = arith.addf %70, %69 : vector<32x128xf32>
    %72 = arith.mulf %33, %71 : vector<32x128xf32>
    %c0_30 = arith.constant 0 : index
    %c0_31 = arith.constant 0 : index
    %73 = vector.load %arg6[%c0_30, %c0_31] : memref<128x32xf32, #tpu.memory_space<vmem>>, vector<128x32xf32>
    %cst_32 = arith.constant dense<0.000000e+00> : vector<32x32xf32>
    %74 = tpu.matmul %72, %73, %cst_32 {dimension_numbers = #tpu.dot_dimension_numbers<[1], [0], [0], [1], [0, 0, 1, 1], [], []>} : vector<32x128xf32>, vector<128x32xf32>, vector<32x32xf32> -> vector<32x32xf32>
    %c0_33 = arith.constant 0 : index
    %c0_34 = arith.constant 0 : index
    %75 = vector.load %arg7[%c0_33, %c0_34] : memref<1x32xf32, #tpu.memory_space<vmem>>, vector<1x32xf32>
    %76 = vector.broadcast %75 : vector<1x32xf32> to vector<32x32xf32>
    %77 = arith.addf %74, %76 : vector<32x32xf32>
    %78 = arith.addf %0, %77 : vector<32x32xf32>
    %c0_35 = arith.constant 0 : index
    %c0_36 = arith.constant 0 : index
    %79 = vector.load %arg8[%c0_35, %c0_36] : memref<32x32xf32, #tpu.memory_space<vmem>>, vector<32x32xf32>
    tpu.vector_store %arg8[%c0_35, %c0_36], %78 {strides = array<i32>} : memref<32x32xf32, #tpu.memory_space<vmem>>, vector<32x32xf32>,
    return
  }
  func.func @transform_0(%arg0: i32) -> (i32, i32) {
    %c0_i32 = arith.constant 0 : i32
    %c0_i32_0 = arith.constant 0 : i32
    return %arg0, %c0_i32 : i32, i32
  }
  func.func @transform_1(%arg0: i32) -> (i32, i32) {
    %c0_i32 = arith.constant 0 : i32
    %c0_i32_0 = arith.constant 0 : i32
    %c0_i32_1 = arith.constant 0 : i32
    return %c0_i32, %c0_i32_0 : i32, i32
  }
  func.func @transform_2(%arg0: i32) -> (i32, i32) {
    %c0_i32 = arith.constant 0 : i32
    %c0_i32_0 = arith.constant 0 : i32
    %c0_i32_1 = arith.constant 0 : i32
    return %c0_i32, %c0_i32_0 : i32, i32
  }
  func.func @transform_3(%arg0: i32) -> (i32, i32) {
    %c0_i32 = arith.constant 0 : i32
    %c0_i32_0 = arith.constant 0 : i32
    %c0_i32_1 = arith.constant 0 : i32
    return %c0_i32, %c0_i32_0 : i32, i32
  }
  func.func @transform_4(%arg0: i32) -> (i32, i32) {
    %c0_i32 = arith.constant 0 : i32
    %c0_i32_0 = arith.constant 0 : i32
    %c0_i32_1 = arith.constant 0 : i32
    return %c0_i32, %c0_i32_0 : i32, i32
  }
  func.func @transform_5(%arg0: i32) -> (i32, i32) {
    %c0_i32 = arith.constant 0 : i32
    %c0_i32_0 = arith.constant 0 : i32
    %c0_i32_1 = arith.constant 0 : i32
    return %c0_i32, %c0_i32_0 : i32, i32
  }
  func.func @transform_6(%arg0: i32) -> (i32, i32) {
    %c0_i32 = arith.constant 0 : i32
    %c0_i32_0 = arith.constant 0 : i32
    %c0_i32_1 = arith.constant 0 : i32
    return %c0_i32, %c0_i32_0 : i32, i32
  }
  func.func @transform_7(%arg0: i32) -> (i32, i32) {
    %c0_i32 = arith.constant 0 : i32
    %c0_i32_0 = arith.constant 0 : i32
    return %arg0, %c0_i32 : i32, i32
  }
}

module attributes {stable_mosaic.version = 11 : i64} {
  func.func @_ln_pool_head_kernel(%arg0: i32, %arg1: memref<1x16x32xf32, #tpu.memory_space<vmem>>, %arg2: memref<1x32xf32, #tpu.memory_space<vmem>>, %arg3: memref<1x32xf32, #tpu.memory_space<vmem>>, %arg4: memref<32x10xf32, #tpu.memory_space<vmem>>, %arg5: memref<1x10xf32, #tpu.memory_space<vmem>>, %arg6: memref<1x1x10xf32, #tpu.memory_space<vmem>>) attributes {dimension_semantics = [#tpu.dimension_semantics<parallel>], iteration_bounds = array<i64: 2>, scalar_prefetch = 0 : i64, scratch_operands = 0 : i64, tpu.core_type = #tpu.core_type<tc>, window_params = [{transform_indices = @transform_0, window_bounds = array<i64: 1, 16, 32>}, {pipeline_mode = #tpu.pipeline_mode<synchronous>, transform_indices = @transform_1, window_bounds = array<i64: 1, 32>}, {pipeline_mode = #tpu.pipeline_mode<synchronous>, transform_indices = @transform_2, window_bounds = array<i64: 1, 32>}, {pipeline_mode = #tpu.pipeline_mode<synchronous>, transform_indices = @transform_3, window_bounds = array<i64: 32, 10>}, {pipeline_mode = #tpu.pipeline_mode<synchronous>, transform_indices = @transform_4, window_bounds = array<i64: 1, 10>}, {transform_indices = @transform_5, window_bounds = array<i64: 1, 1, 10>}]} {
    %c0 = arith.constant 0 : index
    %c0_0 = arith.constant 0 : index
    %c0_1 = arith.constant 0 : index
    %0 = vector.load %arg1[%c0, %c0_0, %c0_1] : memref<1x16x32xf32, #tpu.memory_space<vmem>>, vector<1x16x32xf32>
    %1 = vector.shape_cast %0 : vector<1x16x32xf32> to vector<16x32xf32>
    %c0_2 = arith.constant 0 : index
    %c0_3 = arith.constant 0 : index
    %2 = vector.load %arg2[%c0_2, %c0_3] : memref<1x32xf32, #tpu.memory_space<vmem>>, vector<1x32xf32>
    %c0_4 = arith.constant 0 : index
    %c0_5 = arith.constant 0 : index
    %3 = vector.load %arg3[%c0_4, %c0_5] : memref<1x32xf32, #tpu.memory_space<vmem>>, vector<1x32xf32>
    %cst = arith.constant dense<0.000000e+00> : vector<16xf32>
    %4 = vector.multi_reduction <add>, %1, %cst [1] : vector<16x32xf32> to vector<16xf32>
    %5 = vector.shape_cast %4 : vector<16xf32> to vector<16x1xf32>
    %cst_6 = arith.constant 3.200000e+01 : f32
    %6 = vector.broadcast %cst_6 : f32 to vector<16x1xf32>
    %7 = arith.divf %5, %6 : vector<16x1xf32>
    %8 = vector.broadcast %7 : vector<16x1xf32> to vector<16x32xf32>
    %9 = arith.subf %1, %8 : vector<16x32xf32>
    %10 = vector.broadcast %7 : vector<16x1xf32> to vector<16x32xf32>
    %11 = arith.subf %1, %10 : vector<16x32xf32>
    %12 = arith.mulf %9, %11 : vector<16x32xf32>
    %cst_7 = arith.constant dense<0.000000e+00> : vector<16xf32>
    %13 = vector.multi_reduction <add>, %12, %cst_7 [1] : vector<16x32xf32> to vector<16xf32>
    %14 = vector.shape_cast %13 : vector<16xf32> to vector<16x1xf32>
    %cst_8 = arith.constant 3.200000e+01 : f32
    %15 = vector.broadcast %cst_8 : f32 to vector<16x1xf32>
    %16 = arith.divf %14, %15 : vector<16x1xf32>
    %17 = vector.broadcast %7 : vector<16x1xf32> to vector<16x32xf32>
    %18 = arith.subf %1, %17 : vector<16x32xf32>
    %cst_9 = arith.constant 9.99999974E-6 : f32
    %19 = vector.broadcast %cst_9 : f32 to vector<16x1xf32>
    %20 = arith.addf %16, %19 : vector<16x1xf32>
    %21 = math.rsqrt %20 : vector<16x1xf32>
    %22 = vector.broadcast %21 : vector<16x1xf32> to vector<16x32xf32>
    %23 = arith.mulf %18, %22 : vector<16x32xf32>
    %24 = vector.broadcast %2 : vector<1x32xf32> to vector<16x32xf32>
    %25 = arith.mulf %23, %24 : vector<16x32xf32>
    %26 = vector.broadcast %3 : vector<1x32xf32> to vector<16x32xf32>
    %27 = arith.addf %25, %26 : vector<16x32xf32>
    %cst_10 = arith.constant dense<0.000000e+00> : vector<32xf32>
    %28 = vector.multi_reduction <add>, %27, %cst_10 [0] : vector<16x32xf32> to vector<32xf32>
    %29 = vector.shape_cast %28 : vector<32xf32> to vector<1x32xf32>
    %cst_11 = arith.constant 1.600000e+01 : f32
    %30 = vector.broadcast %cst_11 : f32 to vector<1x32xf32>
    %31 = arith.divf %29, %30 : vector<1x32xf32>
    %c0_12 = arith.constant 0 : index
    %c0_13 = arith.constant 0 : index
    %32 = vector.load %arg4[%c0_12, %c0_13] : memref<32x10xf32, #tpu.memory_space<vmem>>, vector<32x10xf32>
    %cst_14 = arith.constant dense<0.000000e+00> : vector<1x10xf32>
    %33 = tpu.matmul %31, %32, %cst_14 {dimension_numbers = #tpu.dot_dimension_numbers<[1], [0], [0], [1], [0, 0, 1, 1], [], []>} : vector<1x32xf32>, vector<32x10xf32>, vector<1x10xf32> -> vector<1x10xf32>
    %c0_15 = arith.constant 0 : index
    %c0_16 = arith.constant 0 : index
    %34 = vector.load %arg5[%c0_15, %c0_16] : memref<1x10xf32, #tpu.memory_space<vmem>>, vector<1x10xf32>
    %35 = arith.addf %33, %34 : vector<1x10xf32>
    %36 = vector.shape_cast %35 : vector<1x10xf32> to vector<1x1x10xf32>
    %c0_17 = arith.constant 0 : index
    %c0_18 = arith.constant 0 : index
    %c0_19 = arith.constant 0 : index
    %37 = vector.load %arg6[%c0_17, %c0_18, %c0_19] : memref<1x1x10xf32, #tpu.memory_space<vmem>>, vector<1x1x10xf32>
    tpu.vector_store %arg6[%c0_17, %c0_18, %c0_19], %36 {strides = array<i32>} : memref<1x1x10xf32, #tpu.memory_space<vmem>>, vector<1x1x10xf32>,
    return
  }
  func.func @transform_0(%arg0: i32) -> (i32, i32, i32) {
    %c0_i32 = arith.constant 0 : i32
    %c0_i32_0 = arith.constant 0 : i32
    %c0_i32_1 = arith.constant 0 : i32
    return %arg0, %c0_i32, %c0_i32_0 : i32, i32, i32
  }
  func.func @transform_1(%arg0: i32) -> (i32, i32) {
    %c0_i32 = arith.constant 0 : i32
    %c0_i32_0 = arith.constant 0 : i32
    %c0_i32_1 = arith.constant 0 : i32
    return %c0_i32, %c0_i32_0 : i32, i32
  }
  func.func @transform_2(%arg0: i32) -> (i32, i32) {
    %c0_i32 = arith.constant 0 : i32
    %c0_i32_0 = arith.constant 0 : i32
    %c0_i32_1 = arith.constant 0 : i32
    return %c0_i32, %c0_i32_0 : i32, i32
  }
  func.func @transform_3(%arg0: i32) -> (i32, i32) {
    %c0_i32 = arith.constant 0 : i32
    %c0_i32_0 = arith.constant 0 : i32
    %c0_i32_1 = arith.constant 0 : i32
    return %c0_i32, %c0_i32_0 : i32, i32
  }
  func.func @transform_4(%arg0: i32) -> (i32, i32) {
    %c0_i32 = arith.constant 0 : i32
    %c0_i32_0 = arith.constant 0 : i32
    %c0_i32_1 = arith.constant 0 : i32
    return %c0_i32, %c0_i32_0 : i32, i32
  }
  func.func @transform_5(%arg0: i32) -> (i32, i32, i32) {
    %c0_i32 = arith.constant 0 : i32
    %c0_i32_0 = arith.constant 0 : i32
    %c0_i32_1 = arith.constant 0 : i32
    return %arg0, %c0_i32, %c0_i32_0 : i32, i32, i32
  }
}

</mosaic_0001>

<bundles_post_ra>
// kernel: swin_forward.11
= control target key start
LH: loop header
LB: loop body
LE: loop exit
PB: predicated region body
PF: predicated region fallthrough
CT: control target
= control target key end

     0   :  { %vm49_vm0 = vcmask 392192   ;;  %vm245_vm1 = vcmask 130048   ;;  %s1039_s1 = inlined_call_operand.vmem [shape: f32[48,16], index: 1, kind: input, shape index: {}]   ;;  %s1040_s0 = inlined_call_operand.vmem [shape: f32[128,48], index: 0, kind: input, shape index: {}]   ;;  %s1041_s2 = inlined_call_operand.vmem [shape: f32[1,16], index: 2, kind: input, shape index: {}]   ;;  %s1042_s3 = inlined_call_operand.vmem [shape: f32[1,16], index: 3, kind: input, shape index: {}]   ;;  %s1043_s4 = inlined_call_operand.vmem [shape: f32[1,16], index: 4, kind: input, shape index: {}]   ;;  %s1044_s5 = inlined_call_operand.vmem [shape: f32[128,16], index: 5, kind: output, shape index: {}]  }
   0x1   :  { %v36_v0 = vld [vmem:[%s1039_s1] sm:$0xff]  ;;  %v37_v1 = vld [vmem:[%s1039_s1 + $0x8] sm:$0xff]  ;;  %v38_v2 = vld [vmem:[%s1039_s1 + $0x10] sm:$0xff] }
   0x2   :  { %v596_v3 = vpack.c.bf16 %v37_v1, %v36_v0  ;;  %v39_v4 = vld [vmem:[%s1039_s1 + $0x18] sm:$0xff]  ;;  %v40_v6 = vld [vmem:[%s1039_s1 + $0x20] sm:$0xff]  ;;  %v41_v7 = vld [vmem:[%s1039_s1 + $0x28] sm:$0xff] }
   0x3   :  { %v600_v5 = vpack.c.bf16 %v39_v4, %v38_v2  ;;  %v20_v8 = vld [vmem:[%s1040_s0] sm:$0xff]  ;;  %v604_v10 = vpack.c.bf16 %v41_v7, %v40_v6  ;;  %v21_v11 = vld [vmem:[%s1040_s0 + $0x8] sm:$0xff]  ;;  %v22_v13 = vld [vmem:[%s1040_s0 + $0x10] sm:$0xff] }
   0x4   :  { %597 = vmatprep.subr.bf16.mxu0 %v596_v3  ;;  %608 = vmatprep.subr.bf16.mxu1 %v596_v3  ;;  %v28_v9 = vld [vmem:[%s1040_s0 + $0x40] sm:$0xff]  ;;  %v29_v12 = vld [vmem:[%s1040_s0 + $0x48] sm:$0xff]  ;;  %v30_v14 = vld [vmem:[%s1040_s0 + $0x50] sm:$0xff] }
   0x5   :  { %599 = vmatpush3.bf16.msra.mxu0 %v596_v3  ;;  %611 = vmatpush3.bf16.msra.mxu1 %v596_v3  ;;  %v23_v15 = vld [vmem:[%s1040_s0 + $0x18] sm:$0xff]  ;;  %v24_v17 = vld [vmem:[%s1040_s0 + $0x20] sm:$0xff]  ;;  %v25_v19 = vld [vmem:[%s1040_s0 + $0x28] sm:$0xff] }
   0x6   :  { %601 = vmatprep.subr.bf16.mxu0 %v600_v5  ;;  %609 = vmatprep.subr.bf16.mxu1 %v600_v5  ;;  %v31_v16 = vld [vmem:[%s1040_s0 + $0x58] sm:$0xff]  ;;  %v32_v18 = vld [vmem:[%s1040_s0 + $0x60] sm:$0xff]  ;;  %v33_v20 = vld [vmem:[%s1040_s0 + $0x68] sm:$0xff] }
   0x7   :  { %572 = vmatprep.mubr.msk.f32.mxu0 %vm49_vm0, %v20_v8  ;;  %584 = vmatprep.mubr.msk.f32.mxu1 %vm49_vm0, %v28_v9  ;;  %v26_v21 = vld [vmem:[%s1040_s0 + $0x30] sm:$0xff]  ;;  %v27_v23 = vld [vmem:[%s1040_s0 + $0x38] sm:$0xff]  ;;  %v519_v25 = vld [vmem:[%s1041_s2] ss:$0 sm:$0xff] }
   0x8   :  { %v34_v22 = vld [vmem:[%s1040_s0 + $0x70] sm:$0xff]  ;;  %v35_v24 = vld [vmem:[%s1040_s0 + $0x78] sm:$0xff] }
   0x9   :  { %603 = vmatpush3.bf16.msra.mxu0 %v600_v5  ;;  %612 = vmatpush3.bf16.msra.mxu1 %v600_v5 }
   0xa   :  { %605 = vmatprep.subr.bf16.mxu0 %v604_v10  ;;  %610 = vmatprep.subr.bf16.mxu1 %v604_v10 }
   0xd   :  { %607 = vmatpush3.bf16.msra.mxu0 %v604_v10  ;;  %613 = vmatpush3.bf16.msra.mxu1 %v604_v10 }
  0x10   :  { %573 = vmatmul.mubr.msk.f32.vlgmr.msra.gmra.mrb[0].mxu0 %vm49_vm0, %v21_v11  ;;  %585 = vmatmul.mubr.msk.f32.vlgmr.msra.gmra.mrb[0].mxu1 %vm49_vm0, %v29_v12 }
  0x11   :  { %575 = vmatprep.mubr.msk.f32.mxu0 %vm49_vm0, %v22_v13  ;;  %587 = vmatprep.mubr.msk.f32.mxu1 %vm49_vm0, %v30_v14 }
  0x14   :  { %576 = vmatmul.mubr.msk.f32.gmra.mrb[2].mxu0 %vm49_vm0, %v23_v15  ;;  %588 = vmatmul.mubr.msk.f32.gmra.mrb[2].mxu1 %vm49_vm0, %v31_v16 }
  0x15   :  { %578 = vmatprep.mubr.msk.f32.mxu0 %vm49_vm0, %v24_v17  ;;  %590 = vmatprep.mubr.msk.f32.mxu1 %vm49_vm0, %v32_v18 }
  0x18   :  { %579 = vmatmul.mubr.msk.f32.gmra.mrb[4].mxu0 %vm49_vm0, %v25_v19  ;;  %591 = vmatmul.mubr.msk.f32.gmra.mrb[4].mxu1 %vm49_vm0, %v33_v20 }
  0x19   :  { %581 = vmatprep.mubr.msk.f32.mxu0 %vm49_vm0, %v26_v21  ;;  %593 = vmatprep.mubr.msk.f32.mxu1 %vm49_vm0, %v34_v22 }
  0x1c   :  { %582 = vmatmul.mubr.msk.f32.gmra.mrb[6].mxu0 %vm49_vm0, %v27_v23  ;;  %594 = vmatmul.mubr.msk.f32.gmra.mrb[6].mxu1 %vm49_vm0, %v35_v24 }
  0xe3   :  { %v574_v26 = vpop.f32.mrb[0].mxu0  ;;  %v586_v27 = vpop.f32.mrb[0].mxu1 }
  0xe4   :  { %v761_v28 = vadd.f32 %v574_v26, %v519_v25  ;;  %v763_v29 = vadd.f32 %v586_v27, %v519_v25  ;;  %v164_v30 = vpop.f32.mrb[1].mxu0  ;;  %v204_v31 = vpop.f32.mrb[1].mxu1 }
  0xe5   :  { %v765_v32 = vadd.f32 %v519_v25, %v164_v30  ;;  %v773_v41 = vadd.f32 %v519_v25, %v204_v31 }
  0xe6   :  { %v273_v33 = vsel %vm245_vm1, %v763_v29, 0.0  ;;  %v249_v34 = vsel %vm245_vm1, %v761_v28, 0.0 }
  0xe7   :  { %274 = vadd.xlane.f32.xlu1 %v273_v33  ;;  %250 = vadd.xlane.f32.xlu0 %v249_v34  ;;  %v577_v35 = vpop.f32.mrb[2].mxu0  ;;  %v589_v36 = vpop.f32.mrb[2].mxu1  ;;  %v246_v43 = vsel %vm245_vm1, %v765_v32, 0.0  ;;  %v270_v51 = vsel %vm245_vm1, %v773_v41, 0.0 }
  0xe8   :  { %v180_v37 = vadd.f32 %v577_v35, %v519_v25  ;;  %v174_v38 = vpop.f32.mrb[3].mxu0  ;;  %v771_v39 = vadd.f32 %v589_v36, %v519_v25  ;;  %v214_v40 = vpop.f32.mrb[3].mxu1 }
  0xe9   :  { %v780_v49 = vadd.f32 %v519_v25, %v174_v38  ;;  %v782_v50 = vadd.f32 %v519_v25, %v214_v40 }
  0xea   :  { %v255_v42 = vsel %vm245_vm1, %v180_v37, 0.0  ;;  %v279_v46 = vsel %vm245_vm1, %v771_v39, 0.0 }
  0xeb   :  { %256 = vadd.xlane.f32.xlu1 %v255_v42  ;;  %247 = vadd.xlane.f32.xlu0 %v246_v43  ;;  %v580_v44 = vpop.f32.mrb[4].mxu0  ;;  %v592_v45 = vpop.f32.mrb[4].mxu1  ;;  %v252_v58 = vsel %vm245_vm1, %v780_v49, 0.0  ;;  %v276_v59 = vsel %vm245_vm1, %v782_v50, 0.0 }
  0xec   :  { %v184_v47 = vpop.f32.mrb[5].mxu0  ;;  %v224_v48 = vpop.f32.mrb[5].mxu1  ;;  %v786_v54 = vadd.f32 %v580_v44, %v519_v25  ;;  %v794_v60 = vadd.f32 %v592_v45, %v519_v25 }
  0xed   :  { %v788_v55 = vadd.f32 %v519_v25, %v184_v47  ;;  %v796_v61 = vadd.f32 %v519_v25, %v224_v48 }
  0xee   :  { %v261_v62 = vsel %vm245_vm1, %v786_v54, 0.0  ;;  %v285_v2 = vsel %vm245_vm1, %v794_v60, 0.0 }
  0xef   :  { %280 = vadd.xlane.f32.xlu1 %v279_v46  ;;  %271 = vadd.xlane.f32.xlu0 %v270_v51  ;;  %v583_v52 = vpop.f32.mrb[6].mxu0  ;;  %v595_v53 = vpop.f32.mrb[6].mxu1  ;;  %v258_v63 = vsel %vm245_vm1, %v788_v55, 0.0  ;;  %v282_v3 = vsel %vm245_vm1, %v796_v61, 0.0 }
  0xf0   :  { %v194_v56 = vpop.f32.mrb[7].mxu0  ;;  %v234_v57 = vpop.f32.mrb[7].mxu1  ;;  %v802_v0 = vadd.f32 %v583_v52, %v519_v25  ;;  %v810_v4 = vadd.f32 %v595_v53, %v519_v25 }
  0xf1   :  { %v804_v1 = vadd.f32 %v519_v25, %v194_v56  ;;  %v812_v5 = vadd.f32 %v519_v25, %v234_v57 }
  0xf2   :  { %v267_v6 = vsel %vm245_vm1, %v802_v0, 0.0  ;;  %v291_v8 = vsel %vm245_vm1, %v810_v4, 0.0 }
  0xf3   :  { %253 = vadd.xlane.f32.xlu1 %v252_v58  ;;  %277 = vadd.xlane.f32.xlu0 %v276_v59  ;;  %v264_v7 = vsel %vm245_vm1, %v804_v1, 0.0  ;;  %v288_v9 = vsel %vm245_vm1, %v812_v5, 0.0 }
  0xf7   :  { %262 = vadd.xlane.f32.xlu1 %v261_v62  ;;  %259 = vadd.xlane.f32.xlu0 %v258_v63 }
  0xfb   :  { %286 = vadd.xlane.f32.xlu1 %v285_v2  ;;  %283 = vadd.xlane.f32.xlu0 %v282_v3 }
  0xff   :  { %268 = vadd.xlane.f32.xlu1 %v267_v6  ;;  %265 = vadd.xlane.f32.xlu0 %v264_v7 }
 0x103   :  { %292 = vadd.xlane.f32.xlu1 %v291_v8  ;;  %289 = vadd.xlane.f32.xlu0 %v288_v9 }
 0x174   :  { %v275_v10 = vpop.xlane.xlu1 %274  ;;  %v251_v11 = vpop.xlane.xlu0 %250 }
 0x175   :  { %v304_v12 = vmul.f32 0.0625, %v275_v10  ;;  %v296_v13 = vmul.f32 0.0625, %v251_v11 }
 0x177   :  { %v823_v14 = vsub.f32 %v763_v29, %v304_v12  ;;  %v826_v15 = vsub.f32 %v761_v28, %v296_v13 }
 0x178   :  { %v257_v16 = vpop.xlane.xlu1 %256  ;;  %v248_v17 = vpop.xlane.xlu0 %247 }
 0x179   :  { %v298_v18 = vmul.f32 0.0625, %v257_v16  ;;  %v295_v19 = vmul.f32 0.0625, %v248_v17  ;;  %v328_v20 = vmul.f32 %v826_v15, %v826_v15  ;;  %v336_v24 = vmul.f32 %v823_v14, %v823_v14 }
 0x17b   :  { %v830_v21 = vsub.f32 %v180_v37, %v298_v18  ;;  %v833_v22 = vsub.f32 %v765_v32, %v295_v19  ;;  %v346_v23 = vsel %vm245_vm1, %v328_v20, 0.0  ;;  %v370_v33 = vsel %vm245_vm1, %v336_v24, 0.0 }
 0x17c   :  { %v281_v25 = vpop.xlane.xlu1 %280  ;;  %347 = vadd.xlane.f32.xlu1 %v346_v23  ;;  %v272_v26 = vpop.xlane.xlu0 %271 }
 0x17d   :  { %v306_v27 = vmul.f32 0.0625, %v281_v25  ;;  %v303_v28 = vmul.f32 0.0625, %v272_v26  ;;  %v327_v29 = vmul.f32 %v833_v22, %v833_v22  ;;  %v330_v30 = vmul.f32 %v830_v21, %v830_v21 }
 0x17f   :  { %v843_v31 = vsub.f32 %v771_v39, %v306_v27  ;;  %v846_v32 = vsub.f32 %v773_v41, %v303_v28  ;;  %v343_v34 = vsel %vm245_vm1, %v327_v29, 0.0  ;;  %v352_v42 = vsel %vm245_vm1, %v330_v30, 0.0 }
 0x180   :  { %371 = vadd.xlane.f32.xlu1 %v370_v33  ;;  %v254_v35 = vpop.xlane.xlu1 %253  ;;  %344 = vadd.xlane.f32.xlu0 %v343_v34  ;;  %v278_v36 = vpop.xlane.xlu0 %277 }
 0x181   :  { %v297_v37 = vmul.f32 0.0625, %v254_v35  ;;  %v305_v38 = vmul.f32 0.0625, %v278_v36  ;;  %v335_v40 = vmul.f32 %v846_v32, %v846_v32  ;;  %v338_v44 = vmul.f32 %v843_v31, %v843_v31 }
 0x183   :  { %v854_v39 = vsub.f32 %v780_v49, %v297_v37  ;;  %v857_v41 = vsub.f32 %v782_v50, %v305_v38  ;;  %v367_v43 = vsel %vm245_vm1, %v335_v40, 0.0  ;;  %v376_v53 = vsel %vm245_vm1, %v338_v44, 0.0 }
 0x184   :  { %353 = vadd.xlane.f32.xlu1 %v352_v42  ;;  %v263_v45 = vpop.xlane.xlu1 %262  ;;  %368 = vadd.xlane.f32.xlu0 %v367_v43  ;;  %v260_v46 = vpop.xlane.xlu0 %259 }
 0x185   :  { %v300_v47 = vmul.f32 0.0625, %v263_v45  ;;  %v299_v48 = vmul.f32 0.0625, %v260_v46  ;;  %v329_v51 = vmul.f32 %v854_v39, %v854_v39  ;;  %v337_v49 = vmul.f32 %v857_v41, %v857_v41 }
 0x187   :  { %v867_v50 = vsub.f32 %v786_v54, %v300_v47  ;;  %v870_v52 = vsub.f32 %v788_v55, %v299_v48  ;;  %v349_v56 = vsel %vm245_vm1, %v329_v51, 0.0  ;;  %v373_v2 = vsel %vm245_vm1, %v337_v49, 0.0 }
 0x188   :  { %377 = vadd.xlane.f32.xlu1 %v376_v53  ;;  %v287_v57 = vpop.xlane.xlu1 %286  ;;  %350 = vadd.xlane.f32.xlu0 %v349_v56  ;;  %v284_v58 = vpop.xlane.xlu0 %283 }
 0x189   :  { %v308_v59 = vmul.f32 0.0625, %v287_v57  ;;  %v307_v62 = vmul.f32 0.0625, %v284_v58  ;;  %v332_v63 = vmul.f32 %v867_v50, %v867_v50  ;;  %v331_v6 = vmul.f32 %v870_v52, %v870_v52  ;;  %v920_v58 = vld [vmem:[%s1042_s3] ss:$0 sm:$0xff] }
 0x18b   :  { %v878_v54 = vsub.f32 %v794_v60, %v308_v59  ;;  %v881_v55 = vsub.f32 %v796_v61, %v307_v62  ;;  %v358_v3 = vsel %vm245_vm1, %v332_v63, 0.0  ;;  %v355_v16 = vsel %vm245_vm1, %v331_v6, 0.0  ;;  %v926_v6 = vld [vmem:[%s1043_s4] ss:$0 sm:$0xff] }
 0x18c   :  { %359 = vadd.xlane.f32.xlu1 %v358_v3  ;;  %v269_v7 = vpop.xlane.xlu1 %268  ;;  %374 = vadd.xlane.f32.xlu0 %v373_v2  ;;  %v266_v8 = vpop.xlane.xlu0 %265 }
 0x18d   :  { %v302_v9 = vmul.f32 0.0625, %v269_v7  ;;  %v301_v10 = vmul.f32 0.0625, %v266_v8  ;;  %v340_v11 = vmul.f32 %v878_v54, %v878_v54  ;;  %v339_v60 = vmul.f32 %v881_v55, %v881_v55 }
 0x18f   :  { %v891_v61 = vsub.f32 %v802_v0, %v302_v9  ;;  %v894_v12 = vsub.f32 %v804_v1, %v301_v10  ;;  %v382_v13 = vsel %vm245_vm1, %v340_v11, 0.0  ;;  %v379_v24 = vsel %vm245_vm1, %v339_v60, 0.0 }
 0x190   :  { %383 = vadd.xlane.f32.xlu1 %v382_v13  ;;  %v293_v17 = vpop.xlane.xlu1 %292  ;;  %356 = vadd.xlane.f32.xlu0 %v355_v16  ;;  %v290_v18 = vpop.xlane.xlu0 %289 }
 0x191   :  { %v310_v19 = vmul.f32 0.0625, %v293_v17  ;;  %v309_v20 = vmul.f32 0.0625, %v290_v18  ;;  %v334_v23 = vmul.f32 %v891_v61, %v891_v61  ;;  %v333_v26 = vmul.f32 %v894_v12, %v894_v12 }
 0x193   :  { %v902_v0 = vsub.f32 %v810_v4, %v310_v19  ;;  %v905_v1 = vsub.f32 %v812_v5, %v309_v20  ;;  %v364_v25 = vsel %vm245_vm1, %v334_v23, 0.0  ;;  %v361_v29 = vsel %vm245_vm1, %v333_v26, 0.0 }
 0x194   :  { %365 = vadd.xlane.f32.xlu1 %v364_v25  ;;  %380 = vadd.xlane.f32.xlu0 %v379_v24 }
 0x195   :  { %v342_v27 = vmul.f32 %v902_v0, %v902_v0  ;;  %v341_v4 = vmul.f32 %v905_v1, %v905_v1 }
 0x197   :  { %v388_v28 = vsel %vm245_vm1, %v342_v27, 0.0  ;;  %v385_v5 = vsel %vm245_vm1, %v341_v4, 0.0 }
 0x198   :  { %389 = vadd.xlane.f32.xlu1 %v388_v28  ;;  %362 = vadd.xlane.f32.xlu0 %v361_v29 }
 0x19c   :  { %386 = vadd.xlane.f32.xlu0 %v385_v5 }
 0x209   :  { %v348_v30 = vpop.xlane.xlu1 %347 }
 0x20a   :  { %v392_v33 = vmul.f32 0.0625, %v348_v30 }
 0x20c   :  { %v408_v34 = vadd.f32 1e-05, %v392_v33 }
 0x20d   :  { %v372_v35 = vpop.xlane.xlu1 %371  ;;  %v345_v36 = vpop.xlane.xlu0 %344 }
 0x20e   :  { %614 = vrsqrt.f32 %v408_v34  ;;  %v400_v37 = vmul.f32 0.0625, %v372_v35  ;;  %v391_v38 = vmul.f32 0.0625, %v345_v36 }
 0x210   :  { %v416_v40 = vadd.f32 1e-05, %v400_v37  ;;  %v407_v42 = vadd.f32 1e-05, %v391_v38 }
 0x211   :  { %v354_v43 = vpop.xlane.xlu1 %353  ;;  %v369_v44 = vpop.xlane.xlu0 %368 }
 0x212   :  { %616 = vrsqrt.f32 %v416_v40  ;;  %v394_v45 = vmul.f32 0.0625, %v354_v43  ;;  %v399_v46 = vmul.f32 0.0625, %v369_v44 }
 0x213   :  { %618 = vrsqrt.f32 %v407_v42 }
 0x214   :  { %v410_v47 = vadd.f32 1e-05, %v394_v45  ;;  %v415_v48 = vadd.f32 1e-05, %v399_v46 }
 0x215   :  { %v378_v51 = vpop.xlane.xlu1 %377  ;;  %v351_v49 = vpop.xlane.xlu0 %350 }
 0x216   :  { %620 = vrsqrt.f32 %v410_v47  ;;  %v402_v53 = vmul.f32 0.0625, %v378_v51  ;;  %v393_v56 = vmul.f32 0.0625, %v351_v49 }
 0x217   :  { %622 = vrsqrt.f32 %v415_v48 }
 0x218   :  { %v615_v57 = vpop.eup %614  ;;  %v418_v59 = vadd.f32 1e-05, %v402_v53  ;;  %v409_v62 = vadd.f32 1e-05, %v393_v56 }
 0x219   :  { %v440_v63 = vmul.f32 %v615_v57, %v826_v15  ;;  %v360_v2 = vpop.xlane.xlu1 %359  ;;  %v375_v3 = vpop.xlane.xlu0 %374 }
 0x21a   :  { %624 = vrsqrt.f32 %v418_v59  ;;  %v396_v7 = vmul.f32 0.0625, %v360_v2  ;;  %v401_v8 = vmul.f32 0.0625, %v375_v3 }
 0x21b   :  { %v462_v9 = vmul.f32 %v920_v58, %v440_v63  ;;  %626 = vrsqrt.f32 %v409_v62 }
 0x21c   :  { %v617_v10 = vpop.eup %616  ;;  %v412_v11 = vadd.f32 1e-05, %v396_v7  ;;  %v417_v60 = vadd.f32 1e-05, %v401_v8 }
 0x21d   :  { %v619_v13 = vpop.eup %618  ;;  %v484_v16 = vadd.f32 %v926_v6, %v462_v9  ;;  %v448_v15 = vmul.f32 %v617_v10, %v823_v14  ;;  %v384_v17 = vpop.xlane.xlu1 %383 }
 0x21e   :  { %v357_v18 = vpop.xlane.xlu0 %356  ;;  %v439_v19 = vmul.f32 %v619_v13, %v833_v22  ;;  %628 = vrsqrt.f32 %v412_v11  ;;  %v404_v20 = vmul.f32 0.0625, %v384_v17 }
 0x21f   :  { %v395_v23 = vmul.f32 0.0625, %v357_v18  ;;  %500 = vst.msk [vmem:[%s1044_s5 + $0x8] sm:$0xff] %vm245_vm1, %v484_v16  ;;  %v470_v24 = vmul.f32 %v920_v58, %v448_v15  ;;  %630 = vrsqrt.f32 %v417_v60 }
 0x220   :  { %v621_v25 = vpop.eup %620  ;;  %v461_v26 = vmul.f32 %v920_v58, %v439_v19  ;;  %v420_v27 = vadd.f32 1e-05, %v404_v20 }
 0x221   :  { %v411_v14 = vadd.f32 1e-05, %v395_v23  ;;  %v623_v28 = vpop.eup %622  ;;  %v492_v29 = vadd.f32 %v926_v6, %v470_v24  ;;  %v442_v22 = vmul.f32 %v621_v25, %v830_v21  ;;  %v366_v4 = vpop.xlane.xlu1 %365 }
 0x222   :  { %v381_v5 = vpop.xlane.xlu0 %380  ;;  %v483_v30 = vadd.f32 %v926_v6, %v461_v26  ;;  %v447_v33 = vmul.f32 %v623_v28, %v846_v32  ;;  %632 = vrsqrt.f32 %v420_v27  ;;  %v398_v34 = vmul.f32 0.0625, %v366_v4 }
 0x223   :  { %508 = vst.msk [vmem:[%s1044_s5 + $0x48] sm:$0xff] %vm245_vm1, %v492_v29  ;;  %v464_v35 = vmul.f32 %v920_v58, %v442_v22  ;;  %634 = vrsqrt.f32 %v411_v14  ;;  %v403_v36 = vmul.f32 0.0625, %v381_v5 }
 0x224   :  { %v625_v37 = vpop.eup %624  ;;  %499 = vst.msk [vmem:[%s1044_s5] sm:$0xff] %vm245_vm1, %v483_v30  ;;  %v469_v21 = vmul.f32 %v920_v58, %v447_v33  ;;  %v414_v32 = vadd.f32 1e-05, %v398_v34 }
 0x225   :  { %v627_v38 = vpop.eup %626  ;;  %v486_v40 = vadd.f32 %v926_v6, %v464_v35  ;;  %v450_v42 = vmul.f32 %v625_v37, %v843_v31  ;;  %v419_v43 = vadd.f32 1e-05, %v403_v36  ;;  %v390_v44 = vpop.xlane.xlu1 %389 }
 0x226   :  { %v363_v45 = vpop.xlane.xlu0 %362  ;;  %v491_v46 = vadd.f32 %v926_v6, %v469_v21  ;;  %v441_v47 = vmul.f32 %v627_v38, %v854_v39  ;;  %636 = vrsqrt.f32 %v414_v32  ;;  %v406_v48 = vmul.f32 0.0625, %v390_v44 }
 0x227   :  { %502 = vst.msk [vmem:[%s1044_s5 + $0x18] sm:$0xff] %vm245_vm1, %v486_v40  ;;  %v472_v51 = vmul.f32 %v920_v58, %v450_v42  ;;  %638 = vrsqrt.f32 %v419_v43  ;;  %v397_v49 = vmul.f32 0.0625, %v363_v45 }
 0x228   :  { %v629_v53 = vpop.eup %628  ;;  %507 = vst.msk [vmem:[%s1044_s5 + $0x40] sm:$0xff] %vm245_vm1, %v491_v46  ;;  %v463_v31 = vmul.f32 %v920_v58, %v441_v47  ;;  %v422_v39 = vadd.f32 1e-05, %v406_v48 }
 0x229   :  { %v631_v56 = vpop.eup %630  ;;  %v494_v57 = vadd.f32 %v926_v6, %v472_v51  ;;  %v444_v59 = vmul.f32 %v629_v53, %v867_v50  ;;  %v413_v62 = vadd.f32 1e-05, %v397_v49 }
 0x22a   :  { %v387_v63 = vpop.xlane.xlu0 %386  ;;  %v485_v2 = vadd.f32 %v926_v6, %v463_v31  ;;  %v449_v3 = vmul.f32 %v631_v56, %v857_v41  ;;  %640 = vrsqrt.f32 %v422_v39 }
 0x22b   :  { %v405_v7 = vmul.f32 0.0625, %v387_v63  ;;  %510 = vst.msk [vmem:[%s1044_s5 + $0x58] sm:$0xff] %vm245_vm1, %v494_v57  ;;  %v466_v8 = vmul.f32 %v920_v58, %v444_v59  ;;  %642 = vrsqrt.f32 %v413_v62 }
 0x22c   :  { %v633_v9 = vpop.eup %632  ;;  %501 = vst.msk [vmem:[%s1044_s5 + $0x10] sm:$0xff] %vm245_vm1, %v485_v2  ;;  %v471_v50 = vmul.f32 %v920_v58, %v449_v3 }
 0x22d   :  { %v421_v10 = vadd.f32 1e-05, %v405_v7  ;;  %v635_v41 = vpop.eup %634  ;;  %v488_v11 = vadd.f32 %v926_v6, %v466_v8  ;;  %v452_v60 = vmul.f32 %v633_v9, %v878_v54 }
 0x22e   :  { %v493_v13 = vadd.f32 %v926_v6, %v471_v50  ;;  %v443_v16 = vmul.f32 %v635_v41, %v870_v52 }
 0x22f   :  { %644 = vrsqrt.f32 %v421_v10  ;;  %504 = vst.msk [vmem:[%s1044_s5 + $0x28] sm:$0xff] %vm245_vm1, %v488_v11  ;;  %v474_v15 = vmul.f32 %v920_v58, %v452_v60 }
 0x230   :  { %v637_v17 = vpop.eup %636  ;;  %509 = vst.msk [vmem:[%s1044_s5 + $0x50] sm:$0xff] %vm245_vm1, %v493_v13  ;;  %v465_v54 = vmul.f32 %v920_v58, %v443_v16 }
 0x231   :  { %v639_v18 = vpop.eup %638  ;;  %v496_v19 = vadd.f32 %v926_v6, %v474_v15  ;;  %v446_v52 = vmul.f32 %v637_v17, %v891_v61 }
 0x232   :  { %v487_v20 = vadd.f32 %v926_v6, %v465_v54  ;;  %v451_v23 = vmul.f32 %v639_v18, %v881_v55 }
 0x233   :  { %512 = vst.msk [vmem:[%s1044_s5 + $0x68] sm:$0xff] %vm245_vm1, %v496_v19  ;;  %v468_v24 = vmul.f32 %v920_v58, %v446_v52 }
 0x234   :  { %v641_v25 = vpop.eup %640  ;;  %503 = vst.msk [vmem:[%s1044_s5 + $0x20] sm:$0xff] %vm245_vm1, %v487_v20  ;;  %v473_v26 = vmul.f32 %v920_v58, %v451_v23 }
 0x235   :  { %v643_v61 = vpop.eup %642  ;;  %v490_v27 = vadd.f32 %v926_v6, %v468_v24  ;;  %v454_v55 = vmul.f32 %v641_v25, %v902_v0 }
 0x236   :  { %v495_v14 = vadd.f32 %v926_v6, %v473_v26  ;;  %v445_v28 = vmul.f32 %v643_v61, %v894_v12 }
 0x237   :  { %506 = vst.msk [vmem:[%s1044_s5 + $0x38] sm:$0xff] %vm245_vm1, %v490_v27  ;;  %v476_v29 = vmul.f32 %v920_v58, %v454_v55 }
 0x238   :  { %511 = vst.msk [vmem:[%s1044_s5 + $0x60] sm:$0xff] %vm245_vm1, %v495_v14  ;;  %v467_v4 = vmul.f32 %v920_v58, %v445_v28 }
 0x239   :  { %v645_v22 = vpop.eup %644  ;;  %v498_v0 = vadd.f32 %v926_v6, %v476_v29 }
 0x23a   :  { %v453_v5 = vmul.f32 %v645_v22, %v905_v1  ;;  %v489_v12 = vadd.f32 %v926_v6, %v467_v4 }
 0x23b   :  { %514 = vst.msk [vmem:[%s1044_s5 + $0x78] sm:$0xff] %vm245_vm1, %v498_v0 }
 0x23c   :  { %v475_v30 = vmul.f32 %v920_v58, %v453_v5  ;;  %505 = vst.msk [vmem:[%s1044_s5 + $0x30] sm:$0xff] %vm245_vm1, %v489_v12 }
 0x23e   :  { %v497_v33 = vadd.f32 %v926_v6, %v475_v30 }
 0x240   :  { %513 = vst.msk [vmem:[%s1044_s5 + $0x70] sm:$0xff] %vm245_vm1, %v497_v33 }

// kernel: swin_forward.12
= control target key start
LH: loop header
LB: loop body
LE: loop exit
PB: predicated region body
PF: predicated region fallthrough
CT: control target
= control target key end

     0   :  { %s3289_s30 = smov 0   ;;  %s3291_s10 = smov 0   ;;  %s3739_s0 = inlined_call_operand.vmem [shape: f32[2,4,16,16], index: 0, kind: input, shape index: {}]   ;;  %s3740_s1 = inlined_call_operand.vmem [shape: f32[1,16], index: 1, kind: input, shape index: {}]   ;;  %s3741_s2 = inlined_call_operand.vmem [shape: f32[1,16], index: 2, kind: input, shape index: {}]   ;;  %s3742_s3 = inlined_call_operand.vmem [shape: f32[16,48], index: 3, kind: input, shape index: {}]   ;;  %s3743_s4 = inlined_call_operand.vmem [shape: f32[1,48], index: 4, kind: input, shape index: {}]   ;;  %s3744_s5 = inlined_call_operand.vmem [shape: f32[2,16,16], index: 5, kind: input, shape index: {}]   ;;  %s3745_s6 = inlined_call_operand.vmem [shape: f32[4,16,16], index: 6, kind: input, shape index: {}]   ;;  %s3746_s7 = inlined_call_operand.vmem [shape: f32[16,16], index: 7, kind: input, shape index: {}]   ;;  %s3747_s8 = inlined_call_operand.vmem [shape: f32[1,16], index: 8, kind: input, shape index: {}]   ;;  %s3748_s9 = inlined_call_operand.vmem [shape: f32[2,4,16,16], index: 9, kind: output, shape index: {}]  }
   0x1   :  { %s3293_s11 = smov 0  }
   0x2 LB: > { %s31_s12 = sadd.s32 1, %s3227_s10  ;;  %p2624_p0 = scmp.ge.s32.totalorder %s3231_s11, 1  ;;  %s3231_s11 = sphi %s3293_s11, %s19_s11   ;;  %s3227_s10 = sphi %s3291_s10, %s3752_s10   ;;  %s3223_s30 = sphi %s3289_s30, %s3751_s30  }
   0x3   : > { %p33_p1 = scmp.ge.s32.totalorder %s31_s12, 2  ;;  %p321_p2 = scmp.lt.s32.totalorder %s3231_s11, 3 }
   0x5   : > { %s3754_s12 = smov (%p33_p1, %s31_s12), 0  ;;  %p322_p3 = pnand %p2624_p0, %p321_p2 }
   0x6   : > { %p374_p4 = scmp.lt.s32.totalorder (!%p322_p3), %s3223_s30, 1  ;;  %vm412_vm0 = vcmask (!%p322_p3), 130048   ;;  %v546_v56 = vld [vmem:[%s3742_s3] sm:$0xff] (!%p322_p3)  ;;  %v547_v57 = vld [vmem:[%s3742_s3 + $0x8] sm:$0xff] (!%p322_p3)  ;;  %vm708_vm1 = vcmask (!%p322_p3), 64512   ;;  %s3233_s27 = smov (!%p322_p3), 112  }
   0x7   : > { %325 = sbr.rel (%p322_p3) target bundleno = 2026 (0x7ea), region = 56  ;;  %v2931_v58 = vpack.c.bf16 (!%p322_p3), %v547_v57, %v546_v56  ;;  %s3234_s28 = smov (!%p322_p3), 96   ;;  %vm3430_vm2 = vmpackc.low (!%p322_p3), %vm708_vm1, %vm708_vm1 }
   0x8   : > { %s3235_s29 = smov (!%p322_p3), 104   ;;  %s3236_s19 = smov (!%p322_p3), 120  }
   0x9   : > { %2932 = vmatprep.subr.bf16.mxu0 (!%p322_p3), %v2931_v58  ;;  %s3237_s23 = smov (!%p322_p3), 88  }
   0xa   : > { %2934 = vmatpush3.bf16.msra.mxu0 (!%p322_p3), %v2931_v58 }
   0xe   : > { %s3756_s30 = smov (!%p374_p4, %s3223_s30), 1 }
   0xf   : > { %s2701_s13 = sshll.u32 %s3756_s30, 6 }
  0x10   : > { %s382_s16 = scalar_lea.vmem %s3739_s0, %s2701_s13  ;;  %s400_s18 = scalar_lea.vmem %s3748_s9, %s2701_s13 }
  0x11   : > { %v402_v0 = vld [vmem:[%s382_s16] sm:$0xff]  ;;  %v404_v1 = vld [vmem:[%s382_s16 + $0x10] sm:$0xff]  ;;  %v403_v2 = vld [vmem:[%s382_s16 + $0x8] sm:$0xff] }
  0x12   : > { %v413_v3 = vsel %vm412_vm0, %v402_v0, 0.0  ;;  %v419_v4 = vsel %vm412_vm0, %v404_v1, 0.0  ;;  %v405_v5 = vld [vmem:[%s382_s16 + $0x18] sm:$0xff]  ;;  %v416_v6 = vsel %vm412_vm0, %v403_v2, 0.0  ;;  %v406_v8 = vld [vmem:[%s382_s16 + $0x20] sm:$0xff]  ;;  %v407_v9 = vld [vmem:[%s382_s16 + $0x28] sm:$0xff] }
  0x13   : > { %414 = vadd.xlane.f32.xlu0 %v413_v3  ;;  %420 = vadd.xlane.f32.xlu1 %v419_v4  ;;  %v422_v7 = vsel %vm412_vm0, %v405_v5, 0.0  ;;  %v425_v10 = vsel %vm412_vm0, %v406_v8, 0.0  ;;  %v428_v11 = vsel %vm412_vm0, %v407_v9, 0.0  ;;  %v408_v12 = vld [vmem:[%s382_s16 + $0x30] sm:$0xff]  ;;  %v409_v13 = vld [vmem:[%s382_s16 + $0x38] sm:$0xff] }
  0x14   : > { %v431_v14 = vsel %vm412_vm0, %v408_v12, 0.0  ;;  %v434_v15 = vsel %vm412_vm0, %v409_v13, 0.0 }
  0x17   : > { %417 = vadd.xlane.f32.xlu0 %v416_v6  ;;  %423 = vadd.xlane.f32.xlu1 %v422_v7 }
  0x1b   : > { %426 = vadd.xlane.f32.xlu0 %v425_v10  ;;  %429 = vadd.xlane.f32.xlu1 %v428_v11 }
  0x1f   : > { %432 = vadd.xlane.f32.xlu0 %v431_v14  ;;  %435 = vadd.xlane.f32.xlu1 %v434_v15 }
  0xa0   : > { %v415_v16 = vpop.xlane.xlu0 %414  ;;  %v421_v17 = vpop.xlane.xlu1 %420 }
  0xa1   : > { %v438_v18 = vmul.f32 0.0625, %v415_v16  ;;  %v440_v19 = vmul.f32 0.0625, %v421_v17  ;;  %v2629_v17 = vld [vmem:[%s3740_s1] ss:$0 sm:$0xff] }
  0xa3   : > { %v3323_v20 = vsub.f32 %v402_v0, %v438_v18  ;;  %v3325_v21 = vsub.f32 %v404_v1, %v440_v19 }
  0xa4   : > { %v418_v22 = vpop.xlane.xlu0 %417  ;;  %v424_v23 = vpop.xlane.xlu1 %423 }
  0xa5   : > { %v439_v24 = vmul.f32 0.0625, %v418_v22  ;;  %v441_v25 = vmul.f32 0.0625, %v424_v23  ;;  %v454_v26 = vmul.f32 %v3323_v20, %v3323_v20  ;;  %v456_v27 = vmul.f32 %v3325_v21, %v3325_v21  ;;  %v2630_v23 = vld [vmem:[%s3741_s2] ss:$0 sm:$0xff] }
  0xa7   : > { %v3331_v28 = vsub.f32 %v403_v2, %v439_v24  ;;  %v3333_v29 = vsub.f32 %v405_v5, %v441_v25  ;;  %v462_v30 = vsel %vm412_vm0, %v454_v26, 0.0  ;;  %v468_v33 = vsel %vm412_vm0, %v456_v27, 0.0 }
  0xa8   : > { %463 = vadd.xlane.f32.xlu0 %v462_v30  ;;  %v427_v31 = vpop.xlane.xlu0 %426  ;;  %v430_v32 = vpop.xlane.xlu1 %429 }
  0xa9   : > { %v442_v34 = vmul.f32 0.0625, %v427_v31  ;;  %v443_v35 = vmul.f32 0.0625, %v430_v32  ;;  %v455_v36 = vmul.f32 %v3331_v28, %v3331_v28  ;;  %v457_v37 = vmul.f32 %v3333_v29, %v3333_v29 }
  0xab   : > { %v3341_v38 = vsub.f32 %v406_v8, %v442_v34  ;;  %v3343_v39 = vsub.f32 %v407_v9, %v443_v35  ;;  %v465_v40 = vsel %vm412_vm0, %v455_v36, 0.0  ;;  %v471_v43 = vsel %vm412_vm0, %v457_v37, 0.0 }
  0xac   : > { %469 = vadd.xlane.f32.xlu0 %v468_v33  ;;  %466 = vadd.xlane.f32.xlu1 %v465_v40  ;;  %v433_v41 = vpop.xlane.xlu0 %432  ;;  %v436_v42 = vpop.xlane.xlu1 %435 }
  0xad   : > { %v444_v44 = vmul.f32 0.0625, %v433_v41  ;;  %v445_v45 = vmul.f32 0.0625, %v436_v42  ;;  %v458_v46 = vmul.f32 %v3341_v38, %v3341_v38  ;;  %v459_v47 = vmul.f32 %v3343_v39, %v3343_v39 }
  0xaf   : > { %v3351_v48 = vsub.f32 %v408_v12, %v444_v44  ;;  %v3353_v49 = vsub.f32 %v409_v13, %v445_v45  ;;  %v474_v50 = vsel %vm412_vm0, %v458_v46, 0.0  ;;  %v477_v51 = vsel %vm412_vm0, %v459_v47, 0.0 }
  0xb0   : > { %472 = vadd.xlane.f32.xlu1 %v471_v43  ;;  %475 = vadd.xlane.f32.xlu0 %v474_v50 }
  0xb1   : > { %v460_v52 = vmul.f32 %v3351_v48, %v3351_v48  ;;  %v461_v53 = vmul.f32 %v3353_v49, %v3353_v49 }
  0xb3   : > { %v480_v54 = vsel %vm412_vm0, %v460_v52, 0.0  ;;  %v483_v55 = vsel %vm412_vm0, %v461_v53, 0.0 }
  0xb4   : > { %478 = vadd.xlane.f32.xlu1 %v477_v51  ;;  %481 = vadd.xlane.f32.xlu0 %v480_v54 }
  0xb8   : > { %484 = vadd.xlane.f32.xlu1 %v483_v55 }
 0x135   : > { %v464_v59 = vpop.xlane.xlu0 %463 }
 0x136   : > { %v486_v60 = vmul.f32 0.0625, %v464_v59 }
 0x138   : > { %v494_v61 = vadd.f32 1e-05, %v486_v60 }
 0x139   : > { %v467_v62 = vpop.xlane.xlu1 %466  ;;  %v470_v63 = vpop.xlane.xlu0 %469 }
 0x13a   : > { %3129 = vrsqrt.f32 %v494_v61  ;;  %v487_v0 = vmul.f32 0.0625, %v467_v62  ;;  %v488_v1 = vmul.f32 0.0625, %v470_v63 }
 0x13c   : > { %v495_v2 = vadd.f32 1e-05, %v487_v0  ;;  %v496_v3 = vadd.f32 1e-05, %v488_v1 }
 0x13d   : > { %v473_v4 = vpop.xlane.xlu1 %472  ;;  %v476_v5 = vpop.xlane.xlu0 %475 }
 0x13e   : > { %3131 = vrsqrt.f32 %v495_v2  ;;  %v489_v6 = vmul.f32 0.0625, %v473_v4  ;;  %v490_v7 = vmul.f32 0.0625, %v476_v5 }
 0x13f   : > { %3133 = vrsqrt.f32 %v496_v3 }
 0x140   : > { %v497_v8 = vadd.f32 1e-05, %v489_v6  ;;  %v498_v9 = vadd.f32 1e-05, %v490_v7 }
 0x141   : > { %v479_v10 = vpop.xlane.xlu1 %478  ;;  %v482_v11 = vpop.xlane.xlu0 %481 }
 0x142   : > { %3135 = vrsqrt.f32 %v497_v8  ;;  %v491_v12 = vmul.f32 0.0625, %v479_v10  ;;  %v492_v13 = vmul.f32 0.0625, %v482_v11 }
 0x143   : > { %3137 = vrsqrt.f32 %v498_v9 }
 0x144   : > { %v3130_v14 = vpop.eup %3129  ;;  %v499_v15 = vadd.f32 1e-05, %v491_v12  ;;  %v500_v16 = vadd.f32 1e-05, %v492_v13 }
 0x145   : > { %v485_v18 = vpop.xlane.xlu1 %484  ;;  %v510_v19 = vmul.f32 %v3130_v14, %v3323_v20 }
 0x146   : > { %3139 = vrsqrt.f32 %v499_v15  ;;  %v493_v22 = vmul.f32 0.0625, %v485_v18 }
 0x147   : > { %3141 = vrsqrt.f32 %v500_v16  ;;  %v524_v24 = vmul.f32 %v2629_v17, %v510_v19 }
 0x148   : > { %v3132_v25 = vpop.eup %3131  ;;  %v501_v26 = vadd.f32 1e-05, %v493_v22 }
 0x149   : > { %v3134_v27 = vpop.eup %3133  ;;  %v538_v30 = vadd.f32 %v2630_v23, %v524_v24  ;;  %v511_v31 = vmul.f32 %v3132_v25, %v3331_v28 }
 0x14a   : > { %3143 = vrsqrt.f32 %v501_v26  ;;  %v512_v32 = vmul.f32 %v3134_v27, %v3325_v21 }
 0x14b   : > { %2791 = vmatprep.mubr.msk.f32.mxu0 %vm412_vm0, %v538_v30  ;;  %v525_v20 = vmul.f32 %v2629_v17, %v511_v31 }
 0x14c   : > { %v3136_v33 = vpop.eup %3135  ;;  %v526_v34 = vmul.f32 %v2629_v17, %v512_v32 }
 0x14d   : > { %v3138_v35 = vpop.eup %3137  ;;  %v539_v36 = vadd.f32 %v2630_v23, %v525_v20  ;;  %v513_v37 = vmul.f32 %v3136_v33, %v3333_v29 }
 0x14e   : > { %v540_v40 = vadd.f32 %v2630_v23, %v526_v34  ;;  %v514_v41 = vmul.f32 %v3138_v35, %v3341_v38 }
 0x14f   : > { %2792 = vmatmul.mubr.msk.f32.vlgmr.msra.gmra.mrb[0].mxu0 %vm412_vm0, %v539_v36  ;;  %v527_v42 = vmul.f32 %v2629_v17, %v513_v37 }
 0x150   : > { %v3140_v43 = vpop.eup %3139  ;;  %2794 = vmatprep.mubr.msk.f32.mxu0 %vm412_vm0, %v540_v40  ;;  %v528_v28 = vmul.f32 %v2629_v17, %v514_v41 }
 0x151   : > { %v3142_v21 = vpop.eup %3141  ;;  %v541_v44 = vadd.f32 %v2630_v23, %v527_v42  ;;  %v515_v45 = vmul.f32 %v3140_v43, %v3343_v39 }
 0x152   : > { %v542_v46 = vadd.f32 %v2630_v23, %v528_v28  ;;  %v516_v47 = vmul.f32 %v3142_v21, %v3351_v48  ;;  %v2631_v48 = vld [vmem:[%s3743_s4] ss:$0 sm:$0xff] }
 0x153   : > { %2795 = vmatmul.mubr.msk.f32.gmra.mrb[2].mxu0 %vm412_vm0, %v541_v44  ;;  %v529_v29 = vmul.f32 %v2629_v17, %v515_v45 }
 0x154   : > { %v3144_v50 = vpop.eup %3143  ;;  %2797 = vmatprep.mubr.msk.f32.mxu0 %vm412_vm0, %v542_v46  ;;  %v530_v38 = vmul.f32 %v2629_v17, %v516_v47 }
 0x155   : > { %v543_v51 = vadd.f32 %v2630_v23, %v529_v29  ;;  %v517_v52 = vmul.f32 %v3144_v50, %v3353_v49 }
 0x156   : > { %v544_v53 = vadd.f32 %v2630_v23, %v530_v38 }
 0x157   : > { %2798 = vmatmul.mubr.msk.f32.gmra.mrb[4].mxu0 %vm412_vm0, %v543_v51  ;;  %v531_v54 = vmul.f32 %v2629_v17, %v517_v52 }
 0x158   : > { %2800 = vmatprep.mubr.msk.f32.mxu0 %vm412_vm0, %v544_v53 }
 0x159   : > { %v545_v39 = vadd.f32 %v2630_v23, %v531_v54  ;;  %v701_v54 = vld [vmem:[%s3744_s5 + $0x8] sm:$0xff] }
 0x15b   : > { %2801 = vmatmul.mubr.msk.f32.gmra.mrb[6].mxu0 %vm412_vm0, %v545_v39  ;;  %v700_v39 = vld [vmem:[%s3744_s5] sm:$0xff] }
 0x222   : > { %v2793_v55 = vpop.f32.mrb[0].mxu0 }
 0x223   : > { %v651_v56 = vadd.f32 %v2793_v55, %v2631_v48  ;;  %v645_v57 = vpop.f32.mrb[1].mxu0  ;;  %v3490_v55 = vld [vmem:[%s3745_s6 + $0x8] sm:$0xff] }
 0x224   : > { %v646_v58 = vadd.f32 %v2631_v48, %v645_v57 }
 0x225   : > { %v3442_v31 = vmul.f32 0.35355338, %v651_v56 }
 0x226   : > { %v2796_v59 = vpop.f32.mrb[2].mxu0  ;;  %v3394_v49 = vpack.i.bf16 %v651_v56, %v646_v58  ;;  %v3396_v60 = vmul.f32 0.35355338, %v646_v58  ;;  %v3495_v58 = vld [vmem:[%s3745_s6] sm:$0xff] }
 0x227   : > { %v661_v61 = vadd.f32 %v2796_v59, %v2631_v48  ;;  %v655_v62 = vpop.f32.mrb[3].mxu0 }
 0x228   : > { %v656_v63 = vadd.f32 %v2631_v48, %v655_v62  ;;  %3050 = vrot.lane.b32.xlu0 %v3394_v49, %s3233_s27  ;;  %2807 = vmatprep.mubr.msk.f32.mxu0 %vm708_vm1, %v3396_v60 }
 0x229   : > { %v3454_v40 = vmul.f32 0.35355338, %v661_v61 }
 0x22a   : > { %v2799_v0 = vpop.f32.mrb[4].mxu0  ;;  %v3401_v1 = vpack.i.bf16 %v661_v61, %v656_v63  ;;  %v3403_v2 = vmul.f32 0.35355338, %v656_v63 }
 0x22b   : > { %v3405_v3 = vadd.f32 %v2799_v0, %v2631_v48  ;;  %v665_v4 = vpop.f32.mrb[5].mxu0  ;;  %v3502_v0 = vld [vmem:[%s3745_s6 + $0x18] sm:$0xff] }
 0x22c   : > { %v666_v5 = vadd.f32 %v2631_v48, %v665_v4  ;;  %3070 = vrot.lane.b32.xlu0 %v3394_v49, %s3234_s28  ;;  %3055 = vrot.lane.b32.xlu1 %v3401_v1, %s3233_s27 }
 0x22d   : > { %2814 = vmatprep.mubr.msk.f32.mxu1 %vm708_vm1, %v3403_v2  ;;  %v3467_v44 = vmul.f32 0.35355338, %v3405_v3 }
 0x22e   : > { %v2802_v6 = vpop.f32.mrb[6].mxu0  ;;  %v3412_v7 = vpack.i.bf16 %v3405_v3, %v666_v5  ;;  %v3444_v33 = vmul.f32 0.35355338, %v666_v5 }
 0x22f   : > { %v3414_v8 = vadd.f32 %v2802_v6, %v2631_v48  ;;  %v675_v9 = vpop.f32.mrb[7].mxu0 }
 0x230   : > { %v676_v10 = vadd.f32 %v2631_v48, %v675_v9  ;;  %3085 = vrot.lane.b32.xlu0 %v3394_v49, %s3235_s29  ;;  %3060 = vrot.lane.b32.xlu1 %v3412_v7, %s3233_s27 }
 0x231   : > { %v699_v52 = vmul.f32 0.35355338, %v3414_v8 }
 0x232   : > { %v3420_v11 = vpack.i.bf16 %v3414_v8, %v676_v10  ;;  %v3456_v42 = vmul.f32 0.35355338, %v676_v10  ;;  %v3510_v10 = vld [vmem:[%s3745_s6 + $0x10] sm:$0xff] }
 0x234   : > { %3065 = vrot.lane.b32.xlu1 %v3420_v11, %s3233_s27 }
 0x238   : > { %3075 = vrot.lane.b32.xlu1 %v3401_v1, %s3234_s28 }
 0x23c   : > { %3080 = vrot.lane.b32.xlu1 %v3412_v7, %s3234_s28 }
 0x240   : > { %3090 = vrot.lane.b32.xlu1 %v3401_v1, %s3235_s29 }
 0x244   : > { %3095 = vrot.lane.b32.xlu1 %v3420_v11, %s3234_s28  ;;  %s3238_s28 = smov 8  }
 0x29a   : > { %v3051_v12 = vpop.permute.xlu0 %3050 }
 0x29b   : > { %v3053_v13 = vunpack.i.h.bf16 %v3051_v12  ;;  %v3052_v14 = vunpack.i.l.bf16 %v3051_v12 }
 0x29d   : > { %v2935_v16 = vpack.c.bf16 %v3053_v13, %v3052_v14  ;;  %v3515_v13 = vld [vmem:[%s3745_s6 + $0x28] sm:$0xff] }
 0x29e   : > { %v3056_v17 = vpop.permute.xlu1 %3055  ;;  %v3071_v22 = vpop.permute.xlu0 %3070 }
 0x29f   : > { %v3058_v18 = vunpack.i.h.bf16 %v3056_v17  ;;  %v3057_v19 = vunpack.i.l.bf16 %v3056_v17  ;;  %2937 = vmatprep.subr.msk.bf16.mxu0 %vm3430_vm2, %v2935_v16  ;;  %v3073_v25 = vunpack.i.h.bf16 %v3071_v22  ;;  %v3072_v26 = vunpack.i.l.bf16 %v3071_v22 }
 0x2a0   : > { %2940 = vmatpush3.bf16.xpose.msk.msra.mxu0 %vm3430_vm2, %v2935_v16 }
 0x2a1   : > { %v2941_v23 = vpack.c.bf16 %v3058_v18, %v3057_v19  ;;  %v2959_v34 = vpack.c.bf16 %v3073_v25, %v3072_v26  ;;  %v3528_v25 = vld [vmem:[%s3745_s6 + $0x38] sm:$0xff] }
 0x2a2   : > { %v3061_v24 = vpop.permute.xlu1 %3060  ;;  %v3086_v43 = vpop.permute.xlu0 %3085 }
 0x2a3   : > { %v3063_v27 = vunpack.i.h.bf16 %v3061_v24  ;;  %v3062_v30 = vunpack.i.l.bf16 %v3061_v24  ;;  %2943 = vmatprep.subr.msk.bf16.mxu1 %vm3430_vm2, %v2941_v23  ;;  %v3088_v45 = vunpack.i.h.bf16 %v3086_v43  ;;  %v3087_v47 = vunpack.i.l.bf16 %v3086_v43 }
 0x2a4   : > { %2946 = vmatpush3.bf16.xpose.msk.msra.mxu1 %vm3430_vm2, %v2941_v23  ;;  %v3523_v23 = vld [vmem:[%s3745_s6 + $0x20] sm:$0xff] }
 0x2a5   : > { %v2947_v32 = vpack.c.bf16 %v3063_v27, %v3062_v30  ;;  %v3475_v53 = vpack.c.bf16 %v3088_v45, %v3087_v47 }
 0x2a6   : > { %v3066_v20 = vpop.permute.xlu1 %3065 }
 0x2a7   : > { %v3068_v35 = vunpack.i.h.bf16 %v3066_v20  ;;  %v3067_v36 = vunpack.i.l.bf16 %v3066_v20  ;;  %2808 = vmatmul.mubr.msk.f32.vlgmr.msra.gmra.mrb[8].mxu0 %vm708_vm1, %v3442_v31  ;;  %2949 = vmatprep.subr.msk.bf16.mxu0 %vm3430_vm2, %v2947_v32 }
 0x2a8   : > { %2952 = vmatpush3.bf16.xpose.msk.msra.mxu0 %vm3430_vm2, %v2947_v32  ;;  %2821 = vmatprep.mubr.msk.f32.mxu0 %vm708_vm1, %v3444_v33 }
 0x2a9   : > { %v2953_v37 = vpack.c.bf16 %v3068_v35, %v3067_v36  ;;  %2960 = vmatprep.subr.bf16.mxu0 %v2959_v34  ;;  %v3537_v36 = vld [vmem:[%s3745_s6 + $0x30] sm:$0xff] }
 0x2aa   : > { %v3076_v41 = vpop.permute.xlu1 %3075 }
 0x2ab   : > { %v3078_v28 = vunpack.i.h.bf16 %v3076_v41  ;;  %v3077_v21 = vunpack.i.l.bf16 %v3076_v41  ;;  %2815 = vmatmul.mubr.msk.f32.vlgmr.msra.gmra.mrb[0].mxu1 %vm708_vm1, %v3454_v40  ;;  %2955 = vmatprep.subr.msk.bf16.mxu1 %vm3430_vm2, %v2953_v37 }
 0x2ac   : > { %2958 = vmatpush3.bf16.xpose.msk.msra.mxu1 %vm3430_vm2, %v2953_v37  ;;  %2828 = vmatprep.mubr.msk.f32.mxu1 %vm708_vm1, %v3456_v42 }
 0x2ad   : > { %v3469_v29 = vpack.c.bf16 %v3078_v28, %v3077_v21 }
 0x2ae   : > { %v3081_v46 = vpop.permute.xlu1 %3080 }
 0x2af   : > { %v3083_v50 = vunpack.i.h.bf16 %v3081_v46  ;;  %v3082_v38 = vunpack.i.l.bf16 %v3081_v46  ;;  %2822 = vmatmul.mubr.msk.f32.vlgmr.msra.gmra.mrb[10].mxu0 %vm708_vm1, %v3467_v44 }
 0x2b0   : > { %2962 = vmatpush3.bf16.msra.mxu0 %v2959_v34 }
 0x2b1   : > { %v2967_v51 = vpack.c.bf16 %v3083_v50, %v3082_v38  ;;  %2964 = vmatprep.subr.bf16.mxu0 %v3469_v29 }
 0x2b3   : > { %2829 = vmatmul.mubr.msk.f32.vlgmr.msra.gmra.mrb[2].mxu1 %vm708_vm1, %v699_v52  ;;  %2968 = vmatprep.subr.bf16.mxu1 %v2967_v51 }
 0x2b4   : > { %2970 = vmatpush3.bf16.msra.mxu1 %v2967_v51 }
 0x2b5   : > { %2977 = vmatprep.subr.msk.bf16.mxu1 %vm3430_vm2, %v3475_v53 }
 0x37a   : > { %v2809_v48 = vpop.f32.mrb[8].mxu0 }
 0x37b   : > { %v791_v56 = vadd.f32 %v2809_v48, %v701_v54  ;;  %v785_v57 = vpop.f32.mrb[9].mxu0 }
 0x37c   : > { %v786_v59 = vadd.f32 %v785_v57, %v700_v39 }
 0x37d   : > { %v1068_v61 = vadd.f32 %v791_v56, %v3490_v55 }
 0x37e   : > { %v2816_v62 = vpop.f32.mrb[0].mxu1  ;;  %v1067_v63 = vadd.f32 %v786_v59, %v3495_v58 }
 0x37f   : > { %v882_v3 = vadd.f32 %v2816_v62, %v701_v54  ;;  %v876_v4 = vpop.f32.mrb[1].mxu1  ;;  %v1078_v5 = vsel %vm412_vm0, %v1068_v61, -inf }
 0x380   : > { %v877_v6 = vadd.f32 %v876_v4, %v700_v39  ;;  %1079 = vmax.xlane.f32.xlu1 %v1078_v5  ;;  %v1075_v8 = vsel %vm412_vm0, %v1067_v63, -inf }
 0x381   : > { %1076 = vmax.xlane.f32.xlu0 %v1075_v8  ;;  %v1070_v9 = vadd.f32 %v882_v3, %v3502_v0 }
 0x382   : > { %v2823_v12 = vpop.f32.mrb[10].mxu0  ;;  %v1069_v19 = vadd.f32 %v877_v6, %v3510_v10 }
 0x383   : > { %v973_v14 = vadd.f32 %v2823_v12, %v701_v54  ;;  %v967_v16 = vpop.f32.mrb[11].mxu0  ;;  %v1084_v17 = vsel %vm412_vm0, %v1070_v9, -inf }
 0x384   : > { %v968_v18 = vadd.f32 %v967_v16, %v700_v39  ;;  %v1081_v20 = vsel %vm412_vm0, %v1069_v19, -inf }
 0x385   : > { %1085 = vmax.xlane.f32.xlu0 %v1084_v17  ;;  %v1072_v22 = vadd.f32 %v973_v14, %v3515_v13 }
 0x386   : > { %v2830_v24 = vpop.f32.mrb[2].mxu1  ;;  %v1071_v34 = vadd.f32 %v968_v18, %v3523_v23 }
 0x387   : > { %v1064_v26 = vadd.f32 %v2830_v24, %v701_v54  ;;  %v1058_v27 = vpop.f32.mrb[3].mxu1  ;;  %v1090_v30 = vsel %vm412_vm0, %v1072_v22, -inf }
 0x388   : > { %v1059_v32 = vadd.f32 %v1058_v27, %v700_v39  ;;  %1091 = vmax.xlane.f32.xlu1 %v1090_v30  ;;  %v1087_v41 = vsel %vm412_vm0, %v1071_v34, -inf }
 0x389   : > { %1082 = vmax.xlane.f32.xlu0 %v1081_v20  ;;  %v1074_v35 = vadd.f32 %v1064_v26, %v3528_v25 }
 0x38a   : > { %v1073_v43 = vadd.f32 %v1059_v32, %v3537_v36 }
 0x38b   : > { %v1096_v37 = vsel %vm412_vm0, %v1074_v35, -inf }
 0x38c   : > { %1097 = vmax.xlane.f32.xlu1 %v1096_v37  ;;  %v1093_v28 = vsel %vm412_vm0, %v1073_v43, -inf }
 0x38d   : > { %1088 = vmax.xlane.f32.xlu0 %v1087_v41 }
 0x391   : > { %1094 = vmax.xlane.f32.xlu0 %v1093_v28 }
 0x39d   : > { %1514 = vrot.lane.b32.xlu1 %v3396_v60, %s3236_s19  ;;  %v3091_v60 = vpop.permute.xlu1 %3090 }
 0x39e   : > { %v3093_v16 = vunpack.i.h.bf16 %v3091_v60  ;;  %v3092_v17 = vunpack.i.l.bf16 %v3091_v60 }
 0x3a0   : > { %v2981_v26 = vpack.c.bf16 %v3093_v16, %v3092_v17 }
 0x3a1   : > { %3105 = vrot.lane.b32.xlu1 %v3420_v11, %s3235_s29  ;;  %v3096_v21 = vpop.permute.xlu1 %3095 }
 0x3a2   : > { %v3098_v56 = vunpack.i.h.bf16 %v3096_v21  ;;  %v3097_v57 = vunpack.i.l.bf16 %v3096_v21 }
 0x3a4   : > { %v2971_v6 = vpack.c.bf16 %v3098_v56, %v3097_v57 }
 0x3a5   : > { %1607 = vrot.lane.b32.xlu1 %v3454_v40, %s3236_s19 }
 0x3a7   : > { %3100 = vrot.lane.b32.xlu0 %v3412_v7, %s3235_s29 }
 0x3a9   : > { %1698 = vrot.lane.b32.xlu1 %v3467_v44, %s3236_s19 }
 0x3ab   : > { %1516 = vrot.lane.b32.xlu0 %v3442_v31, %s3236_s19 }
 0x3ad   : > { %1789 = vrot.lane.b32.xlu1 %v699_v52, %s3236_s19 }
 0x3af   : > { %1605 = vrot.lane.b32.xlu0 %v3403_v2, %s3236_s19 }
 0x3b3   : > { %1696 = vrot.lane.b32.xlu0 %v3444_v33, %s3236_s19 }
 0x3b7   : > { %1787 = vrot.lane.b32.xlu0 %v3456_v42, %s3236_s19 }
 0x40d   : > { %v1080_v45 = vpop.xlane.xlu1 %1079 }
 0x40e   : > { %v1100_v46 = vsub.f32 %v1068_v61, %v1080_v45  ;;  %v1077_v47 = vpop.xlane.xlu0 %1076 }
 0x40f   : > { %v1099_v40 = vsub.f32 %v1067_v63, %v1077_v47 }
 0x410   : > { %v1109_v50 = vmul.f32 1.442695, %v1100_v46 }
 0x411   : > { %v1107_v38 = vmul.f32 1.442695, %v1099_v40 }
 0x412   : > { %v1086_v51 = vpop.xlane.xlu0 %1085 }
 0x413   : > { %3145 = vpow2.f32 %v1107_v38  ;;  %v1102_v44 = vsub.f32 %v1070_v9, %v1086_v51 }
 0x414   : > { %3147 = vpow2.f32 %v1109_v50 }
 0x415   : > { %v1092_v31 = vpop.xlane.xlu1 %1091  ;;  %v1113_v2 = vmul.f32 1.442695, %v1102_v44 }
 0x416   : > { %v1083_v52 = vpop.xlane.xlu0 %1082  ;;  %v1104_v39 = vsub.f32 %v1072_v22, %v1092_v31 }
 0x417   : > { %v1101_v54 = vsub.f32 %v1069_v19, %v1083_v52 }
 0x418   : > { %v1117_v61 = vmul.f32 1.442695, %v1104_v39 }
 0x419   : > { %v1111_v33 = vmul.f32 1.442695, %v1101_v54  ;;  %v1098_v48 = vpop.xlane.xlu1 %1097  ;;  %v2665_v54 = vld [vmem:[%s3744_s5 + $0x18] sm:$0xff] }
 0x41a   : > { %v1089_v42 = vpop.xlane.xlu0 %1088  ;;  %v1106_v62 = vsub.f32 %v1074_v35, %v1098_v48 }
 0x41b   : > { %3149 = vpow2.f32 %v1111_v33  ;;  %v1103_v59 = vsub.f32 %v1071_v34, %v1089_v42 }
 0x41c   : > { %3151 = vpow2.f32 %v1113_v2  ;;  %v1121_v9 = vmul.f32 1.442695, %v1106_v62  ;;  %v2664_v2 = vld [vmem:[%s3744_s5 + $0x10] sm:$0xff] }
 0x41d   : > { %v3554_v63 = vpop.eup %3145  ;;  %v1115_v3 = vmul.f32 1.442695, %v1103_v59  ;;  %v1515_v18 = vpop.permute.xlu1 %1514 }
 0x41e   : > { %v3556_v4 = vpop.eup %3147  ;;  %2835 = vmatprep.mubr.msk.f32.mxu0 %vm412_vm0, %v3554_v63  ;;  %v1095_v5 = vpop.xlane.xlu0 %1094 }
 0x41f   : > { %3153 = vpow2.f32 %v1115_v3  ;;  %v1105_v8 = vsub.f32 %v1073_v43, %v1095_v5  ;;  %2836 = vmatmul.mubr.msk.f32.vlgmr.msra.gmra.mrb[12].mxu0 %vm412_vm0, %v3556_v4 }
 0x420   : > { %3155 = vpow2.f32 %v1117_v61  ;;  %2966 = vmatpush3.bf16.msra.mxu0 %v3469_v29 }
 0x421   : > { %v1119_v12 = vmul.f32 1.442695, %v1105_v8  ;;  %2972 = vmatprep.subr.bf16.mxu0 %v2971_v6  ;;  %v3106_v32 = vpop.permute.xlu1 %3105 }
 0x422   : > { %v3101_v14 = vpop.permute.xlu0 %3100  ;;  %v3108_v35 = vunpack.i.h.bf16 %v3106_v32  ;;  %v3107_v37 = vunpack.i.l.bf16 %v3106_v32 }
 0x423   : > { %3157 = vpow2.f32 %v1119_v12  ;;  %v3103_v27 = vunpack.i.h.bf16 %v3101_v14  ;;  %v3102_v30 = vunpack.i.l.bf16 %v3101_v14 }
 0x424   : > { %3159 = vpow2.f32 %v1121_v9  ;;  %v2993_v60 = vpack.c.bf16 %v3108_v35, %v3107_v37 }
 0x425   : > { %v3563_v19 = vpop.eup %3149  ;;  %v2987_v34 = vpack.c.bf16 %v3103_v27, %v3102_v30  ;;  %v1608_v21 = vpop.permute.xlu1 %1607 }
 0x426   : > { %v3565_v22 = vpop.eup %3151  ;;  %2842 = vmatprep.mubr.msk.f32.mxu0 %vm412_vm0, %v3563_v19  ;;  %v1517_v24 = vpop.permute.xlu0 %1516 }
 0x427   : > { %2843 = vmatmul.mubr.msk.f32.vlgmr.msra.gmra.mrb[14].mxu0 %vm412_vm0, %v3565_v22 }
 0x428   : > { %2974 = vmatpush3.bf16.msra.mxu0 %v2971_v6 }
 0x429   : > { %v3571_v29 = vpop.eup %3153  ;;  %2983 = vmatprep.subr.msk.bf16.mxu0 %vm3430_vm2, %v2981_v26  ;;  %v1699_v46 = vpop.permute.xlu1 %1698 }
 0x42a   : > { %v3575_v20 = vpop.eup %3155  ;;  %2849 = vmatprep.mubr.msk.f32.mxu1 %vm412_vm0, %v3571_v29  ;;  %v1606_v41 = vpop.permute.xlu0 %1605 }
 0x42b   : > { %2850 = vmatmul.mubr.msk.f32.vlgmr.msra.gmra.mrb[4].mxu1 %vm412_vm0, %v3575_v20 }
 0x42c   : > { %2980 = vmatpush3.bf16.xpose.msk.msra.mxu1 %vm3430_vm2, %v3475_v53  ;;  %2863 = vmatprep.mubr.msk.f32.mxu1 %vm708_vm1, %v1515_v18 }
 0x42d   : > { %v3585_v43 = vpop.eup %3157  ;;  %2989 = vmatprep.subr.msk.bf16.mxu1 %vm3430_vm2, %v2987_v34  ;;  %v1790_v47 = vpop.permute.xlu1 %1789 }
 0x42e   : > { %v3589_v28 = vpop.eup %3159  ;;  %2856 = vmatprep.mubr.msk.f32.mxu0 %vm412_vm0, %v3585_v43  ;;  %v1697_v53 = vpop.permute.xlu0 %1696 }
 0x42f   : > { %2857 = vmatmul.mubr.msk.f32.vlgmr.msra.gmra.mrb[16].mxu0 %vm412_vm0, %v3589_v28 }
 0x430   : > { %2870 = vmatprep.mubr.msk.f32.mxu0 %vm708_vm1, %v1606_v41 }
 0x431   : > { %2986 = vmatpush3.bf16.xpose.msk.msra.mxu0 %vm3430_vm2, %v2981_v26 }
 0x432   : > { %2995 = vmatprep.subr.msk.bf16.mxu0 %vm3430_vm2, %v2993_v60  ;;  %v1788_v45 = vpop.permute.xlu0 %1787 }
 0x433   : > { %2864 = vmatmul.mubr.msk.f32.vlgmr.msra.gmra.mrb[6].mxu1 %vm708_vm1, %v1517_v24 }
 0x434   : > { %2992 = vmatpush3.bf16.xpose.msk.msra.mxu1 %vm3430_vm2, %v2987_v34  ;;  %2877 = vmatprep.mubr.msk.f32.mxu1 %vm708_vm1, %v1697_v53 }
 0x438   : > { %2871 = vmatmul.mubr.msk.f32.vlgmr.msra.gmra.mrb[18].mxu0 %vm708_vm1, %v1608_v21 }
 0x439   : > { %2998 = vmatpush3.bf16.xpose.msk.msra.mxu0 %vm3430_vm2, %v2993_v60  ;;  %2884 = vmatprep.mubr.msk.f32.mxu0 %vm708_vm1, %v1788_v45 }
 0x43b   : > { %2878 = vmatmul.mubr.msk.f32.vlgmr.msra.gmra.mrb[8].mxu1 %vm708_vm1, %v1699_v46 }
 0x440   : > { %2885 = vmatmul.mubr.msk.f32.vlgmr.msra.gmra.mrb[20].mxu0 %vm708_vm1, %v1790_v47 }
 0x4f2   : > { %v3610_v40 = vpop.f32.mrb[12].mxu0 }
 0x4f3   : > { %v3612_v50 = vpop.f32.mrb[13].mxu0 }
 0x4fa   : > { %v3614_v38 = vpop.f32.mrb[14].mxu0 }
 0x4fb   : > { %v3616_v51 = vpop.f32.mrb[15].mxu0 }
 0x4fe   : > { %v3618_v44 = vpop.f32.mrb[4].mxu1 }
 0x4ff   : > { %v3620_v31 = vpop.f32.mrb[5].mxu1 }
 0x502   : > { %v3622_v15 = vpop.f32.mrb[16].mxu0 }
 0x503   : > { %v3624_v52 = vpop.f32.mrb[17].mxu0 }
 0x506   : > { %v2865_v39 = vpop.f32.mrb[6].mxu1 }
 0x507   : > { %v1602_v33 = vadd.f32 %v2865_v39, %v2665_v54  ;;  %v1596_v48 = vpop.f32.mrb[7].mxu1 }
 0x508   : > { %v1597_v42 = vadd.f32 %v2664_v2, %v1596_v48 }
 0x509   : > { %v1879_v56 = vadd.f32 %v1602_v33, %v3490_v55 }
 0x50a   : > { %v1878_v57 = vadd.f32 %v1597_v42, %v3495_v58 }
 0x50b   : > { %v2872_v59 = vpop.f32.mrb[18].mxu0  ;;  %v1889_v61 = vsel %vm412_vm0, %v1879_v56, -inf }
 0x50c   : > { %v1693_v62 = vadd.f32 %v2872_v59, %v2665_v54  ;;  %1890 = vmax.xlane.f32.xlu1 %v1889_v61  ;;  %v1687_v3 = vpop.f32.mrb[19].mxu0  ;;  %v1886_v5 = vsel %vm412_vm0, %v1878_v57, -inf }
 0x50d   : > { %v1688_v6 = vadd.f32 %v2664_v2, %v1687_v3  ;;  %1887 = vmax.xlane.f32.xlu0 %v1886_v5 }
 0x50e   : > { %v2879_v8 = vpop.f32.mrb[8].mxu1  ;;  %v1881_v9 = vadd.f32 %v1693_v62, %v3502_v0 }
 0x50f   : > { %v1784_v12 = vadd.f32 %v2879_v8, %v2665_v54  ;;  %v1778_v14 = vpop.f32.mrb[9].mxu1  ;;  %v1880_v58 = vadd.f32 %v1688_v6, %v3510_v10 }
 0x510   : > { %v1779_v16 = vadd.f32 %v2664_v2, %v1778_v14  ;;  %v1895_v55 = vsel %vm412_vm0, %v1881_v9, -inf }
 0x511   : > { %1896 = vmax.xlane.f32.xlu0 %v1895_v55  ;;  %v1883_v17 = vadd.f32 %v1784_v12, %v3515_v13  ;;  %v1892_v30 = vsel %vm412_vm0, %v1880_v58, -inf }
 0x512   : > { %v1882_v0 = vadd.f32 %v1779_v16, %v3523_v23 }
 0x513   : > { %v2886_v18 = vpop.f32.mrb[20].mxu0  ;;  %v1901_v24 = vsel %vm412_vm0, %v1883_v17, -inf }
 0x514   : > { %v1875_v26 = vadd.f32 %v2886_v18, %v2665_v54  ;;  %v1869_v27 = vpop.f32.mrb[21].mxu0  ;;  %1902 = vmax.xlane.f32.xlu1 %v1901_v24  ;;  %v1898_v10 = vsel %vm412_vm0, %v1882_v0, -inf }
 0x515   : > { %v1870_v32 = vadd.f32 %v2664_v2, %v1869_v27  ;;  %1893 = vmax.xlane.f32.xlu0 %v1892_v30 }
 0x516   : > { %v1885_v34 = vadd.f32 %v1875_v26, %v3528_v25 }
 0x517   : > { %v1884_v13 = vadd.f32 %v1870_v32, %v3537_v36 }
 0x518   : > { %v1907_v35 = vsel %vm412_vm0, %v1885_v34, -inf }
 0x519   : > { %1908 = vmax.xlane.f32.xlu1 %v1907_v35  ;;  %1899 = vmax.xlane.f32.xlu0 %v1898_v10  ;;  %v1904_v37 = vsel %vm412_vm0, %v1884_v13, -inf }
 0x51d   : > { %1905 = vmax.xlane.f32.xlu0 %v1904_v37 }
 0x52a   : > { %3115 = vrot.lane.b32.xlu1 %v3401_v1, %s3237_s23 }
 0x52e   : > { %3120 = vrot.lane.b32.xlu1 %v3412_v7, %s3237_s23 }
 0x532   : > { %3125 = vrot.lane.b32.xlu1 %v3420_v11, %s3237_s23 }
 0x533   : > { %3110 = vrot.lane.b32.xlu0 %v3394_v49, %s3237_s23 }
 0x599   : > { %v1891_v23 = vpop.xlane.xlu1 %1890 }
 0x59a   : > { %v1911_v25 = vsub.f32 %v1879_v56, %v1891_v23  ;;  %v1888_v41 = vpop.xlane.xlu0 %1887 }
 0x59b   : > { %v1910_v60 = vsub.f32 %v1878_v57, %v1888_v41 }
 0x59c   : > { %v1920_v53 = vmul.f32 1.442695, %v1911_v25 }
 0x59d   : > { %v1918_v36 = vmul.f32 1.442695, %v1910_v60 }
 0x59e   : > { %3161 = vpow2.f32 %v1920_v53  ;;  %v1897_v21 = vpop.xlane.xlu0 %1896 }
 0x59f   : > { %3163 = vpow2.f32 %v1918_v36  ;;  %v1913_v45 = vsub.f32 %v1881_v9, %v1897_v21 }
 0x5a1   : > { %v1924_v46 = vmul.f32 1.442695, %v1913_v45  ;;  %v1903_v47 = vpop.xlane.xlu1 %1902  ;;  %v1126_v45 = vsel %vm412_vm0, %v3556_v4, 0.0  ;;  %v1129_v4 = vsel %vm412_vm0, %v3563_v19, 0.0  ;;  %v2363_v19 = vld [vmem:[%s3746_s7 + $0x8] sm:$0xff] }
 0x5a2   : > { %v1915_v54 = vsub.f32 %v1883_v17, %v1903_v47  ;;  %v1894_v1 = vpop.xlane.xlu0 %1893  ;;  %v1132_v47 = vsel %vm412_vm0, %v3565_v22, 0.0  ;;  %v1135_v22 = vsel %vm412_vm0, %v3571_v29, 0.0 }
 0x5a3   : > { %3165 = vpow2.f32 %v1924_v46  ;;  %v1912_v7 = vsub.f32 %v1880_v58, %v1894_v1  ;;  %v1138_v1 = vsel %vm412_vm0, %v3575_v20, 0.0  ;;  %v2362_v20 = vld [vmem:[%s3746_s7] sm:$0xff] }
 0x5a4   : > { %v1928_v2 = vmul.f32 1.442695, %v1915_v54  ;;  %v1123_v54 = vsel %vm412_vm0, %v3554_v63, 0.0  ;;  %v1141_v63 = vsel %vm412_vm0, %v3585_v43, 0.0 }
 0x5a5   : > { %v1922_v11 = vmul.f32 1.442695, %v1912_v7  ;;  %v1144_v7 = vsel %vm412_vm0, %v3589_v28, 0.0 }
 0x5a6   : > { %3167 = vpow2.f32 %v1928_v2  ;;  %v1909_v49 = vpop.xlane.xlu1 %1908  ;;  %v1900_v39 = vpop.xlane.xlu0 %1899  ;;  %v3015_v2 = vpack.c.bf16 %v2363_v19, %v2362_v20 }
 0x5a7   : > { %3169 = vpow2.f32 %v1922_v11  ;;  %v1917_v33 = vsub.f32 %v1885_v34, %v1909_v49  ;;  %v1914_v48 = vsub.f32 %v1882_v0, %v1900_v39 }
 0x5a8   : > { %v3162_v42 = vpop.eup %3161 }
 0x5a9   : > { %v3164_v56 = vpop.eup %3163  ;;  %v1932_v57 = vmul.f32 1.442695, %v1917_v33  ;;  %v1926_v59 = vmul.f32 1.442695, %v1914_v48  ;;  %v1937_v61 = vsel %vm412_vm0, %v3162_v42, 0.0 }
 0x5aa   : > { %2891 = vmatprep.mubr.msk.f32.mxu1 %vm412_vm0, %v3164_v56  ;;  %1938 = vadd.xlane.f32.xlu1 %v1937_v61  ;;  %v3116_v62 = vpop.permute.xlu1 %3115  ;;  %v1906_v3 = vpop.xlane.xlu0 %1905  ;;  %v1934_v5 = vsel %vm412_vm0, %v3164_v56, 0.0 }
 0x5ab   : > { %3171 = vpow2.f32 %v1932_v57  ;;  %v3118_v6 = vunpack.i.h.bf16 %v3116_v62  ;;  %v3117_v8 = vunpack.i.l.bf16 %v3116_v62  ;;  %v1916_v9 = vsub.f32 %v1884_v13, %v1906_v3  ;;  %1935 = vadd.xlane.f32.xlu0 %v1934_v5 }
 0x5ac   : > { %3173 = vpow2.f32 %v1926_v59 }
 0x5ad   : > { %v3166_v12 = vpop.eup %3165  ;;  %v3003_v14 = vpack.c.bf16 %v3118_v6, %v3117_v8  ;;  %v1930_v16 = vmul.f32 1.442695, %v1916_v9 }
 0x5ae   : > { %v3121_v55 = vpop.permute.xlu1 %3120  ;;  %v3111_v58 = vpop.permute.xlu0 %3110  ;;  %v1943_v17 = vsel %vm412_vm0, %v3166_v12, 0.0 }
 0x5af   : > { %3175 = vpow2.f32 %v1930_v16  ;;  %v3113_v18 = vunpack.i.h.bf16 %v3111_v58  ;;  %3004 = vmatprep.subr.bf16.mxu0 %v3003_v14  ;;  %1944 = vadd.xlane.f32.xlu0 %v1943_v17  ;;  %v3123_v26 = vunpack.i.h.bf16 %v3121_v55  ;;  %v3122_v27 = vunpack.i.l.bf16 %v3121_v55 }
 0x5b0   : > { %v3168_v24 = vpop.eup %3167  ;;  %v3112_v30 = vunpack.i.l.bf16 %v3111_v58  ;;  %3006 = vmatpush3.bf16.msra.mxu0 %v3003_v14 }
 0x5b1   : > { %v3170_v0 = vpop.eup %3169  ;;  %v1949_v32 = vsel %vm412_vm0, %v3168_v24, 0.0  ;;  %v3007_v23 = vpack.c.bf16 %v3123_v26, %v3122_v27 }
 0x5b2   : > { %v2999_v34 = vpack.c.bf16 %v3113_v18, %v3112_v30  ;;  %2898 = vmatprep.mubr.msk.f32.mxu0 %vm412_vm0, %v3170_v0  ;;  %1950 = vadd.xlane.f32.xlu1 %v1949_v32  ;;  %v3126_v35 = vpop.permute.xlu1 %3125  ;;  %v1940_v10 = vsel %vm412_vm0, %v3170_v0, 0.0 }
 0x5b3   : > { %v3128_v13 = vunpack.i.h.bf16 %v3126_v35  ;;  %v3127_v37 = vunpack.i.l.bf16 %v3126_v35  ;;  %2899 = vmatmul.mubr.msk.f32.vlgmr.msra.gmra.mrb[22].mxu0 %vm412_vm0, %v3166_v12  ;;  %1941 = vadd.xlane.f32.xlu0 %v1940_v10 }
 0x5b4   : > { %3000 = vmatprep.subr.bf16.mxu1 %v2999_v34 }
 0x5b5   : > { %v3172_v25 = vpop.eup %3171  ;;  %v3011_v41 = vpack.c.bf16 %v3128_v13, %v3127_v37  ;;  %3002 = vmatpush3.bf16.msra.mxu1 %v2999_v34 }
 0x5b6   : > { %v3174_v60 = vpop.eup %3173  ;;  %3008 = vmatprep.subr.bf16.mxu1 %v3007_v23  ;;  %v1955_v53 = vsel %vm412_vm0, %v3172_v25, 0.0 }
 0x5b7   : > { %1956 = vadd.xlane.f32.xlu1 %v1955_v53  ;;  %3012 = vmatprep.subr.bf16.mxu0 %v3011_v41  ;;  %v1946_v36 = vsel %vm412_vm0, %v3174_v60, 0.0 }
 0x5b8   : > { %1947 = vadd.xlane.f32.xlu0 %v1946_v36  ;;  %2892 = vmatmul.mubr.msk.f32.vlgmr.msra.gmra.mrb[10].mxu1 %vm412_vm0, %v3162_v42 }
 0x5b9   : > { %v3176_v21 = vpop.eup %3175  ;;  %3010 = vmatpush3.bf16.msra.mxu1 %v3007_v23  ;;  %2905 = vmatprep.mubr.msk.f32.mxu1 %vm412_vm0, %v3174_v60 }
 0x5ba   : > { %3014 = vmatpush3.bf16.msra.mxu0 %v3011_v41  ;;  %2912 = vmatprep.mubr.msk.f32.mxu0 %vm412_vm0, %v3176_v21  ;;  %v1952_v46 = vsel %vm412_vm0, %v3176_v21, 0.0 }
 0x5bb   : > { %1127 = vadd.xlane.f32.xlu1 %v1126_v45  ;;  %3016 = vmatprep.subr.bf16.mxu1 %v3015_v2 }
 0x5bc   : > { %1953 = vadd.xlane.f32.xlu0 %v1952_v46  ;;  %2906 = vmatmul.mubr.msk.f32.vlgmr.msra.gmra.mrb[12].mxu1 %vm412_vm0, %v3168_v24 }
 0x5bd   : > { %2913 = vmatmul.mubr.msk.f32.vlgmr.msra.gmra.mrb[24].mxu0 %vm412_vm0, %v3172_v25  ;;  %3018 = vmatpush3.bf16.msra.mxu1 %v3015_v2 }
 0x5bf   : > { %1133 = vadd.xlane.f32.xlu1 %v1132_v47 }
 0x5c0   : > { %1124 = vadd.xlane.f32.xlu0 %v1123_v54 }
 0x5c3   : > { %1139 = vadd.xlane.f32.xlu1 %v1138_v1 }
 0x5c4   : > { %1130 = vadd.xlane.f32.xlu0 %v1129_v4 }
 0x5c7   : > { %1145 = vadd.xlane.f32.xlu1 %v1144_v7 }
 0x5c8   : > { %1136 = vadd.xlane.f32.xlu0 %v1135_v22 }
 0x5cc   : > { %1142 = vadd.xlane.f32.xlu0 %v1141_v63 }
 0x637   : > { %v1939_v29 = vpop.xlane.xlu1 %1938 }
 0x638   : > { %v1936_v28 = vpop.xlane.xlu0 %1935  ;;  %3177 = vrcp.f32 %v1939_v29 }
 0x639   : > { %3179 = vrcp.f32 %v1936_v28 }
 0x63c   : > { %v1945_v11 = vpop.xlane.xlu0 %1944 }
 0x63f   : > { %v1951_v42 = vpop.xlane.xlu1 %1950 }
 0x640   : > { %v1942_v49 = vpop.xlane.xlu0 %1941 }
 0x641   : > { %3181 = vrcp.f32 %v1942_v49 }
 0x642   : > { %v3178_v56 = vpop.eup %3177 }
 0x643   : > { %v3180_v59 = vpop.eup %3179 }
 0x644   : > { %v1957_v5 = vpop.xlane.xlu1 %1956 }
 0x645   : > { %v1948_v39 = vpop.xlane.xlu0 %1947 }
 0x646   : > { %3183 = vrcp.f32 %v1948_v39 }
 0x647   : > { %3185 = vrcp.f32 %v1945_v11 }
 0x648   : > { %v1128_v34 = vpop.xlane.xlu1 %1127 }
 0x649   : > { %v1954_v33 = vpop.xlane.xlu0 %1953 }
 0x64a   : > { %3187 = vrcp.f32 %v1954_v33 }
 0x64b   : > { %3189 = vrcp.f32 %v1951_v42  ;;  %v3182_v6 = vpop.eup %3181 }
 0x64c   : > { %3191 = vrcp.f32 %v1957_v5  ;;  %v1134_v10 = vpop.xlane.xlu1 %1133 }
 0x64d   : > { %v1125_v35 = vpop.xlane.xlu0 %1124 }
 0x64e   : > { %3193 = vrcp.f32 %v1125_v35 }
 0x64f   : > { %3195 = vrcp.f32 %v1128_v34 }
 0x650   : > { %v3184_v9 = vpop.eup %3183  ;;  %v1140_v37 = vpop.xlane.xlu1 %1139 }
 0x651   : > { %v3186_v17 = vpop.eup %3185  ;;  %v1131_v13 = vpop.xlane.xlu0 %1130 }
 0x652   : > { %3197 = vrcp.f32 %v1131_v13 }
 0x653   : > { %3199 = vrcp.f32 %v1134_v10 }
 0x654   : > { %v3188_v18 = vpop.eup %3187  ;;  %v1146_v25 = vpop.xlane.xlu1 %1145 }
 0x655   : > { %v3190_v27 = vpop.eup %3189  ;;  %v1137_v23 = vpop.xlane.xlu0 %1136 }
 0x656   : > { %v3192_v0 = vpop.eup %3191  ;;  %3201 = vrcp.f32 %v1137_v23 }
 0x657   : > { %3203 = vrcp.f32 %v1140_v37 }
 0x658   : > { %v3194_v60 = vpop.eup %3193 }
 0x659   : > { %v1143_v41 = vpop.xlane.xlu0 %1142  ;;  %v3196_v53 = vpop.eup %3195  ;;  %v1503_v45 = vmul.f32 %v3194_v60, %v3612_v50 }
 0x65a   : > { %3205 = vrcp.f32 %v1143_v41  ;;  %v1504_v46 = vmul.f32 %v3196_v53, %v3610_v40 }
 0x65b   : > { %3207 = vrcp.f32 %v1146_v25 }
 0x65c   : > { %v3198_v36 = vpop.eup %3197 }
 0x65d   : > { %v1505_v4 = vmul.f32 %v3198_v36, %v3616_v51  ;;  %v3200_v7 = vpop.eup %3199 }
 0x65e   : > { %v1506_v40 = vmul.f32 %v3200_v7, %v3614_v38 }
 0x660   : > { %v3202_v63 = vpop.eup %3201 }
 0x661   : > { %v3204_v19 = vpop.eup %3203  ;;  %v1507_v2 = vmul.f32 %v3202_v63, %v3620_v31 }
 0x662   : > { %v1508_v39 = vmul.f32 %v3204_v19, %v3618_v44  ;;  %v2690_v44 = vld [vmem:[%s3747_s8] ss:$0 sm:$0xff] }
 0x664   : > { %v3206_v11 = vpop.eup %3205 }
 0x665   : > { %v1509_v38 = vmul.f32 %v3206_v11, %v3624_v52 }
 0x686   : > { %v2900_v43 = vpop.f32.mrb[22].mxu0 }
 0x687   : > { %v2123_v48 = vpop.f32.mrb[23].mxu0  ;;  %v2317_v24 = vmul.f32 %v3186_v17, %v2900_v43  ;;  %v3208_v43 = vpop.eup %3207 }
 0x688   : > { %v2316_v12 = vmul.f32 %v3182_v6, %v2123_v48  ;;  %v1510_v42 = vmul.f32 %v3208_v43, %v3622_v15 }
 0x68b   : > { %v2893_v57 = vpop.f32.mrb[10].mxu1 }
 0x68c   : > { %v2315_v61 = vmul.f32 %v3178_v56, %v2893_v57  ;;  %v2036_v62 = vpop.f32.mrb[11].mxu1 }
 0x68d   : > { %v2314_v3 = vmul.f32 %v3180_v59, %v2036_v62 }
 0x68e   : > { %2332 = vrot.lane.b32.xlu1 %v2315_v61, %s3238_s28 }
 0x68f   : > { %2330 = vrot.lane.b32.xlu0 %v2314_v3, %s3238_s28  ;;  %v2907_v8 = vpop.f32.mrb[12].mxu1 }
 0x690   : > { %v2914_v14 = vpop.f32.mrb[24].mxu0  ;;  %v2210_v16 = vpop.f32.mrb[13].mxu1  ;;  %v2319_v30 = vmul.f32 %v3190_v27, %v2907_v8 }
 0x691   : > { %v2318_v55 = vmul.f32 %v3184_v9, %v2210_v16  ;;  %v2297_v58 = vpop.f32.mrb[25].mxu0  ;;  %v2321_v32 = vmul.f32 %v3192_v0, %v2914_v14 }
 0x692   : > { %2334 = vrot.lane.b32.xlu1 %v2316_v12, %s3238_s28  ;;  %v2320_v26 = vmul.f32 %v3188_v18, %v2297_v58 }
 0x693   : > { %2338 = vrot.lane.b32.xlu0 %v2318_v55, %s3238_s28 }
 0x696   : > { %2336 = vrot.lane.b32.xlu1 %v2317_v24, %s3238_s28 }
 0x697   : > { %2342 = vrot.lane.b32.xlu0 %v2320_v26, %s3238_s28 }
 0x69a   : > { %2340 = vrot.lane.b32.xlu1 %v2319_v30, %s3238_s28 }
 0x69e   : > { %2344 = vrot.lane.b32.xlu1 %v2321_v32, %s3238_s28 }
 0x700   : > { %v2333_v21 = vpop.permute.xlu1 %2332 }
 0x701   : > { %v2331_v47 = vpop.permute.xlu0 %2330  ;;  %v2355_v1 = vsel %vm708_vm1, %v1504_v46, %v2333_v21 }
 0x702   : > { %v2354_v54 = vsel %vm708_vm1, %v1503_v45, %v2331_v47 }
 0x703   : > { %2919 = vmatprep.mubr.msk.f32.mxu1 %vm412_vm0, %v2354_v54 }
 0x704   : > { %v2335_v22 = vpop.permute.xlu1 %2334  ;;  %2920 = vmatmul.mubr.msk.f32.vlgmr.msra.gmra.mrb[14].mxu1 %vm412_vm0, %v2355_v1 }
 0x705   : > { %v2356_v20 = vsel %vm708_vm1, %v1505_v4, %v2335_v22  ;;  %v2339_v50 = vpop.permute.xlu0 %2338 }
 0x706   : > { %2922 = vmatprep.mubr.msk.f32.mxu1 %vm412_vm0, %v2356_v20  ;;  %v2358_v51 = vsel %vm708_vm1, %v1507_v2, %v2339_v50 }
 0x708   : > { %v2337_v28 = vpop.permute.xlu1 %2336 }
 0x709   : > { %v2357_v49 = vsel %vm708_vm1, %v1506_v40, %v2337_v28  ;;  %v2343_v29 = vpop.permute.xlu0 %2342 }
 0x70a   : > { %2923 = vmatmul.mubr.msk.f32.gmra.mrb[16].mxu1 %vm412_vm0, %v2357_v49  ;;  %v2360_v48 = vsel %vm708_vm1, %v1509_v38, %v2343_v29 }
 0x70b   : > { %2925 = vmatprep.mubr.msk.f32.mxu1 %vm412_vm0, %v2358_v51 }
 0x70c   : > { %v2341_v33 = vpop.permute.xlu1 %2340 }
 0x70d   : > { %v2359_v31 = vsel %vm708_vm1, %v1508_v39, %v2341_v33 }
 0x70e   : > { %2926 = vmatmul.mubr.msk.f32.gmra.mrb[18].mxu1 %vm412_vm0, %v2359_v31 }
 0x70f   : > { %2928 = vmatprep.mubr.msk.f32.mxu1 %vm412_vm0, %v2360_v48 }
 0x710   : > { %v2345_v56 = vpop.permute.xlu1 %2344 }
 0x711   : > { %v2361_v57 = vsel %vm708_vm1, %v1510_v42, %v2345_v56 }
 0x712   : > { %2929 = vmatmul.mubr.msk.f32.gmra.mrb[20].mxu1 %vm412_vm0, %v2361_v57 }
 0x7d7   : > { %v2921_v52 = vpop.f32.mrb[14].mxu1 }
 0x7d8   : > { %v2467_v59 = vadd.f32 %v2921_v52, %v2690_v44  ;;  %v2461_v61 = vpop.f32.mrb[15].mxu1 }
 0x7d9   : > { %v2462_v62 = vadd.f32 %v2690_v44, %v2461_v61 }
 0x7da   : > { %2501 = vst.msk [vmem:[%s400_s18 + $0x8] sm:$0xff] %vm412_vm0, %v2467_v59 }
 0x7db   : > { %2500 = vst.msk [vmem:[%s400_s18] sm:$0xff] %vm412_vm0, %v2462_v62 }
 0x7dd   : > { %v2924_v15 = vpop.f32.mrb[16].mxu1 }
 0x7de   : > { %v2477_v3 = vadd.f32 %v2924_v15, %v2690_v44  ;;  %v2471_v5 = vpop.f32.mrb[17].mxu1 }
 0x7df   : > { %v2472_v6 = vadd.f32 %v2690_v44, %v2471_v5 }
 0x7e0   : > { %2503 = vst.msk [vmem:[%s400_s18 + $0x18] sm:$0xff] %vm412_vm0, %v2477_v3 }
 0x7e1   : > { %2502 = vst.msk [vmem:[%s400_s18 + $0x10] sm:$0xff] %vm412_vm0, %v2472_v6  ;;  %v2927_v8 = vpop.f32.mrb[18].mxu1 }
 0x7e2   : > { %v2487_v9 = vadd.f32 %v2927_v8, %v2690_v44  ;;  %v2481_v12 = vpop.f32.mrb[19].mxu1 }
 0x7e3   : > { %v2482_v14 = vadd.f32 %v2690_v44, %v2481_v12 }
 0x7e4   : > { %2505 = vst.msk [vmem:[%s400_s18 + $0x28] sm:$0xff] %vm412_vm0, %v2487_v9 }
 0x7e5   : > { %2504 = vst.msk [vmem:[%s400_s18 + $0x20] sm:$0xff] %vm412_vm0, %v2482_v14  ;;  %v2930_v16 = vpop.f32.mrb[20].mxu1 }
 0x7e6   : > { %v2497_v55 = vadd.f32 %v2930_v16, %v2690_v44  ;;  %v2491_v58 = vpop.f32.mrb[21].mxu1 }
 0x7e7   : > { %v2492_v17 = vadd.f32 %v2690_v44, %v2491_v58 }
 0x7e8   : > { %2507 = vst.msk [vmem:[%s400_s18 + $0x38] sm:$0xff] %vm412_vm0, %v2497_v55 }
 0x7e9   : > { %2506 = vst.msk [vmem:[%s400_s18 + $0x30] sm:$0xff] %vm412_vm0, %v2492_v17 }
 0x7ea PF: > { %s19_s11 = sadd.s32 1, %s3231_s11   ;;  %s3751_s30 = smov %s3227_s10 }
 0x7eb   : > { %p16_p5 = scmp.ge.s32.totalorder %s19_s11, 4   ;;  %s3752_s10 = smov %s3754_s12 }
 0x7ed   :  { %18 = sbr.rel (!%p16_p5) target bundleno = 2 (0x2), region = 90 }

// kernel: swin_forward.13
= control target key start
LH: loop header
LB: loop body
LE: loop exit
PB: predicated region body
PF: predicated region fallthrough
CT: control target
= control target key end

     0   :  { %vm44_vm0 = vcmask 130048   ;;  %vm947_vm4 = vcmask 523264   ;;  %s2367_s0 = inlined_call_operand.vmem [shape: f32[128,16], index: 0, kind: input, shape index: {}]   ;;  %s2368_s3 = inlined_call_operand.vmem [shape: f32[16,64], index: 3, kind: input, shape index: {}]   ;;  %s2369_s1 = inlined_call_operand.vmem [shape: f32[1,16], index: 1, kind: input, shape index: {}]   ;;  %s2370_s2 = inlined_call_operand.vmem [shape: f32[1,16], index: 2, kind: input, shape index: {}]   ;;  %s2371_s5 = inlined_call_operand.vmem [shape: f32[64,16], index: 5, kind: input, shape index: {}]   ;;  %s2372_s4 = inlined_call_operand.vmem [shape: f32[1,64], index: 4, kind: input, shape index: {}]   ;;  %s2373_s6 = inlined_call_operand.vmem [shape: f32[1,16], index: 6, kind: input, shape index: {}]   ;;  %s2374_s7 = inlined_call_operand.vmem [shape: f32[128,16], index: 7, kind: output, shape index: {}]  }
   0x1   :  { %v26_v0 = vld [vmem:[%s2367_s0] sm:$0xff]  ;;  %v28_v1 = vld [vmem:[%s2367_s0 + $0x10] sm:$0xff]  ;;  %v27_v2 = vld [vmem:[%s2367_s0 + $0x8] sm:$0xff] }
   0x2   :  { %v45_v3 = vsel %vm44_vm0, %v26_v0, 0.0  ;;  %v51_v4 = vsel %vm44_vm0, %v28_v1, 0.0  ;;  %v29_v5 = vld [vmem:[%s2367_s0 + $0x18] sm:$0xff]  ;;  %v48_v6 = vsel %vm44_vm0, %v27_v2, 0.0  ;;  %v30_v8 = vld [vmem:[%s2367_s0 + $0x20] sm:$0xff]  ;;  %v31_v9 = vld [vmem:[%s2367_s0 + $0x28] sm:$0xff] }
   0x3   :  { %46 = vadd.xlane.f32.xlu0 %v45_v3  ;;  %52 = vadd.xlane.f32.xlu1 %v51_v4  ;;  %v54_v7 = vsel %vm44_vm0, %v29_v5, 0.0  ;;  %v57_v10 = vsel %vm44_vm0, %v30_v8, 0.0  ;;  %v60_v11 = vsel %vm44_vm0, %v31_v9, 0.0  ;;  %v1532_v12 = vld [vmem:[%s2367_s0 + $0x30] sm:$0xff]  ;;  %v1537_v13 = vld [vmem:[%s2367_s0 + $0x38] sm:$0xff]  ;;  %v1546_v16 = vld [vmem:[%s2367_s0 + $0x40] sm:$0xff] }
   0x4   :  { %v63_v14 = vsel %vm44_vm0, %v1532_v12, 0.0  ;;  %v66_v15 = vsel %vm44_vm0, %v1537_v13, 0.0  ;;  %v1551_v17 = vld [vmem:[%s2367_s0 + $0x48] sm:$0xff]  ;;  %v69_v18 = vsel %vm44_vm0, %v1546_v16, 0.0  ;;  %v1560_v20 = vld [vmem:[%s2367_s0 + $0x50] sm:$0xff]  ;;  %v1565_v21 = vld [vmem:[%s2367_s0 + $0x58] sm:$0xff] }
   0x5   :  { %v72_v19 = vsel %vm44_vm0, %v1551_v17, 0.0  ;;  %v75_v22 = vsel %vm44_vm0, %v1560_v20, 0.0  ;;  %v78_v23 = vsel %vm44_vm0, %v1565_v21, 0.0  ;;  %v1574_v24 = vld [vmem:[%s2367_s0 + $0x60] sm:$0xff]  ;;  %v1579_v25 = vld [vmem:[%s2367_s0 + $0x68] sm:$0xff]  ;;  %v1588_v28 = vld [vmem:[%s2367_s0 + $0x70] sm:$0xff] }
   0x6   :  { %v81_v26 = vsel %vm44_vm0, %v1574_v24, 0.0  ;;  %v84_v27 = vsel %vm44_vm0, %v1579_v25, 0.0  ;;  %v1593_v29 = vld [vmem:[%s2367_s0 + $0x78] sm:$0xff]  ;;  %v87_v30 = vsel %vm44_vm0, %v1588_v28, 0.0 }
   0x7   :  { %49 = vadd.xlane.f32.xlu0 %v48_v6  ;;  %55 = vadd.xlane.f32.xlu1 %v54_v7  ;;  %v90_v31 = vsel %vm44_vm0, %v1593_v29, 0.0 }
   0xb   :  { %58 = vadd.xlane.f32.xlu0 %v57_v10  ;;  %61 = vadd.xlane.f32.xlu1 %v60_v11 }
   0xf   :  { %64 = vadd.xlane.f32.xlu0 %v63_v14  ;;  %67 = vadd.xlane.f32.xlu1 %v66_v15 }
  0x13   :  { %70 = vadd.xlane.f32.xlu0 %v69_v18  ;;  %73 = vadd.xlane.f32.xlu1 %v72_v19 }
  0x17   :  { %76 = vadd.xlane.f32.xlu0 %v75_v22  ;;  %79 = vadd.xlane.f32.xlu1 %v78_v23 }
  0x1b   :  { %82 = vadd.xlane.f32.xlu0 %v81_v26  ;;  %85 = vadd.xlane.f32.xlu1 %v84_v27 }
  0x1f   :  { %88 = vadd.xlane.f32.xlu0 %v87_v30  ;;  %91 = vadd.xlane.f32.xlu1 %v90_v31 }
  0x90   :  { %v47_v32 = vpop.xlane.xlu0 %46  ;;  %v53_v33 = vpop.xlane.xlu1 %52 }
  0x91   :  { %v94_v34 = vmul.f32 0.0625, %v47_v32  ;;  %v96_v35 = vmul.f32 0.0625, %v53_v33 }
  0x93   :  { %v1599_v36 = vsub.f32 %v26_v0, %v94_v34  ;;  %v1601_v37 = vsub.f32 %v28_v1, %v96_v35 }
  0x94   :  { %v50_v38 = vpop.xlane.xlu0 %49  ;;  %v56_v39 = vpop.xlane.xlu1 %55 }
  0x95   :  { %v95_v40 = vmul.f32 0.0625, %v50_v38  ;;  %v97_v41 = vmul.f32 0.0625, %v56_v39  ;;  %v126_v42 = vmul.f32 %v1599_v36, %v1599_v36  ;;  %v128_v43 = vmul.f32 %v1601_v37, %v1601_v37 }
  0x97   :  { %v1607_v44 = vsub.f32 %v27_v2, %v95_v40  ;;  %v1609_v45 = vsub.f32 %v29_v5, %v97_v41  ;;  %v142_v46 = vsel %vm44_vm0, %v126_v42, 0.0  ;;  %v148_v49 = vsel %vm44_vm0, %v128_v43, 0.0 }
  0x98   :  { %143 = vadd.xlane.f32.xlu0 %v142_v46  ;;  %v59_v47 = vpop.xlane.xlu0 %58  ;;  %v62_v48 = vpop.xlane.xlu1 %61 }
  0x99   :  { %v98_v50 = vmul.f32 0.0625, %v59_v47  ;;  %v99_v51 = vmul.f32 0.0625, %v62_v48  ;;  %v127_v52 = vmul.f32 %v1607_v44, %v1607_v44  ;;  %v129_v53 = vmul.f32 %v1609_v45, %v1609_v45 }
  0x9b   :  { %v1617_v54 = vsub.f32 %v30_v8, %v98_v50  ;;  %v1619_v55 = vsub.f32 %v31_v9, %v99_v51  ;;  %v145_v56 = vsel %vm44_vm0, %v127_v52, 0.0  ;;  %v151_v59 = vsel %vm44_vm0, %v129_v53, 0.0  ;;  %v299_v53 = vld [vmem:[%s2368_s3 + $0x8] sm:$0xff] }
  0x9c   :  { %149 = vadd.xlane.f32.xlu0 %v148_v49  ;;  %146 = vadd.xlane.f32.xlu1 %v145_v56  ;;  %v65_v57 = vpop.xlane.xlu0 %64  ;;  %v68_v58 = vpop.xlane.xlu1 %67 }
  0x9d   :  { %v100_v60 = vmul.f32 0.0625, %v65_v57  ;;  %v101_v61 = vmul.f32 0.0625, %v68_v58  ;;  %v130_v62 = vmul.f32 %v1617_v54, %v1617_v54  ;;  %v131_v63 = vmul.f32 %v1619_v55, %v1619_v55 }
  0x9f   :  { %v1628_v0 = vsub.f32 %v1532_v12, %v100_v60  ;;  %v1631_v1 = vsub.f32 %v1537_v13, %v101_v61  ;;  %v154_v2 = vsel %vm44_vm0, %v130_v62, 0.0  ;;  %v157_v5 = vsel %vm44_vm0, %v131_v63, 0.0 }
  0xa0   :  { %152 = vadd.xlane.f32.xlu1 %v151_v59  ;;  %155 = vadd.xlane.f32.xlu0 %v154_v2  ;;  %v71_v3 = vpop.xlane.xlu0 %70  ;;  %v74_v4 = vpop.xlane.xlu1 %73 }
  0xa1   :  { %v102_v6 = vmul.f32 0.0625, %v71_v3  ;;  %v103_v7 = vmul.f32 0.0625, %v74_v4  ;;  %v132_v8 = vmul.f32 %v1628_v0, %v1628_v0  ;;  %v133_v9 = vmul.f32 %v1631_v1, %v1631_v1 }
  0xa3   :  { %v1640_v10 = vsub.f32 %v1546_v16, %v102_v6  ;;  %v1643_v11 = vsub.f32 %v1551_v17, %v103_v7  ;;  %v160_v12 = vsel %vm44_vm0, %v132_v8, 0.0  ;;  %v163_v15 = vsel %vm44_vm0, %v133_v9, 0.0 }
  0xa4   :  { %158 = vadd.xlane.f32.xlu1 %v157_v5  ;;  %161 = vadd.xlane.f32.xlu0 %v160_v12  ;;  %v77_v13 = vpop.xlane.xlu0 %76  ;;  %v80_v14 = vpop.xlane.xlu1 %79 }
  0xa5   :  { %v104_v18 = vmul.f32 0.0625, %v77_v13  ;;  %v105_v19 = vmul.f32 0.0625, %v80_v14  ;;  %v134_v22 = vmul.f32 %v1640_v10, %v1640_v10  ;;  %v135_v16 = vmul.f32 %v1643_v11, %v1643_v11 }
  0xa7   :  { %v1652_v23 = vsub.f32 %v1560_v20, %v104_v18  ;;  %v1655_v17 = vsub.f32 %v1565_v21, %v105_v19  ;;  %v166_v26 = vsel %vm44_vm0, %v134_v22, 0.0  ;;  %v169_v31 = vsel %vm44_vm0, %v135_v16, 0.0  ;;  %v1698_v16 = vld [vmem:[%s2369_s1] ss:$0 sm:$0xff] }
  0xa8   :  { %164 = vadd.xlane.f32.xlu1 %v163_v15  ;;  %167 = vadd.xlane.f32.xlu0 %v166_v26  ;;  %v83_v27 = vpop.xlane.xlu0 %82  ;;  %v86_v30 = vpop.xlane.xlu1 %85 }
  0xa9   :  { %v106_v32 = vmul.f32 0.0625, %v83_v27  ;;  %v107_v33 = vmul.f32 0.0625, %v86_v30  ;;  %v136_v34 = vmul.f32 %v1652_v23, %v1652_v23  ;;  %v137_v20 = vmul.f32 %v1655_v17, %v1655_v17 }
  0xab   :  { %v1664_v35 = vsub.f32 %v1574_v24, %v106_v32  ;;  %v1667_v21 = vsub.f32 %v1579_v25, %v107_v33  ;;  %v172_v38 = vsel %vm44_vm0, %v136_v34, 0.0  ;;  %v175_v41 = vsel %vm44_vm0, %v137_v20, 0.0  ;;  %v1704_v33 = vld [vmem:[%s2370_s2] ss:$0 sm:$0xff] }
  0xac   :  { %170 = vadd.xlane.f32.xlu1 %v169_v31  ;;  %173 = vadd.xlane.f32.xlu0 %v172_v38  ;;  %v89_v39 = vpop.xlane.xlu0 %88  ;;  %v92_v40 = vpop.xlane.xlu1 %91 }
  0xad   :  { %v108_v42 = vmul.f32 0.0625, %v89_v39  ;;  %v109_v43 = vmul.f32 0.0625, %v92_v40  ;;  %v138_v46 = vmul.f32 %v1664_v35, %v1664_v35  ;;  %v139_v24 = vmul.f32 %v1667_v21, %v1667_v21 }
  0xaf   :  { %v1676_v47 = vsub.f32 %v1588_v28, %v108_v42  ;;  %v1679_v25 = vsub.f32 %v1593_v29, %v109_v43  ;;  %v178_v48 = vsel %vm44_vm0, %v138_v46, 0.0  ;;  %v181_v49 = vsel %vm44_vm0, %v139_v24, 0.0  ;;  %v298_v29 = vld [vmem:[%s2368_s3] sm:$0xff] }
  0xb0   :  { %176 = vadd.xlane.f32.xlu1 %v175_v41  ;;  %179 = vadd.xlane.f32.xlu0 %v178_v48  ;;  %v1323_v56 = vpack.c.bf16 %v299_v53, %v298_v29 }
  0xb1   :  { %v140_v50 = vmul.f32 %v1676_v47, %v1676_v47  ;;  %v141_v51 = vmul.f32 %v1679_v25, %v1679_v25 }
  0xb2   :  { %1324 = vmatprep.subr.bf16.mxu0 %v1323_v56 }
  0xb3   :  { %v184_v52 = vsel %vm44_vm0, %v140_v50, 0.0  ;;  %v187_v28 = vsel %vm44_vm0, %v141_v51, 0.0  ;;  %1326 = vmatpush3.bf16.msra.mxu0 %v1323_v56 }
  0xb4   :  { %182 = vadd.xlane.f32.xlu1 %v181_v49  ;;  %185 = vadd.xlane.f32.xlu0 %v184_v52 }
  0xb8   :  { %188 = vadd.xlane.f32.xlu1 %v187_v28 }
 0x125   :  { %v144_v57 = vpop.xlane.xlu0 %143 }
 0x126   :  { %v190_v58 = vmul.f32 0.0625, %v144_v57 }
 0x128   :  { %v206_v59 = vadd.f32 1e-05, %v190_v58 }
 0x129   :  { %v147_v60 = vpop.xlane.xlu1 %146  ;;  %v150_v61 = vpop.xlane.xlu0 %149 }
 0x12a   :  { %1352 = vrsqrt.f32 %v206_v59  ;;  %v191_v62 = vmul.f32 0.0625, %v147_v60  ;;  %v192_v63 = vmul.f32 0.0625, %v150_v61 }
 0x12c   :  { %v207_v2 = vadd.f32 1e-05, %v191_v62  ;;  %v208_v3 = vadd.f32 1e-05, %v192_v63 }
 0x12d   :  { %v153_v4 = vpop.xlane.xlu1 %152  ;;  %v156_v5 = vpop.xlane.xlu0 %155 }
 0x12e   :  { %1354 = vrsqrt.f32 %v207_v2  ;;  %v193_v6 = vmul.f32 0.0625, %v153_v4  ;;  %v194_v7 = vmul.f32 0.0625, %v156_v5 }
 0x12f   :  { %1356 = vrsqrt.f32 %v208_v3 }
 0x130   :  { %v209_v8 = vadd.f32 1e-05, %v193_v6  ;;  %v210_v9 = vadd.f32 1e-05, %v194_v7 }
 0x131   :  { %v159_v12 = vpop.xlane.xlu1 %158  ;;  %v162_v13 = vpop.xlane.xlu0 %161 }
 0x132   :  { %1358 = vrsqrt.f32 %v209_v8  ;;  %v195_v14 = vmul.f32 0.0625, %v159_v12  ;;  %v196_v15 = vmul.f32 0.0625, %v162_v13 }
 0x133   :  { %1360 = vrsqrt.f32 %v210_v9 }
 0x134   :  { %v1353_v18 = vpop.eup %1352  ;;  %v211_v19 = vadd.f32 1e-05, %v195_v14  ;;  %v212_v22 = vadd.f32 1e-05, %v196_v15 }
 0x135   :  { %v165_v26 = vpop.xlane.xlu1 %164  ;;  %v168_v27 = vpop.xlane.xlu0 %167  ;;  %v238_v30 = vmul.f32 %v1353_v18, %v1599_v36 }
 0x136   :  { %1362 = vrsqrt.f32 %v211_v19  ;;  %v197_v31 = vmul.f32 0.0625, %v165_v26  ;;  %v198_v32 = vmul.f32 0.0625, %v168_v27 }
 0x137   :  { %1364 = vrsqrt.f32 %v212_v22  ;;  %v260_v34 = vmul.f32 %v1698_v16, %v238_v30 }
 0x138   :  { %v1355_v20 = vpop.eup %1354  ;;  %v213_v38 = vadd.f32 1e-05, %v197_v31  ;;  %v214_v39 = vadd.f32 1e-05, %v198_v32 }
 0x139   :  { %v1357_v40 = vpop.eup %1356  ;;  %v171_v41 = vpop.xlane.xlu1 %170  ;;  %v282_v43 = vadd.f32 %v1704_v33, %v260_v34  ;;  %v239_v36 = vmul.f32 %v1355_v20, %v1607_v44 }
 0x13a   :  { %v174_v42 = vpop.xlane.xlu0 %173  ;;  %1366 = vrsqrt.f32 %v213_v38  ;;  %v199_v46 = vmul.f32 0.0625, %v171_v41  ;;  %v240_v48 = vmul.f32 %v1357_v40, %v1601_v37 }
 0x13b   :  { %v200_v24 = vmul.f32 0.0625, %v174_v42  ;;  %1368 = vrsqrt.f32 %v214_v39  ;;  %1259 = vmatprep.mubr.msk.f32.mxu0 %vm44_vm0, %v282_v43  ;;  %v261_v49 = vmul.f32 %v1698_v16, %v239_v36 }
 0x13c   :  { %v1359_v50 = vpop.eup %1358  ;;  %v215_v51 = vadd.f32 1e-05, %v199_v46  ;;  %v262_v28 = vmul.f32 %v1698_v16, %v240_v48 }
 0x13d   :  { %v216_v52 = vadd.f32 1e-05, %v200_v24  ;;  %v1361_v29 = vpop.eup %1360  ;;  %v177_v53 = vpop.xlane.xlu1 %176  ;;  %v283_v44 = vadd.f32 %v1704_v33, %v261_v49  ;;  %v241_v57 = vmul.f32 %v1359_v50, %v1609_v45 }
 0x13e   :  { %v180_v56 = vpop.xlane.xlu0 %179  ;;  %1370 = vrsqrt.f32 %v215_v51  ;;  %v201_v58 = vmul.f32 0.0625, %v177_v53  ;;  %v284_v59 = vadd.f32 %v1704_v33, %v262_v28  ;;  %v242_v61 = vmul.f32 %v1361_v29, %v1617_v54 }
 0x13f   :  { %v202_v37 = vmul.f32 0.0625, %v180_v56  ;;  %1372 = vrsqrt.f32 %v216_v52  ;;  %1260 = vmatmul.mubr.msk.f32.vlgmr.msra.gmra.mrb[0].mxu0 %vm44_vm0, %v283_v44  ;;  %v263_v60 = vmul.f32 %v1698_v16, %v241_v57 }
 0x140   :  { %v1363_v62 = vpop.eup %1362  ;;  %v217_v63 = vadd.f32 1e-05, %v201_v58  ;;  %1262 = vmatprep.mubr.msk.f32.mxu0 %vm44_vm0, %v284_v59  ;;  %v264_v6 = vmul.f32 %v1698_v16, %v242_v61  ;;  %v932_v59 = vld [vmem:[%s2371_s5] sm:$0xff] }
 0x141   :  { %v218_v2 = vadd.f32 1e-05, %v202_v37  ;;  %v1365_v3 = vpop.eup %1364  ;;  %v183_v4 = vpop.xlane.xlu1 %182  ;;  %v285_v5 = vadd.f32 %v1704_v33, %v263_v60  ;;  %v243_v7 = vmul.f32 %v1363_v62, %v1619_v55  ;;  %v936_v62 = vld [vmem:[%s2371_s5 + $0x20] sm:$0xff] }
 0x142   :  { %v186_v45 = vpop.xlane.xlu0 %185  ;;  %1374 = vrsqrt.f32 %v217_v63  ;;  %v203_v8 = vmul.f32 0.0625, %v183_v4  ;;  %v244_v12 = vmul.f32 %v1365_v3, %v1628_v0  ;;  %v286_v54 = vadd.f32 %v1704_v33, %v264_v6  ;;  %v937_v63 = vld [vmem:[%s2371_s5 + $0x28] sm:$0xff]  ;;  %v938_v3 = vld [vmem:[%s2371_s5 + $0x30] sm:$0xff]  ;;  %v939_v4 = vld [vmem:[%s2371_s5 + $0x38] sm:$0xff] }
 0x143   :  { %v204_v9 = vmul.f32 0.0625, %v186_v45  ;;  %1376 = vrsqrt.f32 %v218_v2  ;;  %1263 = vmatmul.mubr.msk.f32.gmra.mrb[2].mxu0 %vm44_vm0, %v285_v5  ;;  %v265_v13 = vmul.f32 %v1698_v16, %v243_v7  ;;  %v1335_v2 = vpack.c.bf16 %v937_v63, %v936_v62  ;;  %v1796_v5 = vld [vmem:[%s2372_s4] ss:$0 sm:$0xff] }
 0x144   :  { %v1367_v14 = vpop.eup %1366  ;;  %v219_v15 = vadd.f32 1e-05, %v203_v8  ;;  %v266_v19 = vmul.f32 %v1698_v16, %v244_v12  ;;  %1265 = vmatprep.mubr.msk.f32.mxu0 %vm44_vm0, %v286_v54  ;;  %v1339_v45 = vpack.c.bf16 %v939_v4, %v938_v3 }
 0x145   :  { %v220_v18 = vadd.f32 1e-05, %v204_v9  ;;  %v1369_v22 = vpop.eup %1368  ;;  %v189_v55 = vpop.xlane.xlu1 %188  ;;  %v287_v26 = vadd.f32 %v1704_v33, %v265_v13  ;;  %v245_v0 = vmul.f32 %v1367_v14, %v1631_v1 }
 0x146   :  { %1378 = vrsqrt.f32 %v219_v15  ;;  %v205_v27 = vmul.f32 0.0625, %v189_v55  ;;  %v288_v30 = vadd.f32 %v1704_v33, %v266_v19  ;;  %v246_v31 = vmul.f32 %v1369_v22, %v1640_v10 }
 0x147   :  { %1380 = vrsqrt.f32 %v220_v18  ;;  %1266 = vmatmul.mubr.msk.f32.gmra.mrb[4].mxu0 %vm44_vm0, %v287_v26  ;;  %v267_v32 = vmul.f32 %v1698_v16, %v245_v0 }
 0x148   :  { %v1371_v34 = vpop.eup %1370  ;;  %v221_v20 = vadd.f32 1e-05, %v205_v27  ;;  %1268 = vmatprep.mubr.msk.f32.mxu0 %vm44_vm0, %v288_v30  ;;  %v268_v38 = vmul.f32 %v1698_v16, %v246_v31 }
 0x149   :  { %v1373_v39 = vpop.eup %1372  ;;  %v289_v1 = vadd.f32 %v1704_v33, %v267_v32  ;;  %v247_v40 = vmul.f32 %v1371_v34, %v1643_v11 }
 0x14a   :  { %1382 = vrsqrt.f32 %v221_v20  ;;  %v290_v41 = vadd.f32 %v1704_v33, %v268_v38  ;;  %v248_v10 = vmul.f32 %v1373_v39, %v1652_v23 }
 0x14b   :  { %1269 = vmatmul.mubr.msk.f32.gmra.mrb[6].mxu0 %vm44_vm0, %v289_v1  ;;  %v269_v42 = vmul.f32 %v1698_v16, %v247_v40 }
 0x14c   :  { %v1375_v43 = vpop.eup %1374  ;;  %1271 = vmatprep.mubr.msk.f32.mxu0 %vm44_vm0, %v290_v41  ;;  %v270_v36 = vmul.f32 %v1698_v16, %v248_v10 }
 0x14d   :  { %v1377_v46 = vpop.eup %1376  ;;  %v291_v24 = vadd.f32 %v1704_v33, %v269_v42  ;;  %v249_v48 = vmul.f32 %v1375_v43, %v1655_v17 }
 0x14e   :  { %v292_v11 = vadd.f32 %v1704_v33, %v270_v36  ;;  %v250_v49 = vmul.f32 %v1377_v46, %v1664_v35 }
 0x14f   :  { %1272 = vmatmul.mubr.msk.f32.gmra.mrb[8].mxu0 %vm44_vm0, %v291_v24  ;;  %v271_v23 = vmul.f32 %v1698_v16, %v249_v48 }
 0x150   :  { %v1379_v50 = vpop.eup %1378  ;;  %1274 = vmatprep.mubr.msk.f32.mxu0 %vm44_vm0, %v292_v11  ;;  %v272_v51 = vmul.f32 %v1698_v16, %v250_v49 }
 0x151   :  { %v1381_v52 = vpop.eup %1380  ;;  %v293_v28 = vadd.f32 %v1704_v33, %v271_v23  ;;  %v251_v29 = vmul.f32 %v1379_v50, %v1667_v21 }
 0x152   :  { %v294_v17 = vadd.f32 %v1704_v33, %v272_v51  ;;  %v252_v53 = vmul.f32 %v1381_v52, %v1676_v47 }
 0x153   :  { %1275 = vmatmul.mubr.msk.f32.gmra.mrb[10].mxu0 %vm44_vm0, %v293_v28  ;;  %v273_v35 = vmul.f32 %v1698_v16, %v251_v29 }
 0x154   :  { %v1383_v56 = vpop.eup %1382  ;;  %1277 = vmatprep.mubr.msk.f32.mxu0 %vm44_vm0, %v294_v17  ;;  %v274_v44 = vmul.f32 %v1698_v16, %v252_v53 }
 0x155   :  { %v295_v57 = vadd.f32 %v1704_v33, %v273_v35  ;;  %v253_v58 = vmul.f32 %v1383_v56, %v1679_v25  ;;  %v933_v25 = vld [vmem:[%s2371_s5 + $0x8] sm:$0xff] }
 0x156   :  { %v296_v37 = vadd.f32 %v1704_v33, %v274_v44  ;;  %v1327_v60 = vpack.c.bf16 %v933_v25, %v932_v59 }
 0x157   :  { %1278 = vmatmul.mubr.msk.f32.gmra.mrb[12].mxu0 %vm44_vm0, %v295_v57  ;;  %v275_v21 = vmul.f32 %v1698_v16, %v253_v58  ;;  %v934_v16 = vld [vmem:[%s2371_s5 + $0x10] sm:$0xff] }
 0x158   :  { %1280 = vmatprep.mubr.msk.f32.mxu0 %vm44_vm0, %v296_v37  ;;  %1328 = vmatprep.subr.bf16.mxu0 %v1327_v60 }
 0x159   :  { %v297_v47 = vadd.f32 %v1704_v33, %v275_v21  ;;  %1343 = vmatprep.subr.bf16.mxu1 %v1327_v60  ;;  %1330 = vmatpush3.bf16.msra.mxu0 %v1327_v60  ;;  %v935_v33 = vld [vmem:[%s2371_s5 + $0x18] sm:$0xff] }
 0x15a   :  { %1347 = vmatpush3.bf16.msra.mxu1 %v1327_v60  ;;  %v1331_v61 = vpack.c.bf16 %v935_v33, %v934_v16 }
 0x15b   :  { %1281 = vmatmul.mubr.msk.f32.gmra.mrb[14].mxu0 %vm44_vm0, %v297_v47 }
 0x15c   :  { %1332 = vmatprep.subr.bf16.mxu0 %v1331_v61  ;;  %1344 = vmatprep.subr.bf16.mxu1 %v1331_v61 }
 0x15d   :  { %1334 = vmatpush3.bf16.msra.mxu0 %v1331_v61 }
 0x15e   :  { %1348 = vmatpush3.bf16.msra.mxu1 %v1331_v61  ;;  %1336 = vmatprep.subr.bf16.mxu0 %v1335_v2 }
 0x15f   :  { %1345 = vmatprep.subr.bf16.mxu1 %v1335_v2 }
 0x161   :  { %1338 = vmatpush3.bf16.msra.mxu0 %v1335_v2 }
 0x162   :  { %1349 = vmatpush3.bf16.msra.mxu1 %v1335_v2  ;;  %1340 = vmatprep.subr.bf16.mxu0 %v1339_v45 }
 0x163   :  { %1346 = vmatprep.subr.bf16.mxu1 %v1339_v45 }
 0x165   :  { %1342 = vmatpush3.bf16.msra.mxu0 %v1339_v45 }
 0x166   :  { %1350 = vmatpush3.bf16.msra.mxu1 %v1339_v45 }
 0x212   :  { %v1261_v6 = vpop.f32.mrb[0].mxu0 }
 0x213   :  { %v1799_v7 = vadd.f32 %v1261_v6, %v1796_v5  ;;  %v421_v8 = vpop.f32.mrb[1].mxu0 }
 0x214   :  { %v1802_v9 = vadd.f32 %v1796_v5, %v421_v8 }
 0x215   :  { %v1805_v12 = vmul.f32 0.70710677, %v1799_v7 }
 0x216   :  { %v1808_v54 = vmul.f32 0.70710677, %v1802_v9  ;;  %v1264_v13 = vpop.f32.mrb[2].mxu0 }
 0x217   :  { %v565_v14 = vand.u32 2147483647, %v1805_v12  ;;  %v1812_v15 = vadd.f32 %v1264_v13, %v1796_v5  ;;  %v1814_v18 = vpop.f32.mrb[3].mxu0  ;;  %vm533_vm1 = vcmp.lt.f32.partialorder %v1805_v12, 0.0 }
 0x218   :  { %v564_v19 = vand.u32 2147483647, %v1808_v54  ;;  %vm532_vm2 = vcmp.lt.f32.partialorder %v1808_v54, 0.0 }
 0x219   :  { %v581_v22 = vmul.f32 0.3275911, %v565_v14  ;;  %v1818_v26 = vmul.f32 0.70710677, %v1812_v15  ;;  %v789_v41 = vsub.f32 0.0, %v565_v14 }
 0x21a   :  { %v580_v55 = vmul.f32 0.3275911, %v564_v19  ;;  %v1267_v27 = vpop.f32.mrb[4].mxu0  ;;  %v788_v24 = vsub.f32 0.0, %v564_v19 }
 0x21b   :  { %v597_v0 = vadd.f32 1.0, %v581_v22  ;;  %v1821_v31 = vand.u32 2147483647, %v1818_v26  ;;  %v441_v32 = vpop.f32.mrb[5].mxu0  ;;  %v1825_v38 = vadd.f32 %v1267_v27, %v1796_v5  ;;  %v805_v11 = vmul.f32 %v789_v41, %v565_v14 }
 0x21c   :  { %v596_v30 = vadd.f32 1.0, %v580_v55  ;;  %v1828_v39 = vadd.f32 %v1796_v5, %v441_v32  ;;  %v804_v53 = vmul.f32 %v788_v24, %v564_v19  ;;  %v432_v24 = vadd.f32 %v1796_v5, %v1814_v18 }
 0x21d   :  { %1384 = vrcp.f32 %v597_v0  ;;  %v583_v34 = vmul.f32 0.3275911, %v1821_v31  ;;  %v1831_v10 = vmul.f32 0.70710677, %v1825_v38  ;;  %v822_v44 = vmul.f32 1.442695, %v805_v11 }
 0x21e   :  { %1386 = vrcp.f32 %v596_v30  ;;  %v1270_v20 = vpop.f32.mrb[6].mxu0  ;;  %v1834_v42 = vmul.f32 0.70710677, %v1828_v39  ;;  %v820_v33 = vmul.f32 1.442695, %v804_v53  ;;  %vm535_vm3 = vcmp.lt.f32.partialorder %v1818_v26, 0.0 }
 0x21f   :  { %v451_v1 = vpop.f32.mrb[7].mxu0  ;;  %v599_v40 = vadd.f32 1.0, %v583_v34  ;;  %v1837_v36 = vand.u32 2147483647, %v1831_v10  ;;  %v1846_v23 = vadd.f32 %v1270_v20, %v1796_v5  ;;  %vm537_vm5 = vcmp.lt.f32.partialorder %v1831_v10, 0.0 }
 0x220   :  { %v1842_v48 = vand.u32 2147483647, %v1834_v42  ;;  %v1854_v56 = vadd.f32 %v1796_v5, %v451_v1  ;;  %vm536_vm6 = vcmp.lt.f32.partialorder %v1834_v42, 0.0 }
 0x221   :  { %1388 = vrcp.f32 %v599_v40  ;;  %v585_v49 = vmul.f32 0.3275911, %v1837_v36  ;;  %v1857_v37 = vmul.f32 0.70710677, %v1846_v23 }
 0x222   :  { %v1273_v43 = vpop.f32.mrb[8].mxu0  ;;  %v584_v52 = vmul.f32 0.3275911, %v1842_v48  ;;  %v1866_v61 = vmul.f32 0.70710677, %v1854_v56 }
 0x223   :  { %v1839_v46 = vpop.f32.mrb[9].mxu0  ;;  %v601_v35 = vadd.f32 1.0, %v585_v49  ;;  %v1870_v3 = vand.u32 2147483647, %v1857_v37  ;;  %vm539_vm7 = vcmp.lt.f32.partialorder %v1857_v37, 0.0 }
 0x224   :  { %v600_v59 = vadd.f32 1.0, %v584_v52  ;;  %v1875_v8 = vand.u32 2147483647, %v1866_v61  ;;  %vm538_vm8 = vcmp.lt.f32.partialorder %v1866_v61, 0.0 }
 0x225   :  { %1390 = vrcp.f32 %v601_v35  ;;  %v587_v55 = vmul.f32 0.3275911, %v1870_v3 }
 0x226   :  { %v1848_v50 = vpop.f32.mrb[10].mxu0  ;;  %1392 = vpow2.f32 %v822_v44  ;;  %v586_v30 = vmul.f32 0.3275911, %v1875_v8  ;;  %v1890_v44 = vadd.f32 %v1273_v43, %v1796_v5  ;;  %v1900_v43 = vadd.f32 %v1796_v5, %v1839_v46 }
 0x227   :  { %v1385_v51 = vpop.eup %1384  ;;  %v1851_v28 = vpop.f32.mrb[11].mxu0  ;;  %1394 = vrcp.f32 %v600_v59  ;;  %v603_v40 = vadd.f32 1.0, %v587_v55  ;;  %v1895_v59 = vmul.f32 0.70710677, %v432_v24  ;;  %v794_v37 = vsub.f32 0.0, %v1875_v8 }
 0x228   :  { %v1387_v29 = vpop.eup %1386  ;;  %v645_v17 = vmul.f32 1.0614054, %v1385_v51  ;;  %1396 = vpow2.f32 %v820_v33  ;;  %v602_v52 = vadd.f32 1.0, %v586_v30  ;;  %v2375_v33 = vmov 1.0  }
 0x229   :  { %v644_v57 = vmul.f32 1.0614054, %v1387_v29  ;;  %1398 = vrcp.f32 %v603_v40  ;;  %v549_v12 = vsel %vm533_vm1, -1.0, %v2375_v33  ;;  %v1904_v54 = vmul.f32 0.70710677, %v1890_v44 }
 0x22a   :  { %v661_v58 = vadd.f32 -1.4531521, %v645_v17  ;;  %v1859_v21 = vpop.f32.mrb[12].mxu0  ;;  %1400 = vrcp.f32 %v602_v52  ;;  %v1934_v26 = vsel %vm535_vm3, -1.0, %v2375_v33  ;;  %vm534_vm10 = vcmp.lt.f32.partialorder %v1895_v59, 0.0 }
 0x22b   :  { %v660_v47 = vadd.f32 -1.4531521, %v644_v57  ;;  %v1861_v25 = vpop.f32.mrb[13].mxu0  ;;  %v1863_v60 = vpop.eup %1388  ;;  %vm541_vm11 = vcmp.lt.f32.partialorder %v1904_v54, 0.0 }
 0x22c   :  { %v677_v16 = vmul.f32 %v1385_v51, %v661_v58  ;;  %v647_v2 = vmul.f32 1.0614054, %v1863_v60 }
 0x22d   :  { %v676_v62 = vmul.f32 %v1387_v29, %v660_v47 }
 0x22e   :  { %v693_v63 = vadd.f32 1.4214138, %v677_v16  ;;  %v1872_v45 = vpop.f32.mrb[14].mxu0  ;;  %v663_v22 = vadd.f32 -1.4531521, %v647_v2 }
 0x22f   :  { %v692_v4 = vadd.f32 1.4214138, %v676_v62  ;;  %v1877_v13 = vpop.f32.mrb[15].mxu0  ;;  %v1881_v34 = vpop.eup %1390  ;;  %v2047_v61 = vadd.f32 %v1872_v45, %v1796_v5 }
 0x230   :  { %v709_v6 = vmul.f32 %v1385_v51, %v693_v63  ;;  %v679_v1 = vmul.f32 %v1863_v60, %v663_v22  ;;  %v1393_v11 = vpop.eup %1392  ;;  %v649_v35 = vmul.f32 1.0614054, %v1881_v34  ;;  %v566_v22 = vand.u32 2147483647, %v1895_v59 }
 0x231   :  { %v708_v14 = vmul.f32 %v1387_v29, %v692_v4  ;;  %v1886_v17 = vpop.eup %1394  ;;  %v548_v4 = vsel %vm532_vm2, -1.0, %v2375_v33  ;;  %2383 = vst [vmem:[#allocation4_spill] sm:$0xff] %v2047_v61 }
 0x232   :  { %v725_v19 = vadd.f32 -0.28449672, %v709_v6  ;;  %v1397_v57 = vpop.eup %1396  ;;  %v695_v47 = vadd.f32 1.4214138, %v679_v1  ;;  %v665_v63 = vadd.f32 -1.4531521, %v649_v35 }
 0x233   :  { %v724_v0 = vadd.f32 -0.28449672, %v708_v14  ;;  %v501_v1 = vmul.f32 0.5, %v1799_v7  ;;  %v1923_v52 = vpop.eup %1398  ;;  %v1931_v7 = vadd.f32 %v1848_v50, %v1796_v5 }
 0x234   :  { %v741_v27 = vmul.f32 %v1385_v51, %v725_v19  ;;  %v711_v6 = vmul.f32 %v1863_v60, %v695_v47  ;;  %v1940_v47 = vpop.eup %1400 }
 0x235   :  { %v740_v32 = vmul.f32 %v1387_v29, %v724_v0  ;;  %v1911_v0 = vmul.f32 0.70710677, %v1900_v43  ;;  %2381 = vst [vmem:[#allocation2_spill] sm:$0xff] %v1931_v7 }
 0x236   :  { %v757_v20 = vadd.f32 0.2548296, %v741_v27  ;;  %v500_v27 = vmul.f32 0.5, %v1802_v9 }
 0x237   :  { %v756_v41 = vadd.f32 0.2548296, %v740_v32  ;;  %v681_v32 = vmul.f32 %v1881_v34, %v665_v63  ;;  %v1927_v35 = vand.u32 2147483647, %v1911_v0  ;;  %vm540_vm9 = vcmp.lt.f32.partialorder %v1911_v0, 0.0 }
 0x238   :  { %v773_v49 = vmul.f32 %v1385_v51, %v757_v20  ;;  %v791_v51 = vsub.f32 0.0, %v1821_v31  ;;  %v1916_v20 = vand.u32 2147483647, %v1904_v54 }
 0x239   :  { %v772_v53 = vmul.f32 %v1387_v29, %v756_v41  ;;  %v648_v29 = vmul.f32 1.0614054, %v1886_v17  ;;  %v1921_v41 = vmul.f32 0.5, %v1812_v15  ;;  %v697_v15 = vadd.f32 1.4214138, %v681_v32 }
 0x23a   :  { %v853_v58 = vmul.f32 %v1393_v11, %v773_v49  ;;  %v807_v19 = vmul.f32 %v791_v51, %v1821_v31  ;;  %v727_v31 = vadd.f32 -0.28449672, %v711_v6  ;;  %v790_v49 = vsub.f32 0.0, %v566_v22 }
 0x23b   :  { %v852_v18 = vmul.f32 %v1397_v57, %v772_v53  ;;  %v664_v55 = vadd.f32 -1.4531521, %v648_v29  ;;  %v1936_v57 = vmul.f32 0.5, %v432_v24  ;;  %v582_v51 = vmul.f32 0.3275911, %v566_v22 }
 0x23c   :  { %v869_v16 = vsub.f32 1.0, %v853_v58  ;;  %v826_v11 = vmul.f32 1.442695, %v807_v19  ;;  %v589_v58 = vmul.f32 0.3275911, %v1916_v20  ;;  %v806_v29 = vmul.f32 %v790_v49, %v566_v22 }
 0x23d   :  { %v868_v62 = vsub.f32 1.0, %v852_v18  ;;  %v680_v53 = vmul.f32 %v1886_v17, %v664_v55  ;;  %v743_v18 = vmul.f32 %v1863_v60, %v727_v31  ;;  %v588_v50 = vmul.f32 0.3275911, %v1927_v35 }
 0x23e   :  { %v885_v2 = vmul.f32 %v869_v16, %v549_v12  ;;  %v793_v16 = vsub.f32 0.0, %v1837_v36  ;;  %1402 = vpow2.f32 %v826_v11  ;;  %v651_v24 = vmul.f32 1.0614054, %v1923_v52 }
 0x23f   :  { %v884_v14 = vmul.f32 %v868_v62, %v548_v4  ;;  %v696_v12 = vadd.f32 1.4214138, %v680_v53  ;;  %v792_v62 = vsub.f32 0.0, %v1842_v48  ;;  %v604_v63 = vadd.f32 1.0, %v588_v50 }
 0x240   :  { %v901_v46 = vadd.f32 1.0, %v885_v2  ;;  %v1950_v2 = vmul.f32 0.70710677, %v1931_v7  ;;  %v1953_v4 = vmul.f32 0.5, %v1825_v38  ;;  %v713_v6 = vmul.f32 %v1881_v34, %v697_v15 }
 0x241   :  { %v900_v30 = vadd.f32 1.0, %v884_v14  ;;  %v650_v14 = vmul.f32 1.0614054, %v1940_v47  ;;  %v605_v19 = vadd.f32 1.0, %v589_v58  ;;  %v759_v22 = vadd.f32 0.2548296, %v743_v18 }
 0x242   :  { %v917_v9 = vmul.f32 %v901_v46, %v501_v1  ;;  %v598_v46 = vadd.f32 1.0, %v582_v51  ;;  %v809_v10 = vmul.f32 %v793_v16, %v1837_v36  ;;  %1404 = vrcp.f32 %v604_v63 }
 0x243   :  { %v916_v40 = vmul.f32 %v900_v30, %v500_v27  ;;  %v824_v55 = vmul.f32 1.442695, %v806_v29  ;;  %v1959_v27 = vsel %vm537_vm5, -1.0, %v2375_v33  ;;  %v1962_v30 = vmul.f32 0.5, %v1828_v39 }
 0x244   :  { %v667_v32 = vadd.f32 -1.4531521, %v651_v24  ;;  %v712_v38 = vmul.f32 %v1886_v17, %v696_v12  ;;  %v808_v1 = vmul.f32 %v792_v62, %v1842_v48  ;;  %v1968_v31 = vand.u32 2147483647, %v1950_v2 }
 0x245   :  { %1299 = vmatprep.mubr.msk.f32.mxu0 %vm947_vm4, %v916_v40  ;;  %v729_v40 = vadd.f32 -0.28449672, %v713_v6  ;;  %v666_v36 = vadd.f32 -1.4531521, %v650_v14  ;;  %1406 = vrcp.f32 %v605_v19  ;;  %v1972_v11 = vadd.f32 %v1796_v5, %v1851_v28 }
 0x246   :  { %1300 = vmatmul.mubr.msk.f32.vlgmr.msra.gmra.mrb[16].mxu0 %vm947_vm4, %v917_v9  ;;  %v775_v39 = vmul.f32 %v1863_v60, %v759_v22  ;;  %1408 = vrcp.f32 %v598_v46  ;;  %v830_v49 = vmul.f32 1.442695, %v809_v10  ;;  %v591_v42 = vmul.f32 0.3275911, %v1968_v31 }
 0x247   :  { %1410 = vpow2.f32 %v824_v55  ;;  %v1977_v9 = vsel %vm536_vm6, -1.0, %v2375_v33  ;;  %v683_v48 = vmul.f32 %v1923_v52, %v667_v32  ;;  %v795_v53 = vsub.f32 0.0, %v1870_v3 }
 0x248   :  { %v728_v15 = vadd.f32 -0.28449672, %v712_v38  ;;  %v607_v58 = vadd.f32 1.0, %v591_v42  ;;  %v1983_v28 = vmul.f32 0.70710677, %v1972_v11  ;;  %v1403_v60 = vpop.eup %1402  ;;  %v745_v18 = vmul.f32 %v1881_v34, %v729_v40 }
 0x249   :  { %v828_v51 = vmul.f32 1.442695, %v808_v1  ;;  %v682_v16 = vmul.f32 %v1940_v47, %v666_v36  ;;  %v1989_v50 = vadd.f32 %v1859_v21, %v1796_v5  ;;  %v855_v29 = vmul.f32 %v1403_v60, %v775_v39 }
 0x24a   :  { %1412 = vpow2.f32 %v830_v49  ;;  %v1992_v24 = vmul.f32 0.5, %v1846_v23  ;;  %v1996_v12 = vsel %vm539_vm7, -1.0, %v2375_v33  ;;  %v699_v62 = vadd.f32 1.4214138, %v683_v48 }
 0x24b   :  { %2382 = vst [vmem:[#allocation3_spill] sm:$0xff] %v1989_v50  ;;  %v811_v63 = vmul.f32 %v795_v53, %v1870_v3  ;;  %v2000_v6 = vand.u32 2147483647, %v1983_v28  ;;  %v744_v21 = vmul.f32 %v1886_v17, %v728_v15  ;;  %v797_v19 = vsub.f32 0.0, %v1916_v20 }
 0x24c   :  { %v2002_v14 = vpop.eup %1404  ;;  %1414 = vrcp.f32 %v607_v58  ;;  %v2007_v23 = vmul.f32 0.70710677, %v1989_v50  ;;  %v761_v22 = vadd.f32 0.2548296, %v745_v18  ;;  %v698_v46 = vadd.f32 1.4214138, %v682_v16 }
 0x24d   :  { %1416 = vpow2.f32 %v828_v51  ;;  %v590_v10 = vmul.f32 0.3275911, %v2000_v6  ;;  %v871_v55 = vsub.f32 1.0, %v855_v29  ;;  %v810_v3 = vmul.f32 %v794_v37, %v1875_v8 }
 0x24e   :  { %v2013_v32 = vand.u32 2147483647, %v2007_v23  ;;  %v715_v1 = vmul.f32 %v1923_v52, %v699_v62  ;;  %v652_v40 = vmul.f32 1.0614054, %v2002_v14  ;;  %v2021_v39 = vadd.f32 %v1796_v5, %v1861_v25 }
 0x24f   :  { %v2015_v38 = vpop.eup %1406  ;;  %v606_v36 = vadd.f32 1.0, %v590_v10  ;;  %v760_v42 = vadd.f32 0.2548296, %v744_v21  ;;  %v834_v48 = vmul.f32 1.442695, %v811_v63  ;;  %v813_v8 = vmul.f32 %v797_v19, %v1916_v20 }
 0x250   :  { %v2023_v49 = vpop.eup %1408  ;;  %v593_v53 = vmul.f32 0.3275911, %v2013_v32  ;;  %v777_v58 = vmul.f32 %v1881_v34, %v761_v22  ;;  %v2031_v60 = vmul.f32 0.5, %v1854_v56  ;;  %v714_v18 = vmul.f32 %v1940_v47, %v698_v46 }
 0x251   :  { %v2027_v15 = vpop.eup %1410  ;;  %1418 = vrcp.f32 %v606_v36  ;;  %v2037_v25 = vsel %vm538_vm8, -1.0, %v2375_v33  ;;  %v832_v51 = vmul.f32 1.442695, %v810_v3  ;;  %v653_v20 = vmul.f32 1.0614054, %v2015_v38 }
 0x252   :  { %v609_v16 = vadd.f32 1.0, %v593_v53  ;;  %v887_v29 = vmul.f32 %v871_v55, %v1934_v26  ;;  %v731_v37 = vadd.f32 -0.28449672, %v715_v1  ;;  %v668_v62 = vadd.f32 -1.4531521, %v652_v40 }
 0x253   :  { %v2042_v34 = vmul.f32 0.70710677, %v2021_v39  ;;  %v776_v63 = vmul.f32 %v1886_v17, %v760_v42  ;;  %1420 = vpow2.f32 %v834_v48  ;;  %v838_v21 = vmul.f32 1.442695, %v813_v8 }
 0x254   :  { %v1413_v56 = vpop.eup %1412  ;;  %v730_v22 = vadd.f32 -0.28449672, %v714_v18  ;;  %v796_v46 = vsub.f32 0.0, %v1927_v35  ;;  %1422 = vrcp.f32 %v609_v16  ;;  %v669_v10 = vadd.f32 -1.4531521, %v653_v20 }
 0x255   :  { %v857_v19 = vmul.f32 %v1413_v56, %v777_v58  ;;  %1424 = vpow2.f32 %v832_v51  ;;  %v2054_v55 = vand.u32 2147483647, %v2042_v34  ;;  %v903_v3 = vadd.f32 1.0, %v887_v29 }
 0x256   :  { %v2050_v26 = vpop.eup %1414  ;;  %v747_v1 = vmul.f32 %v1923_v52, %v731_v37  ;;  %v684_v45 = vmul.f32 %v2002_v14, %v668_v62  ;;  %v2060_v40 = vadd.f32 %v1796_v5, %v1877_v13  ;;  %1426 = vpow2.f32 %v838_v21 }
 0x257   :  { %v1417_v17 = vpop.eup %1416  ;;  %v592_v42 = vmul.f32 0.3275911, %v2054_v55  ;;  %v2064_v48 = vmul.f32 0.70710677, %v2047_v61  ;;  %v873_v8 = vsub.f32 1.0, %v857_v19  ;;  %v746_v53 = vmul.f32 %v1940_v47, %v730_v22 }
 0x258   :  { %2384 = vst [vmem:[#allocation5_spill] sm:$0xff] %v2060_v40  ;;  %v856_v36 = vmul.f32 %v1417_v17, %v776_v63  ;;  %v812_v58 = vmul.f32 %v796_v46, %v1927_v35  ;;  %v655_v18 = vmul.f32 1.0614054, %v2050_v26  ;;  %v685_v51 = vmul.f32 %v2015_v38, %v669_v10 }
 0x259   :  { %v2073_v5 = vsel %vm540_vm9, -1.0, %v2375_v33  ;;  %v608_v13 = vadd.f32 1.0, %v592_v42  ;;  %v2076_v20 = vand.u32 2147483647, %v2064_v48  ;;  %v2081_v29 = vmul.f32 %v903_v3, %v1921_v41 }
 0x25a   :  { %v763_v37 = vadd.f32 0.2548296, %v747_v1  ;;  %v700_v35 = vadd.f32 1.4214138, %v684_v45  ;;  %v2084_v62 = vmul.f32 0.70710677, %v2060_v40  ;;  %v889_v21 = vmul.f32 %v873_v8, %v1959_v27 }
 0x25b   :  { %v2078_v16 = vpop.eup %1418  ;;  %v872_v56 = vsub.f32 1.0, %v856_v36  ;;  %1428 = vrcp.f32 %v608_v13  ;;  %v595_v0 = vmul.f32 0.3275911, %v2076_v20  ;;  %v762_v19 = vadd.f32 0.2548296, %v746_v53 }
 0x25c   :  { %v654_v63 = vmul.f32 1.0614054, %v2078_v16  ;;  %v836_v22 = vmul.f32 1.442695, %v812_v58  ;;  %v671_v46 = vadd.f32 -1.4531521, %v655_v18  ;;  %v779_v36 = vmul.f32 %v1923_v52, %v763_v37 }
 0x25d   :  { %v1421_v10 = vpop.eup %1420  ;;  %v701_v17 = vadd.f32 1.4214138, %v685_v51  ;;  %v799_v41 = vsub.f32 0.0, %v1968_v31  ;;  %v611_v1 = vadd.f32 1.0, %v595_v0  ;;  %v716_v42 = vmul.f32 %v2002_v14, %v700_v35 }
 0x25e   :  { %v670_v3 = vadd.f32 -1.4531521, %v654_v63  ;;  %v2090_v45 = vpop.eup %1422  ;;  %v798_v13 = vsub.f32 0.0, %v2000_v6  ;;  %v2096_v33 = vand.u32 2147483647, %v2084_v62  ;;  %v888_v18 = vmul.f32 %v872_v56, %v1977_v9 }
 0x25f   :  { %v1425_v27 = vpop.eup %1424  ;;  %v657_v53 = vmul.f32 1.0614054, %v2090_v45  ;;  %1430 = vrcp.f32 %v611_v1  ;;  %v646_v58 = vmul.f32 1.0614054, %v2023_v49  ;;  %v778_v51 = vmul.f32 %v1940_v47, %v762_v19 }
 0x260   :  { %v686_v8 = vmul.f32 %v2078_v16, %v670_v3  ;;  %v687_v52 = vmul.f32 %v2050_v26, %v671_v46  ;;  %v594_v37 = vmul.f32 0.3275911, %v2096_v33  ;;  %v2105_v35 = vpop.eup %1426  ;;  %v717_v63 = vmul.f32 %v2015_v38, %v701_v17 }
 0x261   :  { %v815_v0 = vmul.f32 %v799_v41, %v1968_v31  ;;  %v673_v61 = vadd.f32 -1.4531521, %v657_v53  ;;  %v2109_v50 = vadd.f32 1.0, %v889_v21  ;;  %v2111_v1 = vmul.f32 %v1421_v10, %v779_v36 }
 0x262   :  { %v702_v3 = vadd.f32 1.4214138, %v686_v8  ;;  %v732_v40 = vadd.f32 -0.28449672, %v716_v42  ;;  %v610_v9 = vadd.f32 1.0, %v594_v37  ;;  %v814_v56 = vmul.f32 %v798_v13, %v2000_v6 }
 0x263   :  { %v800_v19 = vsub.f32 0.0, %v2054_v55  ;;  %v662_v46 = vadd.f32 -1.4531521, %v646_v58  ;;  %v2116_v7 = vmul.f32 %v1425_v27, %v778_v51  ;;  %v703_v17 = vadd.f32 1.4214138, %v687_v52 }
 0x264   :  { %v718_v47 = vmul.f32 %v2078_v16, %v702_v3  ;;  %v689_v31 = vmul.f32 %v2090_v45, %v673_v61  ;;  %1432 = vrcp.f32 %v610_v9  ;;  %v733_v21 = vadd.f32 -0.28449672, %v717_v63 }
 0x265   :  { %v2119_v41 = vpop.eup %1428  ;;  %1434 = vpow2.f32 %v836_v22  ;;  %v842_v10 = vmul.f32 1.442695, %v815_v0  ;;  %v678_v36 = vmul.f32 %v2023_v49, %v662_v46  ;;  %v2122_v42 = vadd.f32 1.0, %v888_v18 }
 0x266   :  { %v748_v13 = vmul.f32 %v2002_v14, %v732_v40  ;;  %v656_v27 = vmul.f32 1.0614054, %v2119_v41  ;;  %v734_v8 = vadd.f32 -0.28449672, %v718_v47  ;;  %v840_v53 = vmul.f32 1.442695, %v814_v56 }
 0x267   :  { %v816_v61 = vmul.f32 %v800_v19, %v2054_v55  ;;  %v694_v58 = vadd.f32 1.4214138, %v678_v36  ;;  %v874_v51 = vsub.f32 1.0, %v2116_v7  ;;  %v719_v22 = vmul.f32 %v2050_v26, %v703_v17 }
 0x268   :  { %v705_v52 = vadd.f32 1.4214138, %v689_v31  ;;  %v672_v37 = vadd.f32 -1.4531521, %v656_v27  ;;  %v749_v18 = vmul.f32 %v2015_v38, %v733_v21  ;;  %1436 = vpow2.f32 %v842_v10 }
 0x269   :  { %v2130_v63 = vpop.eup %1430  ;;  %v801_v40 = vsub.f32 0.0, %v2013_v32  ;;  %v710_v0 = vmul.f32 %v2023_v49, %v694_v58  ;;  %v764_v3 = vadd.f32 0.2548296, %v748_v13  ;;  %v802_v47 = vsub.f32 0.0, %v2096_v33 }
 0x26a   :  { %v688_v9 = vmul.f32 %v2119_v41, %v672_v37  ;;  %v659_v55 = vmul.f32 1.0614054, %v2130_v63  ;;  %v750_v56 = vmul.f32 %v2078_v16, %v734_v8  ;;  %1438 = vpow2.f32 %v840_v53 }
 0x26b   :  { %v844_v19 = vmul.f32 1.442695, %v816_v61  ;;  %v726_v46 = vadd.f32 -0.28449672, %v710_v0  ;;  %v735_v17 = vadd.f32 -0.28449672, %v719_v22  ;;  %v721_v31 = vmul.f32 %v2090_v45, %v705_v52 }
 0x26c   :  { %v704_v21 = vadd.f32 1.4214138, %v688_v9  ;;  %v675_v10 = vadd.f32 -1.4531521, %v659_v55  ;;  %v765_v36 = vadd.f32 0.2548296, %v749_v18  ;;  %v817_v13 = vmul.f32 %v801_v40, %v2013_v32 }
 0x26d   :  { %v803_v27 = vsub.f32 0.0, %v2076_v20  ;;  %v742_v58 = vmul.f32 %v2023_v49, %v726_v46  ;;  %v780_v6 = vmul.f32 %v2002_v14, %v764_v3  ;;  %v818_v61 = vmul.f32 %v802_v47, %v2096_v33 }
 0x26e   :  { %v2144_v37 = vpop.eup %1432  ;;  %v720_v8 = vmul.f32 %v2119_v41, %v704_v21  ;;  %v691_v53 = vmul.f32 %v2130_v63, %v675_v10  ;;  %v766_v52 = vadd.f32 0.2548296, %v750_v56  ;;  %1440 = vpow2.f32 %v844_v19 }
 0x26f   :  { %v1435_v22 = vpop.eup %1434  ;;  %v658_v18 = vmul.f32 1.0614054, %v2144_v37  ;;  %v758_v32 = vadd.f32 0.2548296, %v742_v58  ;;  %v751_v40 = vmul.f32 %v2050_v26, %v735_v17  ;;  %v737_v0 = vadd.f32 -0.28449672, %v721_v31 }
 0x270   :  { %v736_v9 = vadd.f32 -0.28449672, %v720_v8  ;;  %v707_v55 = vadd.f32 1.4214138, %v691_v53  ;;  %v846_v46 = vmul.f32 1.442695, %v817_v13  ;;  %v819_v14 = vmul.f32 %v803_v27, %v2076_v20 }
 0x271   :  { %v674_v3 = vadd.f32 -1.4531521, %v658_v18  ;;  %v774_v21 = vmul.f32 %v2023_v49, %v758_v32  ;;  %v860_v33 = vmul.f32 %v1435_v22, %v780_v6  ;;  %v848_v19 = vmul.f32 1.442695, %v818_v61 }
 0x272   :  { %v752_v47 = vmul.f32 %v2119_v41, %v736_v9  ;;  %v723_v56 = vmul.f32 %v2130_v63, %v707_v55  ;;  %v1437_v10 = vpop.eup %1436  ;;  %v781_v17 = vmul.f32 %v2015_v38, %v765_v36  ;;  %v782_v31 = vmul.f32 %v2078_v16, %v766_v52 }
 0x273   :  { %v690_v13 = vmul.f32 %v2144_v37, %v674_v3  ;;  %v854_v20 = vmul.f32 %v2027_v15, %v774_v21  ;;  %v767_v27 = vadd.f32 0.2548296, %v751_v40  ;;  %v753_v49 = vmul.f32 %v2090_v45, %v737_v0 }
 0x274   :  { %v768_v58 = vadd.f32 0.2548296, %v752_v47  ;;  %v739_v8 = vadd.f32 -0.28449672, %v723_v56  ;;  %v1439_v6 = vpop.eup %1438  ;;  %1442 = vpow2.f32 %v846_v46  ;;  %v850_v53 = vmul.f32 1.442695, %v819_v14 }
 0x275   :  { %v706_v22 = vadd.f32 1.4214138, %v690_v13  ;;  %v870_v18 = vsub.f32 1.0, %v854_v20  ;;  %v890_v38 = vmul.f32 %v874_v51, %v2037_v25  ;;  %v876_v36 = vsub.f32 1.0, %v860_v33 }
 0x276   :  { %1444 = vpow2.f32 %v848_v19  ;;  %v2385_v16 = vmov 1.0   ;;  %v862_v61 = vmul.f32 %v1439_v6, %v782_v31  ;;  %v784_v52 = vmul.f32 %v2119_v41, %v768_v58 }
 0x277   :  { %v550_v15 = vsel %vm534_vm10, -1.0, %v2385_v16  ;;  %v722_v32 = vmul.f32 %v2144_v37, %v706_v22  ;;  %v861_v0 = vmul.f32 %v2105_v35, %v781_v17  ;;  %v783_v9 = vmul.f32 %v2050_v26, %v767_v27 }
 0x278   :  { %v886_v40 = vmul.f32 %v870_v18, %v550_v15  ;;  %v769_v55 = vadd.f32 0.2548296, %v753_v49  ;;  %v755_v7 = vmul.f32 %v2130_v63, %v739_v8  ;;  %v1441_v25 = vpop.eup %1440  ;;  %v920_v51 = vmul.f32 %v2122_v42, %v1962_v30 }
 0x279   :  { %1446 = vpow2.f32 %v850_v53  ;;  %v738_v59 = vadd.f32 -0.28449672, %v722_v32  ;;  %v2386_v41 = vsub.f32 1.0, %v2111_v1  ;;  %v906_v3 = vadd.f32 1.0, %v890_v38 }
 0x27a   :  { %v902_v46 = vadd.f32 1.0, %v886_v40  ;;  %v892_v21 = vmul.f32 %v876_v36, %v2073_v5  ;;  %vm542_vm12 = vcmp.lt.f32.partialorder %v1983_v28, 0.0  ;;  %v878_v26 = vsub.f32 1.0, %v862_v61 }
 0x27b   :  { %v891_v14 = vmul.f32 %v2386_v41, %v1996_v12  ;;  %v864_v35 = vmul.f32 %v1441_v25, %v784_v52  ;;  %v754_v33 = vmul.f32 %v2144_v37, %v738_v59  ;;  %v877_v56 = vsub.f32 1.0, %v861_v0  ;;  %v2388_v41 = vld [vmem:[#allocation5_spill] sm:$0xff] }
 0x27c   :  { %v918_v47 = vmul.f32 %v902_v46, %v1936_v57  ;;  %v863_v30 = vmul.f32 %v1437_v10, %v783_v9  ;;  %v785_v42 = vmul.f32 %v2090_v45, %v769_v55  ;;  %v771_v19 = vadd.f32 0.2548296, %v755_v7  ;;  %v2387_v55 = vld [vmem:[#allocation2_spill] sm:$0xff] }
 0x27d   :  { %v921_v1 = vmul.f32 %v2109_v50, %v1953_v4  ;;  %v557_v12 = vsel %vm541_vm11, -1.0, %v2385_v16  ;;  %vm543_vm13 = vcmp.lt.f32.partialorder %v1950_v2, 0.0  ;;  %v770_v5 = vadd.f32 0.2548296, %v754_v33  ;;  %v2390_v33 = vld [vmem:[#allocation4_spill] sm:$0xff] }
 0x27e   :  { %1302 = vmatprep.mubr.msk.f32.mxu1 %vm947_vm4, %v918_v47  ;;  %v907_v17 = vadd.f32 1.0, %v891_v14  ;;  %v922_v57 = vmul.f32 %v906_v3, %v2031_v60  ;;  %v558_v45 = vsel %vm542_vm12, -1.0, %v2385_v16  ;;  %vm544_vm14 = vcmp.lt.f32.partialorder %v2042_v34, 0.0  ;;  %v1443_v4 = vpop.eup %1442  ;;  %v2389_v3 = vld [vmem:[#allocation3_spill] sm:$0xff] }
 0x27f   :  { %1303 = vmatmul.mubr.msk.f32.vlgmr.msra.gmra.mrb[0].mxu1 %vm947_vm4, %v2081_v29  ;;  %v908_v54 = vadd.f32 1.0, %v892_v21  ;;  %v894_v50 = vmul.f32 %v878_v26, %v558_v45  ;;  %v880_v10 = vsub.f32 1.0, %v864_v35  ;;  %v786_v31 = vmul.f32 %v2144_v37, %v770_v5 }
 0x280   :  { %1305 = vmatprep.mubr.msk.f32.mxu1 %vm947_vm4, %v920_v51  ;;  %v1445_v13 = vpop.eup %1444  ;;  %v893_v20 = vmul.f32 %v877_v56, %v557_v12  ;;  %v879_v60 = vsub.f32 1.0, %v863_v30  ;;  %v865_v27 = vmul.f32 %v1443_v4, %v785_v42  ;;  %v787_v28 = vmul.f32 %v2130_v63, %v771_v19  ;;  %v2237_v56 = vld [vmem:[%s2373_s6] ss:$0 sm:$0xff]  ;;  %v1448_v12 = vld [vmem:[%s2367_s0 + $0x8] sm:$0xff] }
 0x281   :  { %v508_v49 = vmul.f32 0.5, %v1900_v43  ;;  %v559_v29 = vsel %vm543_vm13, -1.0, %v2385_v16  ;;  %v866_v58 = vmul.f32 %v1445_v13, %v786_v31  ;;  %v923_v8 = vmul.f32 %v907_v17, %v1992_v24  ;;  %v1449_v17 = vld [vmem:[%s2367_s0] sm:$0xff]  ;;  %v1451_v13 = vld [vmem:[%s2367_s0 + $0x10] sm:$0xff] }
 0x282   :  { %vm545_vm15 = vcmp.lt.f32.partialorder %v2007_v23, 0.0  ;;  %v560_v37 = vsel %vm544_vm14, -1.0, %v2385_v16  ;;  %vm546_vm1 = vcmp.lt.f32.partialorder %v2084_v62, 0.0  ;;  %v910_v43 = vadd.f32 1.0, %v894_v50 }
 0x283   :  { %1306 = vmatmul.mubr.msk.f32.gmra.mrb[2].mxu1 %vm947_vm4, %v921_v1  ;;  %v1447_v63 = vpop.eup %1446  ;;  %v924_v6 = vmul.f32 %v908_v54, %v508_v49  ;;  %v896_v53 = vmul.f32 %v880_v10, %v560_v37  ;;  %v882_v22 = vsub.f32 1.0, %v866_v58  ;;  %v909_v2 = vadd.f32 1.0, %v893_v20  ;;  %v1450_v10 = vld [vmem:[%s2367_s0 + $0x18] sm:$0xff] }
 0x284   :  { %1308 = vmatprep.mubr.msk.f32.mxu1 %vm947_vm4, %v922_v57  ;;  %v895_v18 = vmul.f32 %v879_v60, %v559_v29  ;;  %v881_v24 = vsub.f32 1.0, %v865_v27  ;;  %v867_v38 = vmul.f32 %v1447_v63, %v787_v28  ;;  %v510_v36 = vmul.f32 0.5, %v1972_v11  ;;  %v1452_v29 = vld [vmem:[%s2367_s0 + $0x28] sm:$0xff] }
 0x285   :  { %v509_v34 = vmul.f32 0.5, %v1890_v44  ;;  %v561_v62 = vsel %vm545_vm15, -1.0, %v2385_v16  ;;  %v562_v15 = vsel %vm546_vm1, -1.0, %v2385_v16  ;;  %v912_v52 = vadd.f32 1.0, %v896_v53 }
 0x286   :  { %v926_v61 = vmul.f32 %v910_v43, %v510_v36  ;;  %vm547_vm2 = vcmp.lt.f32.partialorder %v2064_v48, 0.0  ;;  %v898_v32 = vmul.f32 %v882_v22, %v562_v15  ;;  %v911_v0 = vadd.f32 1.0, %v895_v18  ;;  %v1454_v22 = vld [vmem:[%s2367_s0 + $0x38] sm:$0xff]  ;;  %v1455_v18 = vld [vmem:[%s2367_s0 + $0x30] sm:$0xff]  ;;  %v1456_v15 = vld [vmem:[%s2367_s0 + $0x48] sm:$0xff] }
 0x287   :  { %1309 = vmatmul.mubr.msk.f32.gmra.mrb[4].mxu1 %vm947_vm4, %v923_v8  ;;  %v925_v40 = vmul.f32 %v909_v2, %v509_v34  ;;  %v897_v11 = vmul.f32 %v881_v24, %v561_v62  ;;  %v883_v9 = vsub.f32 1.0, %v867_v38  ;;  %v512_v44 = vmul.f32 0.5, %v2021_v39  ;;  %v1453_v8 = vld [vmem:[%s2367_s0 + $0x20] sm:$0xff] }
 0x288   :  { %1311 = vmatprep.mubr.msk.f32.mxu1 %vm947_vm4, %v924_v6  ;;  %v511_v23 = vmul.f32 0.5, %v2387_v55  ;;  %v563_v25 = vsel %vm547_vm2, -1.0, %v2385_v16  ;;  %v914_v51 = vadd.f32 1.0, %v898_v32  ;;  %v514_v14 = vmul.f32 0.5, %v2388_v41 }
 0x289   :  { %v928_v7 = vmul.f32 %v912_v52, %v512_v44  ;;  %v913_v59 = vadd.f32 1.0, %v897_v11  ;;  %v899_v46 = vmul.f32 %v883_v9, %v563_v25  ;;  %v513_v21 = vmul.f32 0.5, %v2389_v3  ;;  %v1457_v52 = vld [vmem:[%s2367_s0 + $0x40] sm:$0xff]  ;;  %v1458_v44 = vld [vmem:[%s2367_s0 + $0x58] sm:$0xff] }
 0x28a   :  { %v927_v48 = vmul.f32 %v911_v0, %v511_v23  ;;  %v930_v39 = vmul.f32 %v914_v51, %v514_v14  ;;  %v515_v47 = vmul.f32 0.5, %v2390_v33  ;;  %v1459_v23 = vld [vmem:[%s2367_s0 + $0x50] sm:$0xff]  ;;  %v1461_v14 = vld [vmem:[%s2367_s0 + $0x60] sm:$0xff]  ;;  %v1462_v33 = vld [vmem:[%s2367_s0 + $0x78] sm:$0xff] }
 0x28b   :  { %1312 = vmatmul.mubr.msk.f32.gmra.mrb[6].mxu1 %vm947_vm4, %v925_v40  ;;  %v929_v26 = vmul.f32 %v913_v59, %v513_v21  ;;  %v915_v35 = vadd.f32 1.0, %v899_v46  ;;  %v1460_v46 = vld [vmem:[%s2367_s0 + $0x68] sm:$0xff] }
 0x28c   :  { %1314 = vmatprep.mubr.msk.f32.mxu1 %vm947_vm4, %v926_v61 }
 0x28d   :  { %v931_v16 = vmul.f32 %v915_v35, %v515_v47 }
 0x28f   :  { %1315 = vmatmul.mubr.msk.f32.gmra.mrb[8].mxu1 %vm947_vm4, %v927_v48 }
 0x290   :  { %1317 = vmatprep.mubr.msk.f32.mxu1 %vm947_vm4, %v928_v7 }
 0x293   :  { %1318 = vmatmul.mubr.msk.f32.gmra.mrb[10].mxu1 %vm947_vm4, %v929_v26 }
 0x294   :  { %1320 = vmatprep.mubr.msk.f32.mxu1 %vm947_vm4, %v930_v39 }
 0x297   :  { %1321 = vmatmul.mubr.msk.f32.gmra.mrb[12].mxu1 %vm947_vm4, %v931_v16  ;;  %v1463_v16 = vld [vmem:[%s2367_s0 + $0x70] sm:$0xff] }
 0x319   :  { %v1301_v30 = vpop.f32.mrb[16].mxu0 }
 0x31a   :  { %v1068_v42 = vadd.f32 %v1301_v30, %v2237_v56  ;;  %v1062_v19 = vpop.f32.mrb[17].mxu0 }
 0x31b   :  { %v1063_v1 = vadd.f32 %v2237_v56, %v1062_v19 }
 0x31c   :  { %v1142_v5 = vadd.f32 %v1448_v12, %v1068_v42 }
 0x31d   :  { %v1141_v57 = vadd.f32 %v1449_v17, %v1063_v1 }
 0x31e   :  { %1158 = vst.msk [vmem:[%s2374_s7 + $0x8] sm:$0xff] %vm44_vm0, %v1142_v5 }
 0x31f   :  { %1157 = vst.msk [vmem:[%s2374_s7] sm:$0xff] %vm44_vm0, %v1141_v57 }
 0x352   :  { %v1304_v45 = vpop.f32.mrb[0].mxu1 }
 0x353   :  { %v1078_v4 = vadd.f32 %v1304_v45, %v2237_v56  ;;  %v1072_v54 = vpop.f32.mrb[1].mxu1 }
 0x354   :  { %v1073_v50 = vadd.f32 %v2237_v56, %v1072_v54 }
 0x355   :  { %v1144_v31 = vadd.f32 %v1450_v10, %v1078_v4 }
 0x356   :  { %v1143_v20 = vadd.f32 %v1451_v13, %v1073_v50  ;;  %v1307_v60 = vpop.f32.mrb[2].mxu1 }
 0x357   :  { %1160 = vst.msk [vmem:[%s2374_s7 + $0x18] sm:$0xff] %vm44_vm0, %v1144_v31  ;;  %v1088_v27 = vadd.f32 %v1307_v60, %v2237_v56  ;;  %v1082_v28 = vpop.f32.mrb[3].mxu1 }
 0x358   :  { %1159 = vst.msk [vmem:[%s2374_s7 + $0x10] sm:$0xff] %vm44_vm0, %v1143_v20  ;;  %v1083_v49 = vadd.f32 %v2237_v56, %v1082_v28 }
 0x359   :  { %v1146_v58 = vadd.f32 %v1452_v29, %v1088_v27 }
 0x35a   :  { %v1145_v37 = vadd.f32 %v1453_v8, %v1083_v49  ;;  %v1310_v63 = vpop.f32.mrb[4].mxu1 }
 0x35b   :  { %1162 = vst.msk [vmem:[%s2374_s7 + $0x28] sm:$0xff] %vm44_vm0, %v1146_v58  ;;  %v1098_v6 = vadd.f32 %v1310_v63, %v2237_v56  ;;  %v1092_v43 = vpop.f32.mrb[5].mxu1 }
 0x35c   :  { %1161 = vst.msk [vmem:[%s2374_s7 + $0x20] sm:$0xff] %vm44_vm0, %v1145_v37  ;;  %v1093_v53 = vadd.f32 %v2237_v56, %v1092_v43 }
 0x35d   :  { %v1148_v2 = vadd.f32 %v1454_v22, %v1098_v6 }
 0x35e   :  { %v1147_v24 = vadd.f32 %v1455_v18, %v1093_v53  ;;  %v1313_v38 = vpop.f32.mrb[6].mxu1 }
 0x35f   :  { %1164 = vst.msk [vmem:[%s2374_s7 + $0x38] sm:$0xff] %vm44_vm0, %v1148_v2  ;;  %v1108_v36 = vadd.f32 %v1313_v38, %v2237_v56  ;;  %v1102_v34 = vpop.f32.mrb[7].mxu1 }
 0x360   :  { %1163 = vst.msk [vmem:[%s2374_s7 + $0x30] sm:$0xff] %vm44_vm0, %v1147_v24  ;;  %v1103_v62 = vadd.f32 %v2237_v56, %v1102_v34 }
 0x361   :  { %v1150_v61 = vadd.f32 %v1456_v15, %v1108_v36 }
 0x362   :  { %v1149_v32 = vadd.f32 %v1457_v52, %v1103_v62  ;;  %v1316_v40 = vpop.f32.mrb[8].mxu1 }
 0x363   :  { %1166 = vst.msk [vmem:[%s2374_s7 + $0x48] sm:$0xff] %vm44_vm0, %v1150_v61  ;;  %v1118_v0 = vadd.f32 %v1316_v40, %v2237_v56  ;;  %v1112_v11 = vpop.f32.mrb[9].mxu1 }
 0x364   :  { %1165 = vst.msk [vmem:[%s2374_s7 + $0x40] sm:$0xff] %vm44_vm0, %v1149_v32  ;;  %v1113_v9 = vadd.f32 %v2237_v56, %v1112_v11 }
 0x365   :  { %v1152_v55 = vadd.f32 %v1458_v44, %v1118_v0 }
 0x366   :  { %v1151_v7 = vadd.f32 %v1459_v23, %v1113_v9  ;;  %v1319_v25 = vpop.f32.mrb[10].mxu1 }
 0x367   :  { %1168 = vst.msk [vmem:[%s2374_s7 + $0x58] sm:$0xff] %vm44_vm0, %v1152_v55  ;;  %v1128_v51 = vadd.f32 %v1319_v25, %v2237_v56  ;;  %v1122_v48 = vpop.f32.mrb[11].mxu1 }
 0x368   :  { %1167 = vst.msk [vmem:[%s2374_s7 + $0x50] sm:$0xff] %vm44_vm0, %v1151_v7  ;;  %v1123_v59 = vadd.f32 %v2237_v56, %v1122_v48 }
 0x369   :  { %v1154_v41 = vadd.f32 %v1460_v46, %v1128_v51 }
 0x36a   :  { %v1153_v3 = vadd.f32 %v1461_v14, %v1123_v59  ;;  %v1322_v21 = vpop.f32.mrb[12].mxu1 }
 0x36b   :  { %1170 = vst.msk [vmem:[%s2374_s7 + $0x68] sm:$0xff] %vm44_vm0, %v1154_v41  ;;  %v1138_v39 = vadd.f32 %v1322_v21, %v2237_v56  ;;  %v1132_v26 = vpop.f32.mrb[13].mxu1 }
 0x36c   :  { %1169 = vst.msk [vmem:[%s2374_s7 + $0x60] sm:$0xff] %vm44_vm0, %v1153_v3  ;;  %v1133_v35 = vadd.f32 %v2237_v56, %v1132_v26 }
 0x36d   :  { %v1156_v47 = vadd.f32 %v1462_v33, %v1138_v39 }
 0x36e   :  { %v1155_v30 = vadd.f32 %v1463_v16, %v1133_v35 }
 0x36f   :  { %1172 = vst.msk [vmem:[%s2374_s7 + $0x78] sm:$0xff] %vm44_vm0, %v1156_v47 }
 0x370   :  { %1171 = vst.msk [vmem:[%s2374_s7 + $0x70] sm:$0xff] %vm44_vm0, %v1155_v30 }

// kernel: swin_forward.16
= control target key start
LH: loop header
LB: loop body
LE: loop exit
PB: predicated region body
PF: predicated region fallthrough
CT: control target
= control target key end

     0   :  { %vm26_vm0 = vcmask 523264   ;;  %vm212_vm1 = vcmask 261120   ;;  %s413_s0 = inlined_call_operand.vmem [shape: f32[32,64], index: 0, kind: input, shape index: {}]   ;;  %s414_s3 = inlined_call_operand.vmem [shape: f32[64,32], index: 3, kind: input, shape index: {}]   ;;  %s415_s1 = inlined_call_operand.vmem [shape: f32[1,64], index: 1, kind: input, shape index: {}]   ;;  %s416_s2 = inlined_call_operand.vmem [shape: f32[1,64], index: 2, kind: input, shape index: {}]   ;;  %s417_s4 = inlined_call_operand.vmem [shape: f32[1,32], index: 4, kind: input, shape index: {}]   ;;  %s418_s5 = inlined_call_operand.vmem [shape: f32[32,32], index: 5, kind: output, shape index: {}]  }
   0x1   :  { %v20_v0 = vld [vmem:[%s413_s0] sm:$0xff]  ;;  %v21_v1 = vld [vmem:[%s413_s0 + $0x8] sm:$0xff]  ;;  %v22_v2 = vld [vmem:[%s413_s0 + $0x10] sm:$0xff] }
   0x2   :  { %v27_v3 = vsel %vm26_vm0, %v20_v0, 0.0  ;;  %v30_v4 = vsel %vm26_vm0, %v21_v1, 0.0  ;;  %v23_v5 = vld [vmem:[%s413_s0 + $0x18] sm:$0xff]  ;;  %v33_v6 = vsel %vm26_vm0, %v22_v2, 0.0  ;;  %v100_v28 = vld [vmem:[%s414_s3] sm:$0xff]  ;;  %v101_v29 = vld [vmem:[%s414_s3 + $0x8] sm:$0xff] }
   0x3   :  { %28 = vadd.xlane.f32.xlu0 %v27_v3  ;;  %31 = vadd.xlane.f32.xlu1 %v30_v4  ;;  %v36_v7 = vsel %vm26_vm0, %v23_v5, 0.0  ;;  %v262_v30 = vpack.c.bf16 %v101_v29, %v100_v28  ;;  %v102_v31 = vld [vmem:[%s414_s3 + $0x10] sm:$0xff]  ;;  %v103_v32 = vld [vmem:[%s414_s3 + $0x18] sm:$0xff]  ;;  %v104_v34 = vld [vmem:[%s414_s3 + $0x20] sm:$0xff] }
   0x4   :  { %v266_v33 = vpack.c.bf16 %v103_v32, %v102_v31  ;;  %v105_v35 = vld [vmem:[%s414_s3 + $0x28] sm:$0xff]  ;;  %v106_v37 = vld [vmem:[%s414_s3 + $0x30] sm:$0xff]  ;;  %v107_v38 = vld [vmem:[%s414_s3 + $0x38] sm:$0xff] }
   0x5   :  { %263 = vmatprep.subr.bf16.mxu0 %v262_v30  ;;  %278 = vmatprep.subr.bf16.mxu1 %v262_v30  ;;  %v270_v36 = vpack.c.bf16 %v105_v35, %v104_v34  ;;  %v274_v39 = vpack.c.bf16 %v107_v38, %v106_v37  ;;  %v221_v53 = vld [vmem:[%s415_s1] ss:$0 sm:$0xff] }
   0x6   :  { %265 = vmatpush3.bf16.msra.mxu0 %v262_v30  ;;  %282 = vmatpush3.bf16.msra.mxu1 %v262_v30  ;;  %v222_v55 = vld [vmem:[%s416_s2] ss:$0 sm:$0xff] }
   0x7   :  { %34 = vadd.xlane.f32.xlu0 %v33_v6  ;;  %37 = vadd.xlane.f32.xlu1 %v36_v7  ;;  %v223_v6 = vld [vmem:[%s417_s4] ss:$0 sm:$0xff] }
   0x8   :  { %267 = vmatprep.subr.bf16.mxu0 %v266_v33  ;;  %279 = vmatprep.subr.bf16.mxu1 %v266_v33 }
   0xa   :  { %269 = vmatpush3.bf16.msra.mxu0 %v266_v33  ;;  %283 = vmatpush3.bf16.msra.mxu1 %v266_v33 }
   0xb   :  { %271 = vmatprep.subr.bf16.mxu0 %v270_v36  ;;  %280 = vmatprep.subr.bf16.mxu1 %v270_v36 }
   0xe   :  { %273 = vmatpush3.bf16.msra.mxu0 %v270_v36  ;;  %284 = vmatpush3.bf16.msra.mxu1 %v270_v36 }
   0xf   :  { %275 = vmatprep.subr.bf16.mxu0 %v274_v39  ;;  %281 = vmatprep.subr.bf16.mxu1 %v274_v39 }
  0x12   :  { %277 = vmatpush3.bf16.msra.mxu0 %v274_v39  ;;  %285 = vmatpush3.bf16.msra.mxu1 %v274_v39 }
  0x90   :  { %v29_v8 = vpop.xlane.xlu0 %28  ;;  %v32_v9 = vpop.xlane.xlu1 %31 }
  0x91   :  { %v40_v10 = vmul.f32 0.015625, %v29_v8  ;;  %v41_v11 = vmul.f32 0.015625, %v32_v9 }
  0x93   :  { %v340_v12 = vsub.f32 %v20_v0, %v40_v10  ;;  %v342_v13 = vsub.f32 %v21_v1, %v41_v11 }
  0x94   :  { %v35_v14 = vpop.xlane.xlu0 %34  ;;  %v38_v15 = vpop.xlane.xlu1 %37 }
  0x95   :  { %v42_v16 = vmul.f32 0.015625, %v35_v14  ;;  %v43_v17 = vmul.f32 0.015625, %v38_v15  ;;  %v48_v18 = vmul.f32 %v340_v12, %v340_v12  ;;  %v49_v19 = vmul.f32 %v342_v13, %v342_v13 }
  0x97   :  { %v348_v20 = vsub.f32 %v22_v2, %v42_v16  ;;  %v350_v21 = vsub.f32 %v23_v5, %v43_v17  ;;  %v52_v22 = vsel %vm26_vm0, %v48_v18, 0.0  ;;  %v55_v23 = vsel %vm26_vm0, %v49_v19, 0.0 }
  0x98   :  { %53 = vadd.xlane.f32.xlu0 %v52_v22 }
  0x99   :  { %v50_v24 = vmul.f32 %v348_v20, %v348_v20  ;;  %v51_v25 = vmul.f32 %v350_v21, %v350_v21 }
  0x9b   :  { %v58_v26 = vsel %vm26_vm0, %v50_v24, 0.0  ;;  %v61_v27 = vsel %vm26_vm0, %v51_v25, 0.0 }
  0x9c   :  { %56 = vadd.xlane.f32.xlu0 %v55_v23  ;;  %59 = vadd.xlane.f32.xlu1 %v58_v26 }
  0xa0   :  { %62 = vadd.xlane.f32.xlu1 %v61_v27 }
 0x125   :  { %v54_v40 = vpop.xlane.xlu0 %53 }
 0x126   :  { %v64_v41 = vmul.f32 0.015625, %v54_v40 }
 0x128   :  { %v68_v42 = vadd.f32 1e-05, %v64_v41 }
 0x129   :  { %v60_v43 = vpop.xlane.xlu1 %59  ;;  %v57_v44 = vpop.xlane.xlu0 %56 }
 0x12a   :  { %286 = vrsqrt.f32 %v68_v42  ;;  %v66_v45 = vmul.f32 0.015625, %v60_v43  ;;  %v65_v46 = vmul.f32 0.015625, %v57_v44 }
 0x12c   :  { %v70_v47 = vadd.f32 1e-05, %v66_v45  ;;  %v69_v48 = vadd.f32 1e-05, %v65_v46 }
 0x12d   :  { %v63_v49 = vpop.xlane.xlu1 %62 }
 0x12e   :  { %288 = vrsqrt.f32 %v70_v47  ;;  %v67_v50 = vmul.f32 0.015625, %v63_v49 }
 0x12f   :  { %290 = vrsqrt.f32 %v69_v48 }
 0x130   :  { %v71_v51 = vadd.f32 1e-05, %v67_v50 }
 0x132   :  { %292 = vrsqrt.f32 %v71_v51 }
 0x134   :  { %v287_v52 = vpop.eup %286 }
 0x135   :  { %v76_v54 = vmul.f32 %v287_v52, %v340_v12 }
 0x137   :  { %v86_v56 = vmul.f32 %v221_v53, %v76_v54 }
 0x138   :  { %v289_v57 = vpop.eup %288 }
 0x139   :  { %v291_v58 = vpop.eup %290  ;;  %v96_v59 = vadd.f32 %v222_v55, %v86_v56  ;;  %v78_v60 = vmul.f32 %v289_v57, %v348_v20 }
 0x13a   :  { %v77_v61 = vmul.f32 %v291_v58, %v342_v13 }
 0x13b   :  { %256 = vmatprep.mubr.msk.f32.mxu0 %vm26_vm0, %v96_v59  ;;  %v88_v62 = vmul.f32 %v221_v53, %v78_v60 }
 0x13c   :  { %v293_v63 = vpop.eup %292  ;;  %v87_v0 = vmul.f32 %v221_v53, %v77_v61 }
 0x13d   :  { %v98_v1 = vadd.f32 %v222_v55, %v88_v62  ;;  %v79_v2 = vmul.f32 %v293_v63, %v350_v21 }
 0x13e   :  { %v97_v3 = vadd.f32 %v222_v55, %v87_v0 }
 0x13f   :  { %259 = vmatprep.mubr.msk.f32.mxu1 %vm26_vm0, %v98_v1  ;;  %v89_v4 = vmul.f32 %v221_v53, %v79_v2 }
 0x140   :  { %257 = vmatmul.mubr.msk.f32.vlgmr.msra.gmra.mrb[0].mxu0 %vm26_vm0, %v97_v3 }
 0x141   :  { %v99_v5 = vadd.f32 %v222_v55, %v89_v4 }
 0x143   :  { %260 = vmatmul.mubr.msk.f32.vlgmr.msra.gmra.mrb[0].mxu1 %vm26_vm0, %v99_v5 }
 0x213   :  { %v258_v7 = vpop.f32.mrb[0].mxu0 }
 0x214   :  { %v199_v8 = vadd.f32 %v258_v7, %v223_v6  ;;  %v193_v9 = vpop.f32.mrb[1].mxu0 }
 0x215   :  { %v194_v10 = vadd.f32 %v223_v6, %v193_v9 }
 0x216   :  { %214 = vst.msk [vmem:[%s418_s5 + $0x8] sm:$0xff] %vm212_vm1, %v199_v8  ;;  %v261_v11 = vpop.f32.mrb[0].mxu1 }
 0x217   :  { %213 = vst.msk [vmem:[%s418_s5] sm:$0xff] %vm212_vm1, %v194_v10  ;;  %v209_v12 = vadd.f32 %v261_v11, %v223_v6  ;;  %v203_v13 = vpop.f32.mrb[1].mxu1 }
 0x218   :  { %v204_v14 = vadd.f32 %v223_v6, %v203_v13 }
 0x219   :  { %216 = vst.msk [vmem:[%s418_s5 + $0x18] sm:$0xff] %vm212_vm1, %v209_v12 }
 0x21a   :  { %215 = vst.msk [vmem:[%s418_s5 + $0x10] sm:$0xff] %vm212_vm1, %v204_v14 }

// kernel: swin_forward.17
= control target key start
LH: loop header
LB: loop body
LE: loop exit
PB: predicated region body
PF: predicated region fallthrough
CT: control target
= control target key end

     0   :  { %s2019_s30 = smov 0   ;;  %s2021_s10 = smov 0   ;;  %s2260_s0 = inlined_call_operand.vmem [shape: f32[2,1,16,32], index: 0, kind: input, shape index: {}]   ;;  %s2261_s1 = inlined_call_operand.vmem [shape: f32[1,32], index: 1, kind: input, shape index: {}]   ;;  %s2262_s2 = inlined_call_operand.vmem [shape: f32[1,32], index: 2, kind: input, shape index: {}]   ;;  %s2263_s3 = inlined_call_operand.vmem [shape: f32[32,96], index: 3, kind: input, shape index: {}]   ;;  %s2264_s4 = inlined_call_operand.vmem [shape: f32[1,96], index: 4, kind: input, shape index: {}]   ;;  %s2265_s5 = inlined_call_operand.vmem [shape: f32[4,16,16], index: 5, kind: input, shape index: {}]   ;;  %s2266_s6 = inlined_call_operand.vmem [shape: f32[1,16,16], index: 6, kind: input, shape index: {}]   ;;  %s2267_s7 = inlined_call_operand.vmem [shape: f32[32,32], index: 7, kind: input, shape index: {}]   ;;  %s2268_s8 = inlined_call_operand.vmem [shape: f32[1,32], index: 8, kind: input, shape index: {}]   ;;  %s2269_s9 = inlined_call_operand.vmem [shape: f32[2,1,16,32], index: 9, kind: output, shape index: {}]  }
   0x1   :  { %s2023_s11 = smov 0  }
   0x2 LB: > { %s31_s12 = sadd.s32 1, %s1949_s10  ;;  %p1592_p0 = scmp.ge.s32.totalorder %s1953_s11, 1  ;;  %s1953_s11 = sphi %s2023_s11, %s19_s11   ;;  %s1949_s10 = sphi %s2021_s10, %s2273_s10   ;;  %s1945_s30 = sphi %s2019_s30, %s2272_s30  }
   0x3   : > { %p33_p1 = scmp.ge.s32.totalorder %s31_s12, 2  ;;  %p317_p2 = scmp.lt.s32.totalorder %s1953_s11, 3 }
   0x5   : > { %s2275_s12 = smov (%p33_p1, %s31_s12), 0  ;;  %p318_p3 = pnand %p1592_p0, %p317_p2 }
   0x6   : > { %p366_p4 = scmp.lt.s32.totalorder (!%p318_p3), %s1945_s30, 1  ;;  %vm393_vm0 = vcmask (!%p318_p3), 261120   ;;  %v437_v14 = vld [vmem:[%s2263_s3] sm:$0xff] (!%p318_p3)  ;;  %v438_v15 = vld [vmem:[%s2263_s3 + $0x8] sm:$0xff] (!%p318_p3)  ;;  %v439_v16 = vld [vmem:[%s2263_s3 + $0x10] sm:$0xff] (!%p318_p3)  ;;  %vm541_vm1 = vcmask (!%p318_p3), 64512  }
   0x7   : > { %321 = sbr.rel (%p318_p3) target bundleno = 2761 (0xac9), region = 56  ;;  %v1761_v17 = vpack.c.bf16 (!%p318_p3), %v438_v15, %v437_v14  ;;  %v440_v18 = vld [vmem:[%s2263_s3 + $0x18] sm:$0xff] (!%p318_p3)  ;;  %v1597_v27 = vld [vmem:[%s2261_s1] ss:$0 sm:$0xff] (!%p318_p3)  ;;  %s1955_s15 = smov (!%p318_p3), 64   ;;  %vm2087_vm2 = vmpackc.low (!%p318_p3), %vm541_vm1, %vm541_vm1  ;;  %vm629_vm3 = vcmask (!%p318_p3), 130048  }
   0x8   : > { %v1765_v19 = vpack.c.bf16 (!%p318_p3), %v440_v18, %v439_v16  ;;  %v1598_v29 = vld [vmem:[%s2262_s2] ss:$0 sm:$0xff] (!%p318_p3)  ;;  %s1957_s17 = smov (!%p318_p3), 88   ;;  %s1958_s18 = smov (!%p318_p3), 120   ;;  %v534_v57 = vld [vmem:[%s2265_s5 + $0x8] sm:$0xff] (!%p318_p3)  ;;  %v1608_v18 = vld [vmem:[%s2265_s5 + $0x10] sm:$0xff] (!%p318_p3) }
   0x9   : > { %1762 = vmatprep.subr.bf16.mxu0 (!%p318_p3), %v1761_v17  ;;  %v1599_v36 = vld [vmem:[%s2264_s4] ss:$0 sm:$0xff] (!%p318_p3)  ;;  %v2108_v60 = vld [vmem:[%s2266_s6 + $0x8] sm:$0xff] (!%p318_p3)  ;;  %s1959_s27 = smov (!%p318_p3), 80   ;;  %s1963_s23 = smov (!%p318_p3), 104   ;;  %vm1382_vm4 = vcmask (!%p318_p3), 195584  }
   0xa   : > { %1764 = vmatpush3.bf16.msra.mxu0 (!%p318_p3), %v1761_v17  ;;  %v533_v58 = vld [vmem:[%s2265_s5] sm:$0xff] (!%p318_p3)  ;;  %v1609_v17 = vld [vmem:[%s2265_s5 + $0x18] sm:$0xff] (!%p318_p3)  ;;  %s1964_s24 = smov (!%p318_p3), 48   ;;  %s1965_s29 = smov (!%p318_p3), 40  }
   0xb   : > { %1766 = vmatprep.subr.bf16.mxu0 (!%p318_p3), %v1765_v19  ;;  %s1966_s14 = smov (!%p318_p3), 16  }
   0xe   : > { %s2277_s30 = smov (!%p366_p4, %s1945_s30), 1  ;;  %1768 = vmatpush3.bf16.msra.mxu0 %v1765_v19 }
   0xf   : > { %s1637_s13 = sshll.u32 %s2277_s30, 4 }
  0x10   : > { %s374_s16 = scalar_lea.vmem %s2260_s0, %s1637_s13 }
  0x11   : > { %v389_v0 = vld [vmem:[%s374_s16] sm:$0xff]  ;;  %v390_v1 = vld [vmem:[%s374_s16 + $0x8] sm:$0xff]  ;;  %s1956_s16 = smov 96  }
  0x12   : > { %v394_v2 = vsel %vm393_vm0, %v389_v0, 0.0  ;;  %v397_v3 = vsel %vm393_vm0, %v390_v1, 0.0 }
  0x13   : > { %395 = vadd.xlane.f32.xlu0 %v394_v2 }
  0x17   : > { %398 = vadd.xlane.f32.xlu0 %v397_v3 }
  0xa0   : > { %v396_v4 = vpop.xlane.xlu0 %395 }
  0xa1   : > { %v401_v5 = vmul.f32 0.03125, %v396_v4 }
  0xa3   : > { %v403_v6 = vsub.f32 %v389_v0, %v401_v5  ;;  %v2113_v0 = vld [vmem:[%s2266_s6] sm:$0xff] }
  0xa4   : > { %v399_v7 = vpop.xlane.xlu0 %398 }
  0xa5   : > { %v402_v8 = vmul.f32 0.03125, %v399_v7  ;;  %v405_v9 = vmul.f32 %v403_v6, %v403_v6 }
  0xa7   : > { %v404_v10 = vsub.f32 %v390_v1, %v402_v8  ;;  %v407_v11 = vsel %vm393_vm0, %v405_v9, 0.0 }
  0xa8   : > { %408 = vadd.xlane.f32.xlu1 %v407_v11 }
  0xa9   : > { %v406_v12 = vmul.f32 %v404_v10, %v404_v10 }
  0xab   : > { %v410_v13 = vsel %vm393_vm0, %v406_v12, 0.0 }
  0xac   : > { %411 = vadd.xlane.f32.xlu1 %v410_v13 }
 0x135   : > { %v409_v20 = vpop.xlane.xlu1 %408 }
 0x136   : > { %v413_v21 = vmul.f32 0.03125, %v409_v20 }
 0x138   : > { %v415_v22 = vadd.f32 1e-05, %v413_v21 }
 0x139   : > { %v412_v23 = vpop.xlane.xlu1 %411 }
 0x13a   : > { %1895 = vrsqrt.f32 %v415_v22  ;;  %v414_v24 = vmul.f32 0.03125, %v412_v23 }
 0x13c   : > { %v416_v25 = vadd.f32 1e-05, %v414_v24 }
 0x13e   : > { %1897 = vrsqrt.f32 %v416_v25 }
 0x144   : > { %v1896_v26 = vpop.eup %1895 }
 0x145   : > { %v419_v28 = vmul.f32 %v1896_v26, %v403_v6 }
 0x147   : > { %v427_v30 = vmul.f32 %v1597_v27, %v419_v28 }
 0x148   : > { %v1898_v31 = vpop.eup %1897 }
 0x149   : > { %v420_v32 = vmul.f32 %v1898_v31, %v404_v10  ;;  %v435_v33 = vadd.f32 %v1598_v29, %v427_v30 }
 0x14b   : > { %v428_v34 = vmul.f32 %v1597_v27, %v420_v32  ;;  %1691 = vmatprep.mubr.msk.f32.mxu0 %vm393_vm0, %v435_v33 }
 0x14d   : > { %v436_v35 = vadd.f32 %v1598_v29, %v428_v34 }
 0x14f   : > { %1692 = vmatmul.mubr.msk.f32.vlgmr.msra.gmra.mrb[0].mxu0 %vm393_vm0, %v436_v35 }
 0x222   : > { %v1693_v37 = vpop.f32.mrb[0].mxu0 }
 0x223   : > { %v526_v38 = vadd.f32 %v1693_v37, %v1599_v36  ;;  %v520_v39 = vpop.f32.mrb[1].mxu0 }
 0x224   : > { %v521_v40 = vadd.f32 %v1599_v36, %v520_v39 }
 0x225   : > { %v2081_v43 = vmul.f32 0.35355338, %v526_v38 }
 0x226   : > { %v2072_v41 = vpack.i.bf16 %v526_v38, %v521_v40  ;;  %v2074_v42 = vmul.f32 0.35355338, %v521_v40 }
 0x228   : > { %1861 = vrot.lane.b32.xlu1 %v2072_v41, %s1955_s15  ;;  %1856 = vrot.lane.b32.xlu0 %v2072_v41, %s1956_s16  ;;  %s1960_s16 = smov 112   ;;  %s1967_s15 = smov 8  }
 0x229   : > { %1698 = vmatprep.mubr.msk.f32.mxu1 %vm541_vm1, %v2074_v42 }
 0x22c   : > { %1866 = vrot.lane.b32.xlu0 %v2072_v41, %s1957_s17  ;;  %s1961_s17 = smov 56  }
 0x230   : > { %744 = vrot.lane.b32.xlu0 %v2081_v43, %s1958_s18 }
 0x29a   : > { %v1862_v44 = vpop.permute.xlu1 %1861  ;;  %v1857_v45 = vpop.permute.xlu0 %1856 }
 0x29b   : > { %v1864_v46 = vunpack.i.h.bf16 %v1862_v44  ;;  %v1863_v47 = vunpack.i.l.bf16 %v1862_v44  ;;  %v1859_v48 = vunpack.i.h.bf16 %v1857_v45  ;;  %v1858_v49 = vunpack.i.l.bf16 %v1857_v45 }
 0x29d   : > { %v1769_v51 = vpack.c.bf16 %v1859_v48, %v1858_v49  ;;  %v1775_v52 = vpack.c.bf16 %v1864_v46, %v1863_v47 }
 0x29e   : > { %v1867_v53 = vpop.permute.xlu0 %1866 }
 0x29f   : > { %1771 = vmatprep.subr.msk.bf16.mxu1 %vm2087_vm2, %v1769_v51  ;;  %v1869_v54 = vunpack.i.h.bf16 %v1867_v53  ;;  %v1868_v55 = vunpack.i.l.bf16 %v1867_v53 }
 0x2a0   : > { %1774 = vmatpush3.bf16.xpose.msk.msra.mxu1 %vm2087_vm2, %v1769_v51  ;;  %v1617_v51 = vld [vmem:[%s2265_s5 + $0x28] sm:$0xff] }
 0x2a1   : > { %1776 = vmatprep.subr.bf16.mxu1 %v1775_v52  ;;  %v1779_v56 = vpack.c.bf16 %v1869_v54, %v1868_v55 }
 0x2a2   : > { %v745_v14 = vpop.permute.xlu0 %744 }
 0x2a7   : > { %1699 = vmatmul.mubr.msk.f32.vlgmr.msra.gmra.mrb[0].mxu1 %vm541_vm1, %v2081_v43 }
 0x2a8   : > { %1778 = vmatpush3.bf16.msra.mxu1 %v1775_v52  ;;  %v1616_v52 = vld [vmem:[%s2265_s5 + $0x20] sm:$0xff] }
 0x2a9   : > { %1781 = vmatprep.subr.msk.bf16.mxu1 %vm2087_vm2, %v1779_v56 }
 0x37a   : > { %v1700_v59 = vpop.f32.mrb[0].mxu1 }
 0x37b   : > { %v624_v61 = vadd.f32 %v1700_v59, %v534_v57  ;;  %v618_v62 = vpop.f32.mrb[1].mxu1 }
 0x37c   : > { %v619_v63 = vadd.f32 %v618_v62, %v533_v58 }
 0x37d   : > { %v628_v1 = vadd.f32 %v624_v61, %v2108_v60 }
 0x37e   : > { %v627_v3 = vadd.f32 %v619_v63, %v2113_v0 }
 0x37f   : > { %v633_v2 = vsel %vm629_vm3, %v628_v1, -inf }
 0x380   : > { %634 = vmax.xlane.f32.xlu1 %v633_v2  ;;  %v630_v4 = vsel %vm629_vm3, %v627_v3, -inf }
 0x384   : > { %631 = vmax.xlane.f32.xlu1 %v630_v4 }
 0x395   : > { %742 = vrot.lane.b32.xlu1 %v2074_v42, %s1958_s18  ;;  %s1962_s18 = smov 72  }
 0x399   : > { %1876 = vrot.lane.b32.xlu1 %v2072_v41, %s1959_s27 }
 0x40d   : > { %v635_v5 = vpop.xlane.xlu1 %634 }
 0x40e   : > { %v637_v6 = vsub.f32 %v628_v1, %v635_v5 }
 0x410   : > { %v640_v9 = vmul.f32 1.442695, %v637_v6 }
 0x411   : > { %v632_v7 = vpop.xlane.xlu1 %631 }
 0x412   : > { %v636_v8 = vsub.f32 %v627_v3, %v632_v7 }
 0x414   : > { %v638_v10 = vmul.f32 1.442695, %v636_v8 }
 0x415   : > { %v743_v13 = vpop.permute.xlu1 %742 }
 0x416   : > { %1899 = vpow2.f32 %v638_v10 }
 0x417   : > { %1901 = vpow2.f32 %v640_v9 }
 0x419   : > { %v1877_v27 = vpop.permute.xlu1 %1876 }
 0x41a   : > { %v1879_v35 = vunpack.i.h.bf16 %v1877_v27  ;;  %v1878_v36 = vunpack.i.l.bf16 %v1877_v27 }
 0x41c   : > { %v1789_v40 = vpack.c.bf16 %v1879_v35, %v1878_v36 }
 0x420   : > { %v2122_v11 = vpop.eup %1899 }
 0x421   : > { %v2124_v12 = vpop.eup %1901  ;;  %1705 = vmatprep.mubr.msk.f32.mxu1 %vm629_vm3, %v2122_v11 }
 0x422   : > { %1706 = vmatmul.mubr.msk.f32.vlgmr.msra.gmra.mrb[2].mxu1 %vm629_vm3, %v2124_v12 }
 0x423   : > { %1784 = vmatpush3.bf16.xpose.msk.msra.mxu1 %vm2087_vm2, %v1779_v56  ;;  %1712 = vmatprep.mubr.msk.f32.mxu1 %vm541_vm1, %v743_v13 }
 0x42a   : > { %1713 = vmatmul.mubr.msk.f32.vlgmr.msra.gmra.mrb[4].mxu1 %vm541_vm1, %v745_v14 }
 0x4f5   : > { %v2134_v15 = vpop.f32.mrb[2].mxu1 }
 0x4f6   : > { %v2136_v16 = vpop.f32.mrb[3].mxu1 }
 0x4fd   : > { %v1714_v19 = vpop.f32.mrb[4].mxu1 }
 0x4fe   : > { %v830_v20 = vadd.f32 %v1714_v19, %v1609_v17  ;;  %v824_v21 = vpop.f32.mrb[5].mxu1 }
 0x4ff   : > { %v825_v22 = vadd.f32 %v1608_v18, %v824_v21  ;;  %v1625_v21 = vld [vmem:[%s2265_s5 + $0x38] sm:$0xff] }
 0x500   : > { %v834_v23 = vadd.f32 %v830_v20, %v2108_v60 }
 0x501   : > { %v833_v24 = vadd.f32 %v825_v22, %v2113_v0  ;;  %v1624_v22 = vld [vmem:[%s2265_s5 + $0x30] sm:$0xff] }
 0x502   : > { %v838_v25 = vsel %vm629_vm3, %v834_v23, -inf }
 0x503   : > { %839 = vmax.xlane.f32.xlu0 %v838_v25  ;;  %v835_v26 = vsel %vm629_vm3, %v833_v24, -inf }
 0x504   : > { %836 = vmax.xlane.f32.xlu1 %v835_v26 }
 0x515   : > { %947 = vrot.lane.b32.xlu1 %v2074_v42, %s1960_s16 }
 0x519   : > { %1871 = vrot.lane.b32.xlu0 %v2072_v41, %s1961_s17  ;;  %1886 = vrot.lane.b32.xlu1 %v2072_v41, %s1962_s18 }
 0x51d   : > { %949 = vrot.lane.b32.xlu0 %v2081_v43, %s1960_s16 }
 0x590   : > { %v840_v28 = vpop.xlane.xlu0 %839 }
 0x591   : > { %v842_v29 = vsub.f32 %v834_v23, %v840_v28  ;;  %v837_v30 = vpop.xlane.xlu1 %836 }
 0x592   : > { %v841_v31 = vsub.f32 %v833_v24, %v837_v30 }
 0x593   : > { %v845_v32 = vmul.f32 1.442695, %v842_v29 }
 0x594   : > { %v843_v33 = vmul.f32 1.442695, %v841_v31  ;;  %v1872_v34 = vpop.permute.xlu0 %1871 }
 0x595   : > { %v1874_v37 = vunpack.i.h.bf16 %v1872_v34  ;;  %v1873_v38 = vunpack.i.l.bf16 %v1872_v34  ;;  %v948_v46 = vpop.permute.xlu1 %947 }
 0x596   : > { %1903 = vpow2.f32 %v843_v33 }
 0x597   : > { %1905 = vpow2.f32 %v845_v32  ;;  %v1785_v39 = vpack.c.bf16 %v1874_v37, %v1873_v38 }
 0x598   : > { %v950_v47 = vpop.permute.xlu0 %949 }
 0x599   : > { %1786 = vmatprep.subr.bf16.mxu0 %v1785_v39  ;;  %v1887_v62 = vpop.permute.xlu1 %1886 }
 0x59a   : > { %1788 = vmatpush3.bf16.msra.mxu0 %v1785_v39  ;;  %v1889_v7 = vunpack.i.h.bf16 %v1887_v62  ;;  %v1888_v8 = vunpack.i.l.bf16 %v1887_v62 }
 0x59b   : > { %1791 = vmatprep.subr.msk.bf16.mxu0 %vm2087_vm2, %v1789_v40 }
 0x59c   : > { %v1799_v13 = vpack.c.bf16 %v1889_v7, %v1888_v8 }
 0x5a0   : > { %v2154_v44 = vpop.eup %1903 }
 0x5a1   : > { %v2156_v45 = vpop.eup %1905  ;;  %1719 = vmatprep.mubr.msk.f32.mxu0 %vm629_vm3, %v2154_v44  ;;  %v847_v30 = vsel %vm629_vm3, %v2154_v44, 0.0 }
 0x5a2   : > { %1720 = vmatmul.mubr.msk.f32.vlgmr.msra.gmra.mrb[2].mxu0 %vm629_vm3, %v2156_v45  ;;  %v850_v31 = vsel %vm629_vm3, %v2156_v45, 0.0 }
 0x5a3   : > { %1794 = vmatpush3.bf16.xpose.msk.msra.mxu0 %vm2087_vm2, %v1789_v40  ;;  %1726 = vmatprep.mubr.msk.f32.mxu0 %vm541_vm1, %v948_v46 }
 0x5aa   : > { %1727 = vmatmul.mubr.msk.f32.vlgmr.msra.gmra.mrb[4].mxu0 %vm541_vm1, %v950_v47 }
 0x675   : > { %v2166_v48 = vpop.f32.mrb[2].mxu0 }
 0x676   : > { %v2168_v49 = vpop.f32.mrb[3].mxu0 }
 0x67d   : > { %v1728_v53 = vpop.f32.mrb[4].mxu0 }
 0x67e   : > { %v1035_v54 = vadd.f32 %v1728_v53, %v1617_v51  ;;  %v1029_v55 = vpop.f32.mrb[5].mxu0 }
 0x67f   : > { %v1030_v56 = vadd.f32 %v1616_v52, %v1029_v55  ;;  %v645_v55 = vsel %vm629_vm3, %v2124_v12, 0.0 }
 0x680   : > { %v1039_v57 = vadd.f32 %v1035_v54, %v2108_v60  ;;  %v642_v54 = vsel %vm629_vm3, %v2122_v11, 0.0 }
 0x681   : > { %v1038_v58 = vadd.f32 %v1030_v56, %v2113_v0 }
 0x682   : > { %v1043_v59 = vsel %vm629_vm3, %v1039_v57, -inf }
 0x683   : > { %1044 = vmax.xlane.f32.xlu0 %v1043_v59  ;;  %v1040_v61 = vsel %vm629_vm3, %v1038_v58, -inf }
 0x684   : > { %1041 = vmax.xlane.f32.xlu1 %v1040_v61 }
 0x695   : > { %1152 = vrot.lane.b32.xlu1 %v2074_v42, %s1963_s23 }
 0x699   : > { %1881 = vrot.lane.b32.xlu0 %v2072_v41, %s1964_s24  ;;  %s1968_s24 = smov 24  }
 0x69d   : > { %1154 = vrot.lane.b32.xlu0 %v2081_v43, %s1963_s23 }
 0x710   : > { %v1045_v63 = vpop.xlane.xlu0 %1044 }
 0x711   : > { %v1047_v1 = vsub.f32 %v1039_v57, %v1045_v63  ;;  %v1042_v2 = vpop.xlane.xlu1 %1041 }
 0x712   : > { %v1046_v3 = vsub.f32 %v1038_v58, %v1042_v2  ;;  %v1386_v2 = vld [vmem:[%s2267_s7 + $0x8] sm:$0xff] }
 0x713   : > { %v1050_v4 = vmul.f32 1.442695, %v1047_v1  ;;  %v1385_v1 = vld [vmem:[%s2267_s7] sm:$0xff] }
 0x714   : > { %v1048_v5 = vmul.f32 1.442695, %v1046_v3  ;;  %v1882_v6 = vpop.permute.xlu0 %1881  ;;  %v1809_v3 = vpack.c.bf16 %v1386_v2, %v1385_v1 }
 0x715   : > { %v1884_v9 = vunpack.i.h.bf16 %v1882_v6  ;;  %v1883_v10 = vunpack.i.l.bf16 %v1882_v6  ;;  %v1153_v17 = vpop.permute.xlu1 %1152 }
 0x716   : > { %1907 = vpow2.f32 %v1048_v5 }
 0x717   : > { %1909 = vpow2.f32 %v1050_v4  ;;  %v1795_v42 = vpack.c.bf16 %v1884_v9, %v1883_v10  ;;  %v1388_v4 = vld [vmem:[%s2267_s7 + $0x18] sm:$0xff] }
 0x718   : > { %v1155_v18 = vpop.permute.xlu0 %1154 }
 0x719   : > { %1796 = vmatprep.subr.bf16.mxu1 %v1795_v42 }
 0x71a   : > { %1798 = vmatpush3.bf16.msra.mxu1 %v1795_v42 }
 0x71b   : > { %1801 = vmatprep.subr.msk.bf16.mxu1 %vm2087_vm2, %v1799_v13 }
 0x720   : > { %v1908_v43 = vpop.eup %1907 }
 0x721   : > { %v1910_v14 = vpop.eup %1909  ;;  %1733 = vmatprep.mubr.msk.f32.mxu1 %vm629_vm3, %v1908_v43  ;;  %v1052_v32 = vsel %vm629_vm3, %v1908_v43, 0.0 }
 0x722   : > { %1734 = vmatmul.mubr.msk.f32.vlgmr.msra.gmra.mrb[6].mxu1 %vm629_vm3, %v1910_v14 }
 0x723   : > { %1804 = vmatpush3.bf16.xpose.msk.msra.mxu1 %vm2087_vm2, %v1799_v13  ;;  %1740 = vmatprep.mubr.msk.f32.mxu1 %vm541_vm1, %v1153_v17 }
 0x72a   : > { %1741 = vmatmul.mubr.msk.f32.vlgmr.msra.gmra.mrb[8].mxu1 %vm541_vm1, %v1155_v18 }
 0x7f5   : > { %v2191_v19 = vpop.f32.mrb[6].mxu1 }
 0x7f6   : > { %v1136_v20 = vpop.f32.mrb[7].mxu1 }
 0x7fd   : > { %v1742_v23 = vpop.f32.mrb[8].mxu1 }
 0x7fe   : > { %v1240_v24 = vadd.f32 %v1742_v23, %v1625_v21  ;;  %v1234_v50 = vpop.f32.mrb[9].mxu1 }
 0x7ff   : > { %v1235_v25 = vadd.f32 %v1624_v22, %v1234_v50 }
 0x800   : > { %v1244_v26 = vadd.f32 %v1240_v24, %v2108_v60  ;;  %v1055_v60 = vsel %vm629_vm3, %v1910_v14, 0.0 }
 0x801   : > { %v1243_v27 = vadd.f32 %v1235_v25, %v2113_v0 }
 0x802   : > { %v1248_v28 = vsel %vm629_vm3, %v1244_v26, -inf }
 0x803   : > { %1249 = vmax.xlane.f32.xlu0 %v1248_v28  ;;  %v1245_v29 = vsel %vm629_vm3, %v1243_v27, -inf }
 0x804   : > { %1246 = vmax.xlane.f32.xlu1 %v1245_v29 }
 0x808   : > { %848 = vadd.xlane.f32.xlu1 %v847_v30 }
 0x80c   : > { %851 = vadd.xlane.f32.xlu1 %v850_v31 }
 0x810   : > { %1053 = vadd.xlane.f32.xlu1 %v1052_v32 }
 0x814   : > { %1056 = vadd.xlane.f32.xlu1 %v1055_v60 }
 0x819   : > { %1891 = vrot.lane.b32.xlu0 %v2072_v41, %s1965_s29  ;;  %s388_s29 = scalar_lea.vmem %s2269_s9, %s1637_s13 }
 0x890   : > { %v1250_v0 = vpop.xlane.xlu0 %1249 }
 0x891   : > { %v1252_v33 = vsub.f32 %v1244_v26, %v1250_v0  ;;  %v1247_v34 = vpop.xlane.xlu1 %1246 }
 0x892   : > { %v1251_v35 = vsub.f32 %v1243_v27, %v1247_v34 }
 0x893   : > { %v1255_v36 = vmul.f32 1.442695, %v1252_v33 }
 0x894   : > { %v1253_v37 = vmul.f32 1.442695, %v1251_v35  ;;  %v1892_v38 = vpop.permute.xlu0 %1891 }
 0x895   : > { %1911 = vpow2.f32 %v1255_v36  ;;  %v1894_v39 = vunpack.i.h.bf16 %v1892_v38  ;;  %v1893_v40 = vunpack.i.l.bf16 %v1892_v38  ;;  %v849_v45 = vpop.xlane.xlu1 %848 }
 0x896   : > { %1913 = vpow2.f32 %v1253_v37 }
 0x897   : > { %v1805_v44 = vpack.c.bf16 %v1894_v39, %v1893_v40 }
 0x899   : > { %1806 = vmatprep.subr.bf16.mxu0 %v1805_v44  ;;  %v852_v47 = vpop.xlane.xlu1 %851 }
 0x89a   : > { %1808 = vmatpush3.bf16.msra.mxu0 %v1805_v44 }
 0x89b   : > { %1810 = vmatprep.subr.bf16.mxu0 %v1809_v3 }
 0x89d   : > { %v1054_v53 = vpop.xlane.xlu1 %1053 }
 0x89e   : > { %1915 = vrcp.f32 %v1054_v53 }
 0x89f   : > { %v1912_v46 = vpop.eup %1911  ;;  %1917 = vrcp.f32 %v849_v45 }
 0x8a0   : > { %v1914_v51 = vpop.eup %1913  ;;  %v1260_v41 = vsel %vm629_vm3, %v1912_v46, 0.0  ;;  %1919 = vrcp.f32 %v852_v47 }
 0x8a1   : > { %1261 = vadd.xlane.f32.xlu0 %v1260_v41  ;;  %1747 = vmatprep.mubr.msk.f32.mxu0 %vm629_vm3, %v1914_v51  ;;  %v1257_v52 = vsel %vm629_vm3, %v1914_v51, 0.0  ;;  %v1057_v56 = vpop.xlane.xlu1 %1056 }
 0x8a2   : > { %1748 = vmatmul.mubr.msk.f32.vlgmr.msra.gmra.mrb[6].mxu0 %vm629_vm3, %v1912_v46  ;;  %1258 = vadd.xlane.f32.xlu1 %v1257_v52  ;;  %1921 = vrcp.f32 %v1057_v56 }
 0x8a3   : > { %1812 = vmatpush3.bf16.msra.mxu0 %v1809_v3 }
 0x8a6   : > { %643 = vadd.xlane.f32.xlu1 %v642_v54 }
 0x8a8   : > { %v1916_v57 = vpop.eup %1915 }
 0x8a9   : > { %v1147_v58 = vmul.f32 %v1916_v57, %v1136_v20  ;;  %v1918_v59 = vpop.eup %1917 }
 0x8aa   : > { %646 = vadd.xlane.f32.xlu1 %v645_v55  ;;  %v942_v61 = vmul.f32 %v1918_v59, %v2168_v49  ;;  %v1920_v62 = vpop.eup %1919 }
 0x8ab   : > { %v943_v11 = vmul.f32 %v1920_v62, %v2166_v48  ;;  %v1387_v48 = vld [vmem:[%s2267_s7 + $0x10] sm:$0xff] }
 0x8ac   : > { %v1922_v63 = vpop.eup %1921  ;;  %v1813_v5 = vpack.c.bf16 %v1388_v4, %v1387_v48 }
 0x8ad   : > { %v1148_v12 = vmul.f32 %v1922_v63, %v2191_v19 }
 0x8ae   : > { %1814 = vmatprep.subr.bf16.mxu0 %v1813_v5 }
 0x8af   : > { %1816 = vmatpush3.bf16.msra.mxu0 %v1813_v5 }
 0x8b7   : > { %1364 = vrot.lane.b32.xlu0 %v1147_v58, %s1966_s14 }
 0x8bb   : > { %1356 = vrot.lane.b32.xlu1 %v942_v61, %s1967_s15 }
 0x8bf   : > { %1358 = vrot.lane.b32.xlu1 %v943_v11, %s1967_s15 }
 0x8c3   : > { %1366 = vrot.lane.b32.xlu1 %v1148_v12, %s1966_s14 }
 0x92e   : > { %v1262_v6 = vpop.xlane.xlu0 %1261 }
 0x92f   : > { %v1259_v49 = vpop.xlane.xlu1 %1258 }
 0x930   : > { %1923 = vrcp.f32 %v1259_v49 }
 0x931   : > { %1925 = vrcp.f32 %v1262_v6 }
 0x932   : > { %v1365_v50 = vpop.permute.xlu0 %1364 }
 0x933   : > { %v644_v43 = vpop.xlane.xlu1 %643 }
 0x934   : > { %1927 = vrcp.f32 %v644_v43 }
 0x937   : > { %v647_v14 = vpop.xlane.xlu1 %646 }
 0x938   : > { %1929 = vrcp.f32 %v647_v14 }
 0x93a   : > { %v1924_v8 = vpop.eup %1923 }
 0x93b   : > { %v1926_v42 = vpop.eup %1925  ;;  %v1357_v17 = vpop.permute.xlu1 %1356 }
 0x93e   : > { %v1928_v18 = vpop.eup %1927 }
 0x93f   : > { %v1359_v19 = vpop.permute.xlu1 %1358  ;;  %v737_v20 = vmul.f32 %v1928_v18, %v2136_v16 }
 0x941   : > { %v1378_v23 = vsel %vm541_vm1, %v737_v20, %v1357_v17 }
 0x942   : > { %v1930_v21 = vpop.eup %1929  ;;  %v1380_v25 = vsel %vm629_vm3, %v1378_v23, %v1365_v50 }
 0x943   : > { %v1367_v22 = vpop.permute.xlu1 %1366  ;;  %v738_v24 = vmul.f32 %v1930_v21, %v2134_v15  ;;  %v1632_v15 = vld [vmem:[%s2268_s8] ss:$0 sm:$0xff] }
 0x945   : > { %v1379_v27 = vsel %vm541_vm1, %v738_v24, %v1359_v19 }
 0x946   : > { %v1381_v29 = vsel %vm629_vm3, %v1379_v27, %v1367_v22 }
 0x975   : > { %v1749_v7 = vpop.f32.mrb[6].mxu0 }
 0x976   : > { %v1341_v9 = vpop.f32.mrb[7].mxu0  ;;  %v1353_v13 = vmul.f32 %v1926_v42, %v1749_v7 }
 0x977   : > { %v1352_v10 = vmul.f32 %v1924_v8, %v1341_v9 }
 0x979   : > { %1372 = vrot.lane.b32.xlu1 %v1352_v10, %s1968_s24 }
 0x97d   : > { %1374 = vrot.lane.b32.xlu1 %v1353_v13, %s1968_s24 }
 0x9eb   : > { %v1373_v26 = vpop.permute.xlu1 %1372 }
 0x9ec   : > { %v1383_v28 = vsel %vm1382_vm4, %v1380_v25, %v1373_v26 }
 0x9ed   : > { %1758 = vmatprep.mubr.msk.f32.mxu0 %vm393_vm0, %v1383_v28 }
 0x9ef   : > { %v1375_v16 = vpop.permute.xlu1 %1374 }
 0x9f0   : > { %v1384_v30 = vsel %vm1382_vm4, %v1381_v29, %v1375_v16 }
 0x9f1   : > { %1759 = vmatmul.mubr.msk.f32.vlgmr.msra.gmra.mrb[8].mxu0 %vm393_vm0, %v1384_v30 }
 0xac4   : > { %v1760_v31 = vpop.f32.mrb[8].mxu0 }
 0xac5   : > { %v1474_v32 = vadd.f32 %v1760_v31, %v1632_v15  ;;  %v1468_v60 = vpop.f32.mrb[9].mxu0 }
 0xac6   : > { %v1469_v0 = vadd.f32 %v1632_v15, %v1468_v60 }
 0xac7   : > { %1478 = vst.msk [vmem:[%s388_s29 + $0x8] sm:$0xff] %vm393_vm0, %v1474_v32 }
 0xac8   : > { %1477 = vst.msk [vmem:[%s388_s29] sm:$0xff] %vm393_vm0, %v1469_v0 }
 0xac9 PF: > { %s19_s11 = sadd.s32 1, %s1953_s11   ;;  %s2272_s30 = smov %s1949_s10 }
 0xaca   : > { %p16_p5 = scmp.ge.s32.totalorder %s19_s11, 4   ;;  %s2273_s10 = smov %s2275_s12 }
 0xacc   :  { %18 = sbr.rel (!%p16_p5) target bundleno = 2 (0x2), region = 92 }

// kernel: swin_forward.18
= control target key start
LH: loop header
LB: loop body
LE: loop exit
PB: predicated region body
PF: predicated region fallthrough
CT: control target
= control target key end

     0   :  { %vm32_vm0 = vcmask 261120   ;;  %s800_s0 = inlined_call_operand.vmem [shape: f32[32,32], index: 0, kind: input, shape index: {}]   ;;  %s801_s3 = inlined_call_operand.vmem [shape: f32[32,128], index: 3, kind: input, shape index: {}]   ;;  %s802_s1 = inlined_call_operand.vmem [shape: f32[1,32], index: 1, kind: input, shape index: {}]   ;;  %s803_s2 = inlined_call_operand.vmem [shape: f32[1,32], index: 2, kind: input, shape index: {}]   ;;  %s804_s5 = inlined_call_operand.vmem [shape: f32[128,32], index: 5, kind: input, shape index: {}]   ;;  %s805_s4 = inlined_call_operand.vmem [shape: f32[1,128], index: 4, kind: input, shape index: {}]   ;;  %s806_s6 = inlined_call_operand.vmem [shape: f32[1,32], index: 6, kind: input, shape index: {}]   ;;  %s807_s7 = inlined_call_operand.vmem [shape: f32[32,32], index: 7, kind: output, shape index: {}]  }
   0x1   :  { %v639_v0 = vld [vmem:[%s800_s0] sm:$0xff]  ;;  %v644_v1 = vld [vmem:[%s800_s0 + $0x10] sm:$0xff]  ;;  %v649_v2 = vld [vmem:[%s800_s0 + $0x8] sm:$0xff] }
   0x2   :  { %v33_v3 = vsel %vm32_vm0, %v639_v0, 0.0  ;;  %v39_v4 = vsel %vm32_vm0, %v644_v1, 0.0  ;;  %v658_v5 = vld [vmem:[%s800_s0 + $0x18] sm:$0xff]  ;;  %v36_v6 = vsel %vm32_vm0, %v649_v2, 0.0  ;;  %v106_v28 = vld [vmem:[%s801_s3] sm:$0xff]  ;;  %v107_v29 = vld [vmem:[%s801_s3 + $0x8] sm:$0xff] }
   0x3   :  { %34 = vadd.xlane.f32.xlu0 %v33_v3  ;;  %40 = vadd.xlane.f32.xlu1 %v39_v4  ;;  %v42_v7 = vsel %vm32_vm0, %v658_v5, 0.0  ;;  %v108_v30 = vld [vmem:[%s801_s3 + $0x10] sm:$0xff]  ;;  %v530_v31 = vpack.c.bf16 %v107_v29, %v106_v28  ;;  %v109_v32 = vld [vmem:[%s801_s3 + $0x18] sm:$0xff]  ;;  %v442_v47 = vld [vmem:[%s802_s1] ss:$0 sm:$0xff] }
   0x4   :  { %v534_v33 = vpack.c.bf16 %v109_v32, %v108_v30  ;;  %v443_v49 = vld [vmem:[%s803_s2] ss:$0 sm:$0xff]  ;;  %v323_v4 = vld [vmem:[%s804_s5 + $0x8] sm:$0xff] }
   0x5   :  { %531 = vmatprep.subr.bf16.mxu0 %v530_v31  ;;  %v322_v3 = vld [vmem:[%s804_s5] sm:$0xff] }
   0x6   :  { %533 = vmatpush3.bf16.msra.mxu0 %v530_v31  ;;  %v444_v28 = vld [vmem:[%s805_s4] ss:$0 sm:$0xff] }
   0x7   :  { %37 = vadd.xlane.f32.xlu0 %v36_v6  ;;  %43 = vadd.xlane.f32.xlu1 %v42_v7  ;;  %v538_v6 = vpack.c.bf16 %v323_v4, %v322_v3  ;;  %v324_v7 = vld [vmem:[%s804_s5 + $0x10] sm:$0xff] }
   0x8   :  { %535 = vmatprep.subr.bf16.mxu0 %v534_v33 }
   0x9   :  { %539 = vmatprep.subr.bf16.mxu1 %v538_v6 }
   0xa   :  { %537 = vmatpush3.bf16.msra.mxu0 %v534_v33  ;;  %541 = vmatpush3.bf16.msra.mxu1 %v538_v6 }
  0x90   :  { %v35_v8 = vpop.xlane.xlu0 %34  ;;  %v41_v9 = vpop.xlane.xlu1 %40 }
  0x91   :  { %v46_v10 = vmul.f32 0.03125, %v35_v8  ;;  %v48_v11 = vmul.f32 0.03125, %v41_v9  ;;  %v325_v8 = vld [vmem:[%s804_s5 + $0x18] sm:$0xff] }
  0x92   :  { %v542_v9 = vpack.c.bf16 %v325_v8, %v324_v7 }
  0x93   :  { %v50_v12 = vsub.f32 %v639_v0, %v46_v10  ;;  %v52_v13 = vsub.f32 %v644_v1, %v48_v11  ;;  %v326_v10 = vld [vmem:[%s804_s5 + $0x20] sm:$0xff]  ;;  %v327_v11 = vld [vmem:[%s804_s5 + $0x28] sm:$0xff] }
  0x94   :  { %v38_v14 = vpop.xlane.xlu0 %37  ;;  %v44_v15 = vpop.xlane.xlu1 %43  ;;  %543 = vmatprep.subr.bf16.mxu1 %v542_v9 }
  0x95   :  { %v47_v16 = vmul.f32 0.03125, %v38_v14  ;;  %v49_v17 = vmul.f32 0.03125, %v44_v15  ;;  %v54_v18 = vmul.f32 %v50_v12, %v50_v12  ;;  %v56_v19 = vmul.f32 %v52_v13, %v52_v13  ;;  %v329_v14 = vld [vmem:[%s804_s5 + $0x38] sm:$0xff]  ;;  %545 = vmatpush3.bf16.msra.mxu1 %v542_v9 }
  0x97   :  { %v51_v20 = vsub.f32 %v649_v2, %v47_v16  ;;  %v53_v21 = vsub.f32 %v658_v5, %v49_v17  ;;  %v58_v22 = vsel %vm32_vm0, %v54_v18, 0.0  ;;  %v64_v23 = vsel %vm32_vm0, %v56_v19, 0.0  ;;  %v330_v16 = vld [vmem:[%s804_s5 + $0x40] sm:$0xff]  ;;  %v331_v17 = vld [vmem:[%s804_s5 + $0x48] sm:$0xff]  ;;  %v332_v19 = vld [vmem:[%s804_s5 + $0x50] sm:$0xff] }
  0x98   :  { %59 = vadd.xlane.f32.xlu0 %v58_v22  ;;  %v554_v18 = vpack.c.bf16 %v331_v17, %v330_v16  ;;  %v334_v22 = vld [vmem:[%s804_s5 + $0x60] sm:$0xff] }
  0x99   :  { %v55_v24 = vmul.f32 %v51_v20, %v51_v20  ;;  %v57_v25 = vmul.f32 %v53_v21, %v53_v21 }
  0x9b   :  { %v61_v26 = vsel %vm32_vm0, %v55_v24, 0.0  ;;  %v67_v27 = vsel %vm32_vm0, %v57_v25, 0.0  ;;  %v336_v25 = vld [vmem:[%s804_s5 + $0x70] sm:$0xff] }
  0x9c   :  { %65 = vadd.xlane.f32.xlu0 %v64_v23  ;;  %62 = vadd.xlane.f32.xlu1 %v61_v26  ;;  %v335_v23 = vld [vmem:[%s804_s5 + $0x68] sm:$0xff]  ;;  %v337_v26 = vld [vmem:[%s804_s5 + $0x78] sm:$0xff] }
  0x9d   :  { %v562_v24 = vpack.c.bf16 %v335_v23, %v334_v22 }
  0xa0   :  { %68 = vadd.xlane.f32.xlu1 %v67_v27  ;;  %v566_v27 = vpack.c.bf16 %v337_v26, %v336_v25 }
 0x125   :  { %v60_v34 = vpop.xlane.xlu0 %59 }
 0x126   :  { %v70_v35 = vmul.f32 0.03125, %v60_v34 }
 0x128   :  { %v74_v36 = vadd.f32 1e-05, %v70_v35 }
 0x129   :  { %v63_v37 = vpop.xlane.xlu1 %62  ;;  %v66_v38 = vpop.xlane.xlu0 %65 }
 0x12a   :  { %571 = vrsqrt.f32 %v74_v36  ;;  %v71_v39 = vmul.f32 0.03125, %v63_v37  ;;  %v72_v40 = vmul.f32 0.03125, %v66_v38 }
 0x12c   :  { %v75_v41 = vadd.f32 1e-05, %v71_v39  ;;  %v76_v42 = vadd.f32 1e-05, %v72_v40 }
 0x12d   :  { %v69_v43 = vpop.xlane.xlu1 %68 }
 0x12e   :  { %573 = vrsqrt.f32 %v75_v41  ;;  %v73_v44 = vmul.f32 0.03125, %v69_v43 }
 0x12f   :  { %575 = vrsqrt.f32 %v76_v42 }
 0x130   :  { %v77_v45 = vadd.f32 1e-05, %v73_v44 }
 0x132   :  { %577 = vrsqrt.f32 %v77_v45 }
 0x134   :  { %v572_v46 = vpop.eup %571 }
 0x135   :  { %v82_v48 = vmul.f32 %v572_v46, %v50_v12  ;;  %v546_v12 = vpack.c.bf16 %v327_v11, %v326_v10 }
 0x137   :  { %v92_v50 = vmul.f32 %v442_v47, %v82_v48  ;;  %547 = vmatprep.subr.bf16.mxu1 %v546_v12 }
 0x138   :  { %v574_v51 = vpop.eup %573  ;;  %549 = vmatpush3.bf16.msra.mxu1 %v546_v12 }
 0x139   :  { %v576_v52 = vpop.eup %575  ;;  %v102_v53 = vadd.f32 %v443_v49, %v92_v50  ;;  %v83_v54 = vmul.f32 %v574_v51, %v51_v20  ;;  %v333_v20 = vld [vmem:[%s804_s5 + $0x58] sm:$0xff] }
 0x13a   :  { %v84_v55 = vmul.f32 %v576_v52, %v52_v13  ;;  %v328_v13 = vld [vmem:[%s804_s5 + $0x30] sm:$0xff] }
 0x13b   :  { %486 = vmatprep.mubr.msk.f32.mxu0 %vm32_vm0, %v102_v53  ;;  %v93_v56 = vmul.f32 %v442_v47, %v83_v54  ;;  %v550_v15 = vpack.c.bf16 %v329_v14, %v328_v13 }
 0x13c   :  { %v578_v57 = vpop.eup %577  ;;  %v94_v58 = vmul.f32 %v442_v47, %v84_v55 }
 0x13d   :  { %v103_v59 = vadd.f32 %v443_v49, %v93_v56  ;;  %v85_v60 = vmul.f32 %v578_v57, %v53_v21  ;;  %551 = vmatprep.subr.bf16.mxu1 %v550_v15  ;;  %v558_v21 = vpack.c.bf16 %v333_v20, %v332_v19 }
 0x13e   :  { %v104_v61 = vadd.f32 %v443_v49, %v94_v58  ;;  %553 = vmatpush3.bf16.msra.mxu1 %v550_v15 }
 0x13f   :  { %487 = vmatmul.mubr.msk.f32.vlgmr.msra.gmra.mrb[0].mxu0 %vm32_vm0, %v103_v59  ;;  %v95_v62 = vmul.f32 %v442_v47, %v85_v60  ;;  %555 = vmatprep.subr.bf16.mxu1 %v554_v18 }
 0x140   :  { %489 = vmatprep.mubr.msk.f32.mxu0 %vm32_vm0, %v104_v61 }
 0x141   :  { %v105_v63 = vadd.f32 %v443_v49, %v95_v62 }
 0x142   :  { %557 = vmatpush3.bf16.msra.mxu1 %v554_v18 }
 0x143   :  { %490 = vmatmul.mubr.msk.f32.gmra.mrb[2].mxu0 %vm32_vm0, %v105_v63  ;;  %559 = vmatprep.subr.bf16.mxu1 %v558_v21 }
 0x146   :  { %561 = vmatpush3.bf16.msra.mxu1 %v558_v21 }
 0x147   :  { %563 = vmatprep.subr.bf16.mxu1 %v562_v24 }
 0x14a   :  { %565 = vmatpush3.bf16.msra.mxu1 %v562_v24 }
 0x14b   :  { %567 = vmatprep.subr.bf16.mxu1 %v566_v27 }
 0x14e   :  { %569 = vmatpush3.bf16.msra.mxu1 %v566_v27 }
 0x212   :  { %v488_v29 = vpop.f32.mrb[0].mxu0 }
 0x213   :  { %v745_v30 = vadd.f32 %v488_v29, %v444_v28  ;;  %v195_v31 = vpop.f32.mrb[1].mxu0 }
 0x214   :  { %v747_v32 = vadd.f32 %v444_v28, %v195_v31 }
 0x215   :  { %v750_v33 = vmul.f32 0.70710677, %v745_v30 }
 0x216   :  { %v753_v34 = vmul.f32 0.70710677, %v747_v32  ;;  %v491_v35 = vpop.f32.mrb[2].mxu0 }
 0x217   :  { %v231_v36 = vand.u32 2147483647, %v750_v33  ;;  %v756_v37 = vadd.f32 %v491_v35, %v444_v28  ;;  %v205_v38 = vpop.f32.mrb[3].mxu0  ;;  %vm223_vm1 = vcmp.lt.f32.partialorder %v750_v33, 0.0 }
 0x218   :  { %v230_v39 = vand.u32 2147483647, %v753_v34  ;;  %v759_v40 = vadd.f32 %v444_v28, %v205_v38  ;;  %vm222_vm2 = vcmp.lt.f32.partialorder %v753_v34, 0.0 }
 0x219   :  { %v235_v41 = vmul.f32 0.3275911, %v231_v36  ;;  %v762_v42 = vmul.f32 0.70710677, %v756_v37  ;;  %v287_v53 = vsub.f32 0.0, %v231_v36 }
 0x21a   :  { %v234_v43 = vmul.f32 0.3275911, %v230_v39  ;;  %v765_v44 = vmul.f32 0.70710677, %v759_v40  ;;  %v286_v54 = vsub.f32 0.0, %v230_v39 }
 0x21b   :  { %v239_v45 = vadd.f32 1.0, %v235_v41  ;;  %v233_v46 = vand.u32 2147483647, %v762_v42  ;;  %v291_v56 = vmul.f32 %v287_v53, %v231_v36  ;;  %vm225_vm3 = vcmp.lt.f32.partialorder %v762_v42, 0.0 }
 0x21c   :  { %v238_v47 = vadd.f32 1.0, %v234_v43  ;;  %v232_v49 = vand.u32 2147483647, %v765_v44  ;;  %v290_v59 = vmul.f32 %v286_v54, %v230_v39  ;;  %vm224_vm4 = vcmp.lt.f32.partialorder %v765_v44, 0.0 }
 0x21d   :  { %579 = vrcp.f32 %v239_v45  ;;  %v237_v48 = vmul.f32 0.3275911, %v233_v46  ;;  %v289_v57 = vsub.f32 0.0, %v233_v46  ;;  %v296_v4 = vmul.f32 1.442695, %v291_v56 }
 0x21e   :  { %581 = vrcp.f32 %v238_v47  ;;  %v236_v51 = vmul.f32 0.3275911, %v232_v49  ;;  %v288_v62 = vsub.f32 0.0, %v232_v49  ;;  %v294_v8 = vmul.f32 1.442695, %v290_v59 }
 0x21f   :  { %v241_v50 = vadd.f32 1.0, %v237_v48  ;;  %v293_v6 = vmul.f32 %v289_v57, %v233_v46  ;;  %v595_v59 = vmov 1.0  }
 0x220   :  { %v240_v52 = vadd.f32 1.0, %v236_v51  ;;  %v292_v13 = vmul.f32 %v288_v62, %v232_v49 }
 0x221   :  { %583 = vrcp.f32 %v241_v50  ;;  %v300_v16 = vmul.f32 1.442695, %v293_v6 }
 0x222   :  { %585 = vrcp.f32 %v240_v52  ;;  %v298_v23 = vmul.f32 1.442695, %v292_v13 }
 0x223   :  { %587 = vpow2.f32 %v296_v4 }
 0x224   :  { %589 = vpow2.f32 %v294_v8 }
 0x225   :  { %591 = vpow2.f32 %v300_v16 }
 0x226   :  { %593 = vpow2.f32 %v298_v23 }
 0x227   :  { %v580_v55 = vpop.eup %579 }
 0x228   :  { %v582_v58 = vpop.eup %581  ;;  %v251_v60 = vmul.f32 1.0614054, %v580_v55 }
 0x229   :  { %v250_v61 = vmul.f32 1.0614054, %v582_v58 }
 0x22a   :  { %v255_v63 = vadd.f32 -1.4531521, %v251_v60  ;;  %v227_v60 = vsel %vm223_vm1, -1.0, %v595_v59 }
 0x22b   :  { %v584_v3 = vpop.eup %583  ;;  %v254_v7 = vadd.f32 -1.4531521, %v250_v61 }
 0x22c   :  { %v259_v9 = vmul.f32 %v580_v55, %v255_v63  ;;  %v253_v10 = vmul.f32 1.0614054, %v584_v3  ;;  %v586_v12 = vpop.eup %585 }
 0x22d   :  { %v258_v11 = vmul.f32 %v582_v58, %v254_v7  ;;  %v252_v18 = vmul.f32 1.0614054, %v586_v12  ;;  %v588_v46 = vpop.eup %587  ;;  %v214_v7 = vmul.f32 0.5, %v747_v32  ;;  %v216_v32 = vmul.f32 0.5, %v759_v40 }
 0x22e   :  { %v263_v14 = vadd.f32 1.4214138, %v259_v9  ;;  %v257_v15 = vadd.f32 -1.4531521, %v253_v10  ;;  %v590_v49 = vpop.eup %589  ;;  %v229_v9 = vsel %vm225_vm3, -1.0, %v595_v59 }
 0x22f   :  { %v262_v17 = vadd.f32 1.4214138, %v258_v11  ;;  %v256_v22 = vadd.f32 -1.4531521, %v252_v18  ;;  %v592_v57 = vpop.eup %591  ;;  %v215_v11 = vmul.f32 0.5, %v745_v30 }
 0x230   :  { %v267_v19 = vmul.f32 %v580_v55, %v263_v14  ;;  %v261_v20 = vmul.f32 %v584_v3, %v257_v15  ;;  %v594_v6 = vpop.eup %593  ;;  %v228_v15 = vsel %vm224_vm4, -1.0, %v595_v59  ;;  %v449_v30 = vld [vmem:[%s806_s6] ss:$0 sm:$0xff] }
 0x231   :  { %v266_v21 = vmul.f32 %v582_v58, %v262_v17  ;;  %v260_v27 = vmul.f32 %v586_v12, %v256_v22 }
 0x232   :  { %v271_v24 = vadd.f32 -0.28449672, %v267_v19  ;;  %v265_v25 = vadd.f32 1.4214138, %v261_v20  ;;  %v217_v19 = vmul.f32 0.5, %v756_v37 }
 0x233   :  { %v270_v26 = vadd.f32 -0.28449672, %v266_v21  ;;  %v264_v35 = vadd.f32 1.4214138, %v260_v27 }
 0x234   :  { %v275_v28 = vmul.f32 %v580_v55, %v271_v24  ;;  %v269_v29 = vmul.f32 %v584_v3, %v265_v25 }
 0x235   :  { %v274_v31 = vmul.f32 %v582_v58, %v270_v26  ;;  %v268_v41 = vmul.f32 %v586_v12, %v264_v35 }
 0x236   :  { %v279_v36 = vadd.f32 0.2548296, %v275_v28  ;;  %v273_v38 = vadd.f32 -0.28449672, %v269_v29 }
 0x237   :  { %v278_v39 = vadd.f32 0.2548296, %v274_v31  ;;  %v272_v48 = vadd.f32 -0.28449672, %v268_v41 }
 0x238   :  { %v283_v43 = vmul.f32 %v580_v55, %v279_v36  ;;  %v277_v45 = vmul.f32 %v584_v3, %v273_v38 }
 0x239   :  { %v282_v47 = vmul.f32 %v582_v58, %v278_v39  ;;  %v276_v53 = vmul.f32 %v586_v12, %v272_v48  ;;  %v226_v58 = vsel %vm222_vm2, -1.0, %v595_v59 }
 0x23a   :  { %v303_v50 = vmul.f32 %v588_v46, %v283_v43  ;;  %v281_v51 = vadd.f32 0.2548296, %v277_v45 }
 0x23b   :  { %v302_v52 = vmul.f32 %v590_v49, %v282_v47  ;;  %v280_v55 = vadd.f32 0.2548296, %v276_v53 }
 0x23c   :  { %v307_v54 = vsub.f32 1.0, %v303_v50  ;;  %v285_v56 = vmul.f32 %v584_v3, %v281_v51 }
 0x23d   :  { %v306_v61 = vsub.f32 1.0, %v302_v52  ;;  %v284_v33 = vmul.f32 %v586_v12, %v280_v55 }
 0x23e   :  { %v311_v62 = vmul.f32 %v307_v54, %v227_v60  ;;  %v305_v63 = vmul.f32 %v592_v57, %v285_v56 }
 0x23f   :  { %v310_v4 = vmul.f32 %v306_v61, %v226_v58  ;;  %v304_v10 = vmul.f32 %v594_v6, %v284_v33 }
 0x240   :  { %v315_v34 = vadd.f32 1.0, %v311_v62  ;;  %v309_v8 = vsub.f32 1.0, %v305_v63 }
 0x241   :  { %v314_v3 = vadd.f32 1.0, %v310_v4  ;;  %v308_v42 = vsub.f32 1.0, %v304_v10 }
 0x242   :  { %v313_v13 = vmul.f32 %v309_v8, %v229_v9  ;;  %v319_v16 = vmul.f32 %v315_v34, %v215_v11 }
 0x243   :  { %v318_v14 = vmul.f32 %v314_v3, %v214_v7  ;;  %v312_v17 = vmul.f32 %v308_v42, %v228_v15 }
 0x244   :  { %v317_v12 = vadd.f32 1.0, %v313_v13 }
 0x245   :  { %524 = vmatprep.mubr.f32.mxu1 %v318_v14  ;;  %v316_v18 = vadd.f32 1.0, %v312_v17 }
 0x246   :  { %525 = vmatmul.mubr.f32.vlgmr.msra.gmra.mrb[0].mxu1 %v319_v16  ;;  %v321_v44 = vmul.f32 %v317_v12, %v217_v19 }
 0x247   :  { %v320_v20 = vmul.f32 %v316_v18, %v216_v32 }
 0x249   :  { %527 = vmatprep.mubr.f32.mxu1 %v320_v20 }
 0x24a   :  { %528 = vmatmul.mubr.f32.gmra.mrb[2].mxu1 %v321_v44 }
 0x319   :  { %v526_v21 = vpop.f32.mrb[0].mxu1 }
 0x31a   :  { %v417_v22 = vadd.f32 %v526_v21, %v449_v30  ;;  %v411_v23 = vpop.f32.mrb[1].mxu1 }
 0x31b   :  { %v412_v24 = vadd.f32 %v449_v30, %v411_v23 }
 0x31c   :  { %v431_v25 = vadd.f32 %v417_v22, %v649_v2 }
 0x31d   :  { %v430_v26 = vadd.f32 %v412_v24, %v639_v0  ;;  %v529_v37 = vpop.f32.mrb[2].mxu1 }
 0x31e   :  { %435 = vst.msk [vmem:[%s807_s7 + $0x8] sm:$0xff] %vm32_vm0, %v431_v25  ;;  %v427_v40 = vadd.f32 %v529_v37, %v449_v30  ;;  %v421_v27 = vpop.f32.mrb[3].mxu1 }
 0x31f   :  { %434 = vst.msk [vmem:[%s807_s7] sm:$0xff] %vm32_vm0, %v430_v26  ;;  %v422_v28 = vadd.f32 %v449_v30, %v421_v27 }
 0x320   :  { %v433_v29 = vadd.f32 %v427_v40, %v658_v5 }
 0x321   :  { %v432_v2 = vadd.f32 %v422_v28, %v644_v1 }
 0x322   :  { %437 = vst.msk [vmem:[%s807_s7 + $0x18] sm:$0xff] %vm32_vm0, %v433_v29 }
 0x323   :  { %436 = vst.msk [vmem:[%s807_s7 + $0x10] sm:$0xff] %vm32_vm0, %v432_v2 }

// kernel: swin_forward.21
= control target key start
LH: loop header
LB: loop body
LE: loop exit
PB: predicated region body
PF: predicated region fallthrough
CT: control target
= control target key end

     0   :  { %10 = vsyncpa [#allocation3], 0  ;;  %s736_s0 = inlined_call_operand.vmem [shape: f32[2,16,32], index: 0, kind: input, shape index: {}]   ;;  %s737_s1 = inlined_call_operand.vmem [shape: f32[1,32], index: 1, kind: input, shape index: {}]   ;;  %s738_s2 = inlined_call_operand.vmem [shape: f32[1,32], index: 2, kind: input, shape index: {}]   ;;  %s739_s3 = inlined_call_operand.vmem [shape: f32[32,10], index: 3, kind: input, shape index: {}]   ;;  %s740_s4 = inlined_call_operand.vmem [shape: f32[1,10], index: 4, kind: input, shape index: {}]   ;;  %s741_s5 = inlined_call_operand.hbm [shape: f32[2,1,10], index: 5, kind: output, shape index: {}]  }
   0x1   :  { %12 = vsyncpa [#allocation3 + $0x1], 0  ;;  %s608_s18 = smov 0   ;;  %s610_s19 = smov 0  }
   0x2   :  { %s612_s20 = smov 0   ;;  %s614_s21 = smov 0  }
   0x3 LB: > { %s629_s22 = sadd.s32 4294967295, %s572_s21   ;;  %s429_s23 = sadd.s32 4294967294, %s572_s21   ;;  %s572_s21 = sphi %s614_s21, %s747_s21   ;;  %s568_s20 = sphi %s612_s20, %s746_s20   ;;  %s564_s19 = sphi %s610_s19, %s745_s19   ;;  %s560_s18 = sphi %s608_s18, %s744_s18  }
   0x4   : > { %s633_s24 = sadd.s32 1, %s572_s21   ;;  %s135_s25 = sadd.s32 1, %s568_s20 }
   0x5   : > { %s132_s26 = ssub.s32 %s572_s21, %s633_s24  ;;  %p145_p0 = scmp.ne.s32.totalorder %s568_s20, %s564_s19 }
   0x6   : > { %p133_p1 = scmp.eq.s32.totalorder %s132_s26, 0  ;;  %p146_p2 = scmp.eq.s32.totalorder %s629_s22, 1 }
   0x7   : > { %p151_p3 = scmp.ne.s32.totalorder %s564_s19, %s560_s18  ;;  %p152_p4 = scmp.eq.s32.totalorder %s429_s23, 1 }
   0x8   : > { %s644_s27 = scalar_select %p133_p1, %s568_s20, %s135_s25  }
   0x9   : > { %p646_p5 = por %p146_p2, %p145_p0  ;;  %p650_p6 = por %p152_p4, %p151_p3 }
   0xa   : > { %p432_p7 = scmp.ge.s32.totalorder %s572_s21, 1  ;;  %p190_p8 = scmp.lt.s32.totalorder %s572_s21, 3 }
   0xc   : > { %p191_p9 = pnand %p432_p7, %p190_p8 }
   0xd   : > { %p217_p10 = scmp.lt.s32.totalorder (!%p191_p9), %s629_s22, 1  ;;  %vm226_vm0 = vcmask (!%p191_p9), 261120   ;;  %v281_v14 = vld [vmem:[%s739_s3] sm:$0xff] (!%p191_p9)  ;;  %v282_v15 = vld [vmem:[%s739_s3 + $0x8] sm:$0xff] (!%p191_p9)  ;;  %v283_v16 = vld [vmem:[%s739_s3 + $0x10] sm:$0xff] (!%p191_p9)  ;;  %v574_v17 = vmov (!%p191_p9), 0.0|0.0  }
   0xe   : > { %194 = sbr.rel (%p191_p9) target bundleno = 588 (0x24c), region = 40  ;;  %458 = vmatprep.subr.bf16.mxu0 (!%p191_p9), %v574_v17  ;;  %v459_v18 = vpack.c.bf16 (!%p191_p9), %v282_v15, %v281_v14  ;;  %v284_v19 = vld [vmem:[%s739_s3 + $0x18] sm:$0xff] (!%p191_p9)  ;;  %vm575_vm1 = vmmov (!%p191_p9), 0   ;;  %v576_v20 = vmov (!%p191_p9), 0.0   ;;  %v435_v29 = vld [vmem:[%s737_s1] ss:$0 sm:$0xff] (!%p191_p9) }
   0xf   : > { %455 = vmatprep.mubr.msk.f32.mxu0 (!%p191_p9), %vm575_vm1, %v576_v20  ;;  %v462_v21 = vpack.c.bf16 (!%p191_p9), %v284_v19, %v283_v16  ;;  %v436_v33 = vld [vmem:[%s738_s2] ss:$0 sm:$0xff] (!%p191_p9)  ;;  %vm359_vm2 = vcmask (!%p191_p9), 73728  }
  0x10   : > { %460 = vmatpush3.bf16.msra.mxu0 (!%p191_p9), %v459_v18  ;;  %v285_v48 = vld [vmem:[%s740_s4] sm:$0x1] (!%p191_p9) }
  0x11   : > { %461 = vmatprep.subr.bf16.mxu0 (!%p191_p9), %v574_v17 }
  0x14   : > { %463 = vmatpush3.bf16.msra.mxu0 (!%p191_p9), %v462_v21 }
  0x15   : > { %s218_s30 = scalar_select %p217_p10, %s629_s22, 1 }
  0x17   : > { %s441_s6 = sshll.u32 %s218_s30, 4 }
  0x18   : > { %s221_s9 = scalar_lea.vmem %s736_s0, %s441_s6  ;;  %s215_s6 = sand.u32 1, %s564_s19  }
  0x19   : > { %v222_v0 = vld [vmem:[%s221_s9] sm:$0xff]  ;;  %v223_v1 = vld [vmem:[%s221_s9 + $0x8] sm:$0xff]  ;;  %s438_s9 = sshll.u32 %s629_s22, 4  ;;  %s216_s10 = scalar_lea.vmem [#allocation2], %s215_s6 }
  0x1a   : > { %v227_v2 = vsel %vm226_vm0, %v222_v0, 0.0  ;;  %v230_v3 = vsel %vm226_vm0, %v223_v1, 0.0  ;;  %s374_s11 = sshll.u32 %s216_s10, 4  ;;  %s694_s14 = scalar_lea.hbm %s741_s5, %s438_s9  ;;  %s696_s11 = int_to_ptr.vmem [resolvable:$true] %s374_s11 }
  0x1b   : > { %228 = vadd.xlane.f32.xlu0 %v227_v2  ;;  %s362_s15 = scalar_lea.sflag [#allocation3], %s215_s6  ;;  %s510_s16 = scalar_lea.vmem %s696_s11, 16 }
  0x1c   : > { %p511_p11 = scmp.ne.s32.totalorder %s696_s11, %s510_s16  ;;  %s577_s22 = smov [#allocation2]  }
  0x1d   : > { %s514_s17 = sshll.u32 %s577_s22, 4  ;;  %s515_s17 = int_to_ptr.vmem [resolvable:$false] %s514_s17 }
  0x1e   : > { %p512_p12 = pnand %p511_p11, %p646_p5  ;;  %s516_s23 = scalar_lea.vmem %s515_s17, 32 }
  0x1f   : > { %231 = vadd.xlane.f32.xlu0 %v230_v3  ;;  %p517_p0 = scmp.lt.s32.totalorder %s696_s11, %s515_s17  ;;  %p518_p1 = scmp.lt.s32.totalorder %s516_s23, %s510_s16 }
  0x20   : > { %p513_p13 = pneg %p512_p12 }
  0x21   : > { %p519_p2 = por %p518_p1, %p517_p0 }
  0x23   : > { %p520_p3 = pnand %p519_p2, %p513_p13 }
  0xa8   : > { %v229_v4 = vpop.xlane.xlu0 %228 }
  0xa9   : > { %v234_v5 = vmul.f32 0.03125, %v229_v4 }
  0xab   : > { %v236_v6 = vsub.f32 %v222_v0, %v234_v5 }
  0xac   : > { %v232_v7 = vpop.xlane.xlu0 %231 }
  0xad   : > { %v235_v8 = vmul.f32 0.03125, %v232_v7  ;;  %v238_v9 = vmul.f32 %v236_v6, %v236_v6 }
  0xaf   : > { %v237_v10 = vsub.f32 %v223_v1, %v235_v8  ;;  %v240_v11 = vsel %vm226_vm0, %v238_v9, 0.0 }
  0xb0   : > { %241 = vadd.xlane.f32.xlu1 %v240_v11 }
  0xb1   : > { %v239_v12 = vmul.f32 %v237_v10, %v237_v10 }
  0xb3   : > { %v243_v13 = vsel %vm226_vm0, %v239_v12, 0.0 }
  0xb4   : > { %244 = vadd.xlane.f32.xlu1 %v243_v13 }
 0x13d   : > { %v242_v22 = vpop.xlane.xlu1 %241 }
 0x13e   : > { %v246_v23 = vmul.f32 0.03125, %v242_v22 }
 0x140   : > { %v248_v24 = vadd.f32 1e-05, %v246_v23 }
 0x141   : > { %v245_v25 = vpop.xlane.xlu1 %244 }
 0x142   : > { %506 = vrsqrt.f32 %v248_v24  ;;  %v247_v26 = vmul.f32 0.03125, %v245_v25 }
 0x144   : > { %v249_v27 = vadd.f32 1e-05, %v247_v26 }
 0x146   : > { %508 = vrsqrt.f32 %v249_v27 }
 0x14c   : > { %v507_v28 = vpop.eup %506 }
 0x14d   : > { %v252_v30 = vmul.f32 %v507_v28, %v236_v6 }
 0x14f   : > { %v260_v31 = vmul.f32 %v435_v29, %v252_v30 }
 0x150   : > { %v509_v32 = vpop.eup %508 }
 0x151   : > { %v253_v34 = vmul.f32 %v509_v32, %v237_v10  ;;  %v268_v35 = vadd.f32 %v436_v33, %v260_v31 }
 0x153   : > { %v261_v36 = vmul.f32 %v435_v29, %v253_v34  ;;  %v270_v38 = vsel %vm226_vm0, %v268_v35, 0.0 }
 0x155   : > { %v269_v37 = vadd.f32 %v436_v33, %v261_v36 }
 0x157   : > { %v271_v39 = vsel %vm226_vm0, %v269_v37, 0.0 }
 0x158   : > { %v272_v40 = vadd.f32 %v271_v39, %v270_v38 }
 0x15a   : > { %v273_v41 = vrot.slane %v272_v40, 4 }
 0x15c   : > { %v274_v42 = vadd.f32 %v273_v41, %v272_v40 }
 0x15e   : > { %v275_v43 = vrot.slane %v274_v42, 2 }
 0x160   : > { %v276_v44 = vadd.f32 %v275_v43, %v274_v42 }
 0x162   : > { %v277_v45 = vrot.slane %v276_v44, 1 }
 0x164   : > { %v278_v46 = vadd.f32 %v277_v45, %v276_v44 }
 0x166   : > { %v280_v47 = vmul.f32 0.0625, %v278_v46 }
 0x168   : > { %456 = vmatmul.mubr.msk.f32.vlgmr.msra.gmra.mrb[0].mxu0 %vm226_vm0, %v280_v47 }
 0x23b   : > { %v355_v49 = vpop.f32.mrb[0].mxu0 }
 0x23c   : > { %v356_v50 = vadd.f32 %v355_v49, %v285_v48  ;;  %v457_v51 = vpop.f32.mrb[1].mxu0 }
 0x23e   : > { %360 = vst.msk [vmem:[%s216_s10] sm:$0x1] %vm359_vm2, %v356_v50 }
 0x23f   : > { %523 = shalt.err (!%p520_p3)
}
 0x240   : > { %s524_s25 = scalar_lea.hbm %s694_s14, 16  ;;  %s528_s6 = scalar_lea.hbm %s741_s5, 32 }
 0x241   : > { %p525_p4 = scmp.ne.s32.totalorder %s694_s14, %s524_s25  ;;  %p529_p9 = scmp.lt.u32.totalorder %s694_s14, %s741_s5 }
 0x242   : > { %p530_p10 = scmp.lt.u32.totalorder %s528_s6, %s524_s25  ;;  %p532_p12 = scmp.lt.u32.totalorder %s524_s25, %s694_s14 }
 0x243   : > { %p526_p7 = pnand %p525_p4, %p646_p5 }
 0x244   : > { %p531_p11 = por %p530_p10, %p529_p9 }
 0x245   : > { %p527_p8 = pneg %p526_p7 }
 0x246   : > { %p533_p13 = por %p532_p12, %p531_p11 }
 0x248   : > { %p534_p0 = pnand %p533_p13, %p527_p8 }
 0x24a   : > { %537 = shalt.err (!%p534_p0)
}
 0x24b   : > { %464 = dma.vmem_to_hbm [thread:$0]  (%p646_p5), %s696_s11, 16, %s694_s14, %s362_s15  }
 0x24c PF: > { %p470_p1 = scmp.ge.s32.totalorder %s572_s21, 2  ;;  %s386_s9 = sand.u32 1, %s560_s18  }
 0x24d   : > { %s387_s10 = scalar_lea.sflag [#allocation3], %s386_s9 }
 0x24e   : > { %p467_p2 = pnand %p470_p1, %p650_p6 }
 0x250   : > { %555 = dma.done.wait (!%p467_p2), %s387_s10, 16  }
 0x251   : > { %557 = vsyncadd (!%p467_p2), %s387_s10, 4294967280  ;;  %p15_p3 = scmp.ge.s32.totalorder %s633_s24, 4   ;;  %s744_s18 = smov %s564_s19 }
 0x252   : > { %s745_s19 = smov %s568_s20  ;;  %s746_s20 = smov %s644_s27 }
 0x253   : > { %s747_s21 = smov %s633_s24  ;;  %17 = sbr.rel (!%p15_p3) target bundleno = 3 (0x3), region = 75 }
 0x25a   :  { %391 = vsyncpa [#allocation3], 1 }
 0x25b   :  { %393 = vsyncpa [#allocation3 + $0x1], 1 }

</bundles_post_ra>
